<compile_context>
chip_gen: v6e
topology: v6e:2x2x1
jax: 0.10.0
libtpu: 0.0.40
codegen_flags: <defaults>
</compile_context>

<pallas_src>
import functools
import math

import jax
import jax.numpy as jnp
from jax import lax
from jax.experimental import pallas as pl
from jax.experimental.pallas import tpu as pltpu


def posenc_kernel(pos_ref, rs_ref, cmask_ref, w_ref, b_ref, out_ref, *, sub_rows):
    """pos_ref:   [TB, Pp]   positions (position dims zero-padded to Pp)
       rs_ref:    [Pp, P*E]  expansion matrix with frequencies folded in
       cmask_ref: [1,  P*E]  1.0 on cos lanes, 0.0 on sin lanes
       w_ref:     [P*E, E]   projection weight, (in_features, out_features) layout
       b_ref:     [1,  E]    projection bias
       out_ref:   [TB, E]
    """
    rs = rs_ref[...]
    w = w_ref[...]
    b = b_ref[...]
    m = cmask_ref[...]          # 1.0 on cos lanes
    im = 1.0 - m                # 1.0 on sin lanes

    def chunk(pos_blk):
        # Tiny K=P MXU pass replaces the wrapper-side 32x repeat (input DMA now 16 B/row).
        angles = jnp.dot(pos_blk, rs, preferred_element_type=jnp.float32)   # [rows, P*E]
        # Exact sin/cos lane blend (per lane exactly sin or exactly cos).
        feats = jnp.sin(angles) * im + jnp.cos(angles) * m                  # [rows, P*E]
        # Fused projection: one [rows,128] x [128,E] f32 MXU pass + bias.
        return jnp.dot(feats, w, preferred_element_type=jnp.float32) + b    # [rows, E]

    tb = out_ref.shape[0]
    if tb <= sub_rows or tb % sub_rows != 0:
        # Single-pass body (small-batch fast path / odd block sizes).
        out_ref[...] = chunk(pos_ref[...])
    else:
        # Sub-chunk large batch tiles so the live f32 intermediate stays bounded.
        n_chunks = tb // sub_rows

        def body(c, carry):
            r = pl.multiple_of(c * sub_rows, sub_rows)
            out_ref[pl.ds(r, sub_rows), :] = chunk(pos_ref[pl.ds(r, sub_rows), :])
            return carry

        lax.fori_loop(0, n_chunks, body, None, unroll=True)


def positional_encoding(position, weight_t, bias, *, n_encoding_dims, max_len=10000,
                        batch_tile=512, sub_rows=256):
    """position: [B, P] f32.  weight_t: [P*E, E] (torch weight transposed).  bias: [E]."""
    B, P = position.shape
    E = n_encoding_dims
    A = E // 2
    PE = P * E

    # Frequencies exp(linspace(0, -log(max_len), A)) * 2*pi, identical for every position dim.
    log_freq = jnp.linspace(0.0, -math.log(float(max_len)), A, dtype=jnp.float32)
    freq = jnp.exp(log_freq) * (2.0 * math.pi)                              # [A]
    freq_e = jnp.concatenate([freq, freq])                                  # [E] (sin lanes, cos lanes)

    # Expansion matrix: Rs[p, p*E + j] = freq_e[j], zero elsewhere  ->  angles = pos @ Rs.
    rs = jnp.kron(jnp.eye(P, dtype=jnp.float32), freq_e[None, :])           # [P, P*E]
    # Pad the tiny contraction dim up to 8 sublanes; zero rows/cols contribute nothing.
    Pp = max(8, -(-P // 8) * 8)
    pos = jnp.pad(position.astype(jnp.float32), ((0, 0), (0, Pp - P)))      # [B, Pp]
    rs = jnp.pad(rs, ((0, Pp - P), (0, 0)))                                 # [Pp, P*E]

    # 1.0 on cos lanes, 0.0 on sin lanes, flattened feature order
    #   [sin(p0, A), cos(p0, A), sin(p1, A), cos(p1, A), ...].
    cmask = jnp.tile(jnp.concatenate([jnp.zeros((A,), jnp.float32),
                                      jnp.ones((A,), jnp.float32)]), P).reshape(1, PE)

    w = weight_t.astype(jnp.float32)                                        # [P*E, E]
    b2 = bias.reshape(1, E).astype(jnp.float32)                             # [1, E]

    # Small-batch fast path: one grid step.  Large B: batch_tile-row (multiple-of-8) steps,
    # >= 2 steps so the "parallel" batch axis can shard across TensorCores (v7x megacore).
    TB = B if B <= batch_tile else batch_tile
    grid = (pl.cdiv(B, TB),)
    # Note: if B % TB != 0 the last block's excess rows are garbage reads, but rows are
    # independent and out-of-range writes are clipped, so every valid row is correct.

    cost = pl.CostEstimate(
        flops=2 * B * Pp * PE + 4 * B * PE + 2 * B * PE * E + B * E,
        transcendentals=2 * B * PE,
        bytes_accessed=4 * (B * Pp + Pp * PE + PE + PE * E + E + B * E),
    )

    kernel = functools.partial(posenc_kernel, sub_rows=sub_rows)

    return pl.pallas_call(
        kernel,
        out_shape=jax.ShapeDtypeStruct((B, E), jnp.float32),
        grid_spec=pltpu.PrefetchScalarGridSpec(
            num_scalar_prefetch=0,
            grid=grid,
            in_specs=[
                pl.BlockSpec((TB, Pp), lambda i: (i, 0)),    # positions (only gridded input)
                pl.BlockSpec((Pp, PE), lambda i: (0, 0)),    # expansion matrix (freqs folded in)
                pl.BlockSpec((1, PE), lambda i: (0, 0)),     # cos-lane mask
                pl.BlockSpec((PE, E), lambda i: (0, 0)),     # projection weight
                pl.BlockSpec((1, E), lambda i: (0, 0)),      # projection bias
            ],
            out_specs=pl.BlockSpec((TB, E), lambda i: (i, 0)),
        ),
        compiler_params=pltpu.CompilerParams(dimension_semantics=("parallel",)),
        cost_estimate=cost,
    )(pos, rs, cmask, w, b2)


def positional_encoding_ref(position, weight_t, bias, *, n_encoding_dims, max_len=10000):
    """Pure-JAX reference mirroring the PyTorch forward exactly."""
    B, P = position.shape
    E = n_encoding_dims
    A = E // 2
    log_freq = jnp.linspace(0.0, -math.log(float(max_len)), A, dtype=jnp.float32)
    freq = jnp.exp(log_freq)[None, None, :] * (2.0 * math.pi)        # [1,1,A]
    angles = freq * position[:, :, None]                             # [B,P,A]
    emb = jnp.concatenate([jnp.sin(angles), jnp.cos(angles)], -1)    # [B,P,E]
    flat = emb.reshape(B, P * E)
    proj = jnp.dot(flat, weight_t, precision=jax.lax.Precision.HIGHEST)
    return proj + bias[None, :]


if __name__ == "__main__":
    # Module hyperparameters (consistent with the forward pass).
    n_position_dims = 4
    n_encoding_dims = 32          # even -> n_angles = 16, P*E = 128 (one full lane row)
    max_len = 10000

    key = jax.random.PRNGKey(0)
    k_pos, k_w, k_b = jax.random.split(key, 3)

    # Deterministic Linear(E*P, E) init (uniform +/- 1/sqrt(fan_in), like torch default).
    fan_in = n_encoding_dims * n_position_dims
    bound = 1.0 / math.sqrt(fan_in)
    # torch weight is [E, P*E]; we keep the transposed layout [P*E, E].
    weight_t = jax.random.uniform(k_w, (fan_in, n_encoding_dims),
                                  minval=-bound, maxval=bound, dtype=jnp.float32)
    bias = jax.random.uniform(k_b, (n_encoding_dims,),
                              minval=-bound, maxval=bound, dtype=jnp.float32)

    # Case 1: small batch -> single grid step, single-pass body (small-batch fast path).
    B1 = 256
    pos1 = jax.random.uniform(k_pos, (B1, n_position_dims), dtype=jnp.float32)
    out1 = jax.block_until_ready(
        positional_encoding(pos1, weight_t, bias,
                            n_encoding_dims=n_encoding_dims, max_len=max_len))
    ref1 = positional_encoding_ref(pos1, weight_t, bias,
                                   n_encoding_dims=n_encoding_dims, max_len=max_len)
    assert out1.shape == (B1, n_encoding_dims)
    assert jnp.allclose(out1, ref1, atol=1e-4, rtol=1e-4), "mismatch vs reference (small batch)"

    # Case 2: larger batch -> 2 x 512-row grid steps, each split into 256-row sub-chunks.
    B2 = 1024
    pos2 = jax.random.uniform(jax.random.PRNGKey(1), (B2, n_position_dims), dtype=jnp.float32)
    out2 = jax.block_until_ready(
        positional_encoding(pos2, weight_t, bias,
                            n_encoding_dims=n_encoding_dims, max_len=max_len))
    ref2 = positional_encoding_ref(pos2, weight_t, bias,
                                   n_encoding_dims=n_encoding_dims, max_len=max_len)
    assert out2.shape == (B2, n_encoding_dims)
    assert jnp.allclose(out2, ref2, atol=1e-4, rtol=1e-4), "mismatch vs reference (tiled batch)"

    print("KERNEL_OK")
</pallas_src>

<mosaic_0001>
module attributes {stable_mosaic.version = 11 : i64} {
  func.func @posenc_kernel(%arg0: i32, %arg1: memref<256x8xf32, #tpu.memory_space<vmem>>, %arg2: memref<8x128xf32, #tpu.memory_space<vmem>>, %arg3: memref<1x128xf32, #tpu.memory_space<vmem>>, %arg4: memref<128x32xf32, #tpu.memory_space<vmem>>, %arg5: memref<1x32xf32, #tpu.memory_space<vmem>>, %arg6: memref<256x32xf32, #tpu.memory_space<vmem>>) attributes {dimension_semantics = [#tpu.dimension_semantics<parallel>], iteration_bounds = array<i64: 1>, scalar_prefetch = 0 : i64, scratch_operands = 0 : i64, tpu.core_type = #tpu.core_type<tc>, window_params = [{transform_indices = @transform_0, window_bounds = array<i64: 256, 8>}, {pipeline_mode = #tpu.pipeline_mode<synchronous>, transform_indices = @transform_1, window_bounds = array<i64: 8, 128>}, {pipeline_mode = #tpu.pipeline_mode<synchronous>, transform_indices = @transform_2, window_bounds = array<i64: 1, 128>}, {pipeline_mode = #tpu.pipeline_mode<synchronous>, transform_indices = @transform_3, window_bounds = array<i64: 128, 32>}, {pipeline_mode = #tpu.pipeline_mode<synchronous>, transform_indices = @transform_4, window_bounds = array<i64: 1, 32>}, {transform_indices = @transform_5, window_bounds = array<i64: 256, 32>}]} {
    %c0 = arith.constant 0 : index
    %c0_0 = arith.constant 0 : index
    %0 = vector.load %arg2[%c0, %c0_0] : memref<8x128xf32, #tpu.memory_space<vmem>>, vector<8x128xf32>
    %c0_1 = arith.constant 0 : index
    %c0_2 = arith.constant 0 : index
    %1 = vector.load %arg4[%c0_1, %c0_2] : memref<128x32xf32, #tpu.memory_space<vmem>>, vector<128x32xf32>
    %c0_3 = arith.constant 0 : index
    %c0_4 = arith.constant 0 : index
    %2 = vector.load %arg5[%c0_3, %c0_4] : memref<1x32xf32, #tpu.memory_space<vmem>>, vector<1x32xf32>
    %c0_5 = arith.constant 0 : index
    %c0_6 = arith.constant 0 : index
    %3 = vector.load %arg3[%c0_5, %c0_6] : memref<1x128xf32, #tpu.memory_space<vmem>>, vector<1x128xf32>
    %cst = arith.constant 1.000000e+00 : f32
    %4 = vector.broadcast %cst : f32 to vector<1x128xf32>
    %5 = arith.subf %4, %3 : vector<1x128xf32>
    %c0_7 = arith.constant 0 : index
    %c0_8 = arith.constant 0 : index
    %6 = vector.load %arg1[%c0_7, %c0_8] : memref<256x8xf32, #tpu.memory_space<vmem>>, vector<256x8xf32>
    %cst_9 = arith.constant dense<0.000000e+00> : vector<256x128xf32>
    %7 = tpu.matmul %6, %0, %cst_9 {dimension_numbers = #tpu.dot_dimension_numbers<[1], [0], [0], [1], [0, 0, 1, 1], [], []>} : vector<256x8xf32>, vector<8x128xf32>, vector<256x128xf32> -> vector<256x128xf32>
    %8 = math.sin %7 : vector<256x128xf32>
    %9 = vector.broadcast %5 : vector<1x128xf32> to vector<256x128xf32>
    %10 = arith.mulf %8, %9 : vector<256x128xf32>
    %11 = math.cos %7 : vector<256x128xf32>
    %12 = vector.broadcast %3 : vector<1x128xf32> to vector<256x128xf32>
    %13 = arith.mulf %11, %12 : vector<256x128xf32>
    %14 = arith.addf %10, %13 : vector<256x128xf32>
    %cst_10 = arith.constant dense<0.000000e+00> : vector<256x32xf32>
    %15 = tpu.matmul %14, %1, %cst_10 {dimension_numbers = #tpu.dot_dimension_numbers<[1], [0], [0], [1], [0, 0, 1, 1], [], []>} : vector<256x128xf32>, vector<128x32xf32>, vector<256x32xf32> -> vector<256x32xf32>
    %16 = vector.broadcast %2 : vector<1x32xf32> to vector<256x32xf32>
    %17 = arith.addf %15, %16 : vector<256x32xf32>
    %c0_11 = arith.constant 0 : index
    %c0_12 = arith.constant 0 : index
    %18 = vector.load %arg6[%c0_11, %c0_12] : memref<256x32xf32, #tpu.memory_space<vmem>>, vector<256x32xf32>
    tpu.vector_store %arg6[%c0_11, %c0_12], %17 {strides = array<i32>} : memref<256x32xf32, #tpu.memory_space<vmem>>, vector<256x32xf32>,
    return
  }
  func.func @transform_0(%arg0: i32) -> (i32, i32) {
    %c0_i32 = arith.constant 0 : i32
    %c0_i32_0 = arith.constant 0 : i32
    return %arg0, %c0_i32 : i32, i32
  }
  func.func @transform_1(%arg0: i32) -> (i32, i32) {
    %c0_i32 = arith.constant 0 : i32
    %c0_i32_0 = arith.constant 0 : i32
    %c0_i32_1 = arith.constant 0 : i32
    return %c0_i32, %c0_i32_0 : i32, i32
  }
  func.func @transform_2(%arg0: i32) -> (i32, i32) {
    %c0_i32 = arith.constant 0 : i32
    %c0_i32_0 = arith.constant 0 : i32
    %c0_i32_1 = arith.constant 0 : i32
    return %c0_i32, %c0_i32_0 : i32, i32
  }
  func.func @transform_3(%arg0: i32) -> (i32, i32) {
    %c0_i32 = arith.constant 0 : i32
    %c0_i32_0 = arith.constant 0 : i32
    %c0_i32_1 = arith.constant 0 : i32
    return %c0_i32, %c0_i32_0 : i32, i32
  }
  func.func @transform_4(%arg0: i32) -> (i32, i32) {
    %c0_i32 = arith.constant 0 : i32
    %c0_i32_0 = arith.constant 0 : i32
    %c0_i32_1 = arith.constant 0 : i32
    return %c0_i32, %c0_i32_0 : i32, i32
  }
  func.func @transform_5(%arg0: i32) -> (i32, i32) {
    %c0_i32 = arith.constant 0 : i32
    %c0_i32_0 = arith.constant 0 : i32
    return %arg0, %c0_i32 : i32, i32
  }
}

</mosaic_0001>

<bundles_post_ra>
// kernel: tpu_custom_call.1
= control target key start
LH: loop header
LB: loop body
LE: loop exit
PB: predicated region body
PF: predicated region fallthrough
CT: control target
= control target key end

     0   :  { %vm72_vm0 = vcmask 64512   ;;  %v12017_v59 = vmov 683565275   ;;  %v12010_v61 = vmov 2475754826   ;;  %s12000_s1 = inlined_call_operand.vmem [shape: f32[8,128], index: 1, kind: input, shape index: {}]   ;;  %s12001_s0 = inlined_call_operand.vmem [shape: f32[256,8], index: 0, kind: input, shape index: {}]   ;;  %s12002_s2 = inlined_call_operand.vmem [shape: f32[1,128], index: 2, kind: input, shape index: {}]   ;;  %s12003_s3 = inlined_call_operand.vmem [shape: f32[128,32], index: 3, kind: input, shape index: {}]   ;;  %s12004_s4 = inlined_call_operand.vmem [shape: f32[1,32], index: 4, kind: input, shape index: {}]   ;;  %s12005_s5 = inlined_call_operand.vmem [shape: f32[256,32], index: 5, kind: output, shape index: {}]  }
   0x1   :  { %v20_v0 = vld [vmem:[%s12000_s1] sm:$0xff]  ;;  %v41_v2 = vld [vmem:[%s12001_s0 + $0x8] sm:$0xff]  ;;  %v42_v3 = vld [vmem:[%s12001_s0 + $0x10] sm:$0xff]  ;;  %v12008_v63 = vmov 2131351028  }
   0x2   :  { %v40_v1 = vld [vmem:[%s12001_s0] sm:$0xff]  ;;  %7764 = vmatprep.subr.mxu0 %v20_v0  ;;  %v43_v4 = vld [vmem:[%s12001_s0 + $0x18] sm:$0xff]  ;;  %v45_v6 = vld [vmem:[%s12001_s0 + $0x28] sm:$0xff] }
   0x3   :  { %7766 = vmatprep.mubr.msk.f32.mxu0 %vm72_vm0, %v40_v1  ;;  %7765 = vmatpush3.msra.mxu0 %v20_v0  ;;  %v44_v5 = vld [vmem:[%s12001_s0 + $0x20] sm:$0xff]  ;;  %v46_v7 = vld [vmem:[%s12001_s0 + $0x30] sm:$0xff]  ;;  %v47_v8 = vld [vmem:[%s12001_s0 + $0x38] sm:$0xff]  ;;  %v12012_v1 = vmov 2102212464  }
   0x4   :  { %7767 = vmatmul.mubr.msk.f32.vlgmr.msra.gmra.mxu0 %vm72_vm0, %v41_v2  ;;  %v48_v9 = vld [vmem:[%s12001_s0 + $0x40] sm:$0xff]  ;;  %v49_v10 = vld [vmem:[%s12001_s0 + $0x48] sm:$0xff]  ;;  %v50_v11 = vld [vmem:[%s12001_s0 + $0x50] sm:$0xff] }
   0x5   :  { %7769 = vmatprep.mubr.msk.f32.mxu0 %vm72_vm0, %v42_v3  ;;  %v51_v12 = vld [vmem:[%s12001_s0 + $0x58] sm:$0xff]  ;;  %v52_v13 = vld [vmem:[%s12001_s0 + $0x60] sm:$0xff]  ;;  %v53_v14 = vld [vmem:[%s12001_s0 + $0x68] sm:$0xff]  ;;  %v12021_v3 = vmov 920167782  }
   0x6   :  { %v54_v15 = vld [vmem:[%s12001_s0 + $0x70] sm:$0xff]  ;;  %v55_v16 = vld [vmem:[%s12001_s0 + $0x78] sm:$0xff]  ;;  %v56_v17 = vld [vmem:[%s12001_s0 + $0x80] sm:$0xff] }
   0x7   :  { %v57_v18 = vld [vmem:[%s12001_s0 + $0x88] sm:$0xff]  ;;  %v58_v19 = vld [vmem:[%s12001_s0 + $0x90] sm:$0xff]  ;;  %v59_v20 = vld [vmem:[%s12001_s0 + $0x98] sm:$0xff] }
   0x8   :  { %7770 = vmatmul.mubr.msk.f32.gmra.mxu0 %vm72_vm0, %v43_v4  ;;  %v60_v21 = vld [vmem:[%s12001_s0 + $0xa0] sm:$0xff]  ;;  %v61_v22 = vld [vmem:[%s12001_s0 + $0xa8] sm:$0xff]  ;;  %v62_v23 = vld [vmem:[%s12001_s0 + $0xb0] sm:$0xff] }
   0x9   :  { %7772 = vmatprep.mubr.msk.f32.mxu0 %vm72_vm0, %v44_v5  ;;  %v63_v24 = vld [vmem:[%s12001_s0 + $0xb8] sm:$0xff]  ;;  %v64_v25 = vld [vmem:[%s12001_s0 + $0xc0] sm:$0xff]  ;;  %v65_v26 = vld [vmem:[%s12001_s0 + $0xc8] sm:$0xff] }
   0xa   :  { %v66_v27 = vld [vmem:[%s12001_s0 + $0xd0] sm:$0xff]  ;;  %v67_v28 = vld [vmem:[%s12001_s0 + $0xd8] sm:$0xff]  ;;  %v68_v29 = vld [vmem:[%s12001_s0 + $0xe0] sm:$0xff] }
   0xb   :  { %v69_v30 = vld [vmem:[%s12001_s0 + $0xe8] sm:$0xff]  ;;  %v70_v31 = vld [vmem:[%s12001_s0 + $0xf0] sm:$0xff]  ;;  %v71_v32 = vld [vmem:[%s12001_s0 + $0xf8] sm:$0xff] }
   0xc   :  { %7773 = vmatmul.mubr.msk.f32.gmra.mxu0 %vm72_vm0, %v45_v6 }
   0xd   :  { %7775 = vmatprep.mubr.msk.f32.mxu0 %vm72_vm0, %v46_v7 }
  0x10   :  { %7776 = vmatmul.mubr.msk.f32.gmra.mxu0 %vm72_vm0, %v47_v8 }
  0x11   :  { %7778 = vmatprep.mubr.msk.f32.mxu0 %vm72_vm0, %v48_v9 }
  0x14   :  { %7779 = vmatmul.mubr.msk.f32.gmra.mxu0 %vm72_vm0, %v49_v10  ;;  %v12019_v10 = vmov 1326507024  }
  0x15   :  { %7781 = vmatprep.mubr.msk.f32.mxu0 %vm72_vm0, %v50_v11 }
  0x18   :  { %7782 = vmatmul.mubr.msk.f32.gmra.mxu0 %vm72_vm0, %v51_v12 }
  0x19   :  { %7784 = vmatprep.mubr.msk.f32.mxu0 %vm72_vm0, %v52_v13 }
  0x1c   :  { %7785 = vmatmul.mubr.msk.f32.gmra.mxu0 %vm72_vm0, %v53_v14 }
  0x1d   :  { %7787 = vmatprep.mubr.msk.f32.mxu0 %vm72_vm0, %v54_v15 }
  0x20   :  { %7788 = vmatmul.mubr.msk.f32.gmra.mxu0 %vm72_vm0, %v55_v16 }
  0x21   :  { %7790 = vmatprep.mubr.msk.f32.mxu0 %vm72_vm0, %v56_v17 }
  0x24   :  { %7791 = vmatmul.mubr.msk.f32.gmra.mxu0 %vm72_vm0, %v57_v18 }
  0x25   :  { %7793 = vmatprep.mubr.msk.f32.mxu0 %vm72_vm0, %v58_v19 }
  0x28   :  { %7794 = vmatmul.mubr.msk.f32.gmra.mxu0 %vm72_vm0, %v59_v20 }
  0x29   :  { %7796 = vmatprep.mubr.msk.f32.mxu0 %vm72_vm0, %v60_v21 }
  0x2c   :  { %7797 = vmatmul.mubr.msk.f32.gmra.mxu0 %vm72_vm0, %v61_v22 }
  0x2d   :  { %7799 = vmatprep.mubr.msk.f32.mxu0 %vm72_vm0, %v62_v23 }
  0x30   :  { %7800 = vmatmul.mubr.msk.f32.gmra.mxu0 %vm72_vm0, %v63_v24 }
  0x31   :  { %7802 = vmatprep.mubr.msk.f32.mxu0 %vm72_vm0, %v64_v25 }
  0x34   :  { %7803 = vmatmul.mubr.msk.f32.gmra.mxu0 %vm72_vm0, %v65_v26 }
  0x35   :  { %7805 = vmatprep.mubr.msk.f32.mxu0 %vm72_vm0, %v66_v27 }
  0x38   :  { %7806 = vmatmul.mubr.msk.f32.gmra.mxu0 %vm72_vm0, %v67_v28 }
  0x39   :  { %7808 = vmatprep.mubr.msk.f32.mxu0 %vm72_vm0, %v68_v29 }
  0x3c   :  { %7809 = vmatmul.mubr.msk.f32.gmra.mxu0 %vm72_vm0, %v69_v30 }
  0x3d   :  { %7811 = vmatprep.mubr.msk.f32.mxu0 %vm72_vm0, %v70_v31 }
  0x40   :  { %7812 = vmatmul.mubr.msk.f32.gmra.mxu0 %vm72_vm0, %v71_v32 }
  0xc4   :  { %v8355_v33 = vpop.f32.mrf.mxu0 }
  0xc5   :  { %v498_v34 = vand.u32 2147483647, %v8355_v33  ;;  %v501_v35 = vand.u32 2139095040, %v8355_v33 }
  0xc6   :  { %v8359_v36 = vpop.f32.mrf.mxu0 }
  0xc7   :  { %v502_v37 = vshrl.u32 %v501_v35, 23  ;;  %v505_v38 = vand.u32 8388607, %v498_v34  ;;  %v394_v39 = vand.u32 2147483647, %v8359_v36  ;;  %v397_v40 = vand.u32 2139095040, %v8359_v36 }
  0xc8   :  { %v8365_v41 = vpop.f32.mrf.mxu0 }
  0xc9   :  { %12166 = vst [vmem:[#allocation2_spill] sm:$0xff] %v8365_v41  ;;  %v7430_v42 = vadd.s32 4294967169, %v502_v37  ;;  %v398_v43 = vshrl.u32 %v397_v40, 23  ;;  %v401_v44 = vand.u32 8388607, %v394_v39  ;;  %v709_v45 = vand.u32 2139095040, %v8365_v41 }
  0xca   :  { %v506_v47 = vor.u32 8388608, %v505_v38 }
  0xcb   :  { %v508_v46 = vadd.s32 1, %v7430_v42  ;;  %v7426_v48 = vadd.s32 4294967169, %v398_v43  ;;  %v402_v49 = vor.u32 8388608, %v401_v44  ;;  %v710_v50 = vshrl.u32 %v709_v45, 23 }
  0xcc   :  { %v8370_v55 = vshll.u32 %v506_v47, 8 }
  0xcd   :  { %vm509_vm1 = vcmp.gt.s32.totalorder %v508_v46, 0  ;;  %v404_v52 = vadd.s32 1, %v7426_v48  ;;  %v8372_v56 = vshll.u32 %v402_v49, 8  ;;  %v7438_v57 = vadd.s32 4294967169, %v710_v50 }
  0xce   :  { %v510_v51 = vsel %vm509_vm1, %v508_v46, 0 }
  0xcf   :  { %v511_v53 = vshrl.u32 %v510_v51, 5  ;;  %v512_v54 = vand.u32 31, %v510_v51  ;;  %vm405_vm2 = vcmp.gt.s32.totalorder %v404_v52, 0  ;;  %v716_v30 = vadd.s32 1, %v7438_v57 }
  0xd0   :  { %v406_v15 = vsel %vm405_vm2, %v404_v52, 0 }
  0xd1   :  { %v513_v58 = vsub.s32 32, %v512_v54  ;;  %v515_v60 = vshll.u32 %v12017_v59, %v512_v54  ;;  %v518_v62 = vshll.u32 %v12010_v61, %v512_v54  ;;  %v521_v0 = vshll.u32 %v12008_v63, %v512_v54 }
  0xd2   :  { %v524_v2 = vshll.u32 %v12012_v1, %v512_v54  ;;  %v527_v4 = vshll.u32 %v12021_v3, %v512_v54  ;;  %vm530_vm3 = vcmp.lt.s32.totalorder %v511_v53, 1  ;;  %vm531_vm4 = vcmp.lt.s32.totalorder %v511_v53, 2 }
  0xd3   :  { %v516_v5 = vshrl.u32 %v12010_v61, %v513_v58  ;;  %v519_v6 = vshrl.u32 %v12008_v63, %v513_v58  ;;  %v522_v7 = vshrl.u32 %v12012_v1, %v513_v58  ;;  %v514_v8 = vshrl.u32 %v12017_v59, %v513_v58 }
  0xd4   :  { %v525_v9 = vshrl.u32 %v12021_v3, %v513_v58  ;;  %v528_v11 = vshrl.u32 %v12019_v10, %v513_v58  ;;  %vm532_vm5 = vcmp.lt.s32.totalorder %v511_v53, 3  ;;  %vm533_vm6 = vcmp.lt.s32.totalorder %v511_v53, 4 }
  0xd5   :  { %v517_v12 = vor.u32 %v516_v5, %v515_v60  ;;  %v520_v13 = vor.u32 %v519_v6, %v518_v62  ;;  %v523_v14 = vor.u32 %v522_v7, %v521_v0  ;;  %v408_v18 = vand.u32 31, %v406_v15 }
  0xd6   :  { %v526_v16 = vor.u32 %v525_v9, %v524_v2  ;;  %v529_v17 = vor.u32 %v528_v11, %v527_v4  ;;  %v407_v35 = vshrl.u32 %v406_v15, 5  ;;  %vm717_vm12 = vcmp.gt.s32.totalorder %v716_v30, 0 }
  0xd7   :  { %v534_v19 = vsel %vm530_vm3, %v514_v8, %v517_v12  ;;  %v535_v20 = vsel %vm533_vm6, %v523_v14, 2102212464  ;;  %v538_v21 = vsel %vm530_vm3, %v517_v12, %v520_v13  ;;  %v542_v22 = vsel %vm530_vm3, %v520_v13, %v523_v14 }
  0xd8   :  { %v536_v23 = vsel %vm532_vm5, %v520_v13, %v535_v20  ;;  %v539_v24 = vsel %vm533_vm6, %v526_v16, 920167782  ;;  %v543_v25 = vsel %vm533_vm6, %v529_v17, 1326507024  ;;  %v409_v26 = vsub.s32 32, %v408_v18 }
  0xd9   :  { %v537_v27 = vsel %vm531_vm4, %v534_v19, %v536_v23  ;;  %v540_v28 = vsel %vm532_vm5, %v523_v14, %v539_v24  ;;  %v544_v29 = vsel %vm532_vm5, %v526_v16, %v543_v25  ;;  %v411_v37 = vshll.u32 %v12017_v59, %v408_v18 }
  0xda   :  { %v541_v31 = vsel %vm531_vm4, %v538_v21, %v540_v28  ;;  %v545_v32 = vsel %vm531_vm4, %v542_v22, %v544_v29  ;;  %v553_v44 = vmul.u32 %v8370_v55, %v537_v27  ;;  %v412_v45 = vshrl.u32 %v12010_v61, %v409_v26 }
  0xdb   :  { %v8397_v38 = vmul.u32.u64.low %v8370_v55, %v545_v32  ;;  %v8398_v40 = vmul.u32.u64.high %v8370_v55, %v545_v32, %v8397_v38  ;;  %v8401_v42 = vmul.u32.u64.low %v8370_v55, %v541_v31  ;;  %v8402_v43 = vmul.u32.u64.high %v8370_v55, %v541_v31, %v8401_v42 }
  0xdc   :  { %v414_v46 = vshll.u32 %v12010_v61, %v408_v18  ;;  %v415_v47 = vshrl.u32 %v12008_v63, %v409_v26  ;;  %v417_v48 = vshll.u32 %v12008_v63, %v408_v18  ;;  %v418_v49 = vshrl.u32 %v12012_v1, %v409_v26  ;;  %v8444_v38 = vpop.f32.mrf.mxu0 }
  0xdd   :  { %v420_v50 = vshll.u32 %v12012_v1, %v408_v18  ;;  %v421_v51 = vshrl.u32 %v12021_v3, %v409_v26  ;;  %v413_v52 = vor.u32 %v412_v45, %v411_v37  ;;  %v423_v54 = vshll.u32 %v12021_v3, %v408_v18  ;;  %12167 = vst [vmem:[#allocation3_spill] sm:$0xff] %v8444_v38 }
  0xde   :  { %v416_v53 = vor.u32 %v415_v47, %v414_v46  ;;  %v424_v55 = vshrl.u32 %v12019_v10, %v409_v26  ;;  %vm555_vm7 = vc.u32 %v8398_v40, %v8401_v42  ;;  %v556_v57 = vadd.s32 1, %v8402_v43 }
  0xdf   :  { %v410_v58 = vshrl.u32 %v12017_v59, %v409_v26  ;;  %v419_v60 = vor.u32 %v418_v49, %v417_v48  ;;  %v422_v62 = vor.u32 %v421_v51, %v420_v50  ;;  %vm426_vm8 = vcmp.lt.s32.totalorder %v407_v35, 1 }
  0xe0   :  { %v425_v0 = vor.u32 %v424_v55, %v423_v54  ;;  %vm427_vm9 = vcmp.lt.s32.totalorder %v407_v35, 2  ;;  %v557_v2 = vsel %vm555_vm7, %v556_v57, %v8402_v43  ;;  %vm428_vm10 = vcmp.lt.s32.totalorder %v407_v35, 3 }
  0xe1   :  { %vm429_vm11 = vcmp.lt.s32.totalorder %v407_v35, 4  ;;  %v434_v4 = vsel %vm426_vm8, %v413_v52, %v416_v53  ;;  %v558_v5 = vadd.s32 %v557_v2, %v553_v44  ;;  %v438_v8 = vsel %vm426_vm8, %v416_v53, %v419_v60 }
  0xe2   :  { %v431_v6 = vsel %vm429_vm11, %v419_v60, 2102212464  ;;  %v435_v7 = vsel %vm429_vm11, %v422_v62, 920167782  ;;  %v430_v9 = vsel %vm426_vm8, %v410_v58, %v413_v52  ;;  %v439_v12 = vsel %vm429_vm11, %v425_v0, 1326507024 }
  0xe3   :  { %v436_v11 = vsel %vm428_vm10, %v419_v60, %v435_v7  ;;  %v559_v13 = vadd.s32 536870912, %v558_v5  ;;  %v432_v14 = vsel %vm428_vm10, %v416_v53, %v431_v6  ;;  %v440_v16 = vsel %vm428_vm10, %v422_v62, %v439_v12 }
  0xe4   :  { %v437_v15 = vsel %vm427_vm9, %v434_v4, %v436_v11  ;;  %v441_v17 = vsel %vm427_vm9, %v438_v8, %v440_v16  ;;  %v718_v23 = vsel %vm717_vm12, %v716_v30, 0  ;;  %v433_v24 = vsel %vm427_vm9, %v430_v9, %v432_v14 }
  0xe5   :  { %v8423_v18 = vmul.u32.u64.low %v8372_v56, %v437_v15  ;;  %v8424_v19 = vmul.u32.u64.high %v8372_v56, %v437_v15, %v8423_v18  ;;  %v8427_v20 = vshrl.u32 %v559_v13, 30  ;;  %v720_v26 = vand.u32 31, %v718_v23 }
  0xe6   :  { %v8430_v21 = vmul.u32.u64.low %v8372_v56, %v441_v17  ;;  %v8431_v22 = vmul.u32.u64.high %v8372_v56, %v441_v17, %v8430_v21  ;;  %v449_v29 = vmul.u32 %v8372_v56, %v433_v24  ;;  %v706_v35 = vand.u32 2147483647, %v8365_v41 }
  0xe7   :  { %v561_v25 = vshll.u32 %v8427_v20, 30  ;;  %v452_v27 = vadd.s32 1, %v8424_v19  ;;  %v721_v30 = vsub.s32 32, %v720_v26  ;;  %v605_v47 = vand.u32 2139095040, %v8444_v38 }
  0xe8   :  { %vm451_vm13 = vc.u32 %v8431_v22, %v8423_v18  ;;  %v713_v49 = vand.u32 8388607, %v706_v35  ;;  %v723_v53 = vshll.u32 %v12017_v59, %v720_v26  ;;  %v726_v54 = vshll.u32 %v12010_v61, %v720_v26 }
  0xe9   :  { %v8436_v28 = vsub.s32 %v558_v5, %v561_v25  ;;  %v453_v31 = vsel %vm451_vm13, %v452_v27, %v8424_v19  ;;  %v724_v46 = vshrl.u32 %v12010_v61, %v721_v30  ;;  %v727_v56 = vshrl.u32 %v12008_v63, %v721_v30 }
  0xea   :  { %v454_v37 = vadd.s32 %v453_v31, %v449_v29  ;;  %v730_v50 = vshrl.u32 %v12012_v1, %v721_v30  ;;  %v733_v51 = vshrl.u32 %v12021_v3, %v721_v30  ;;  %v736_v55 = vshrl.u32 %v12019_v10, %v721_v30 }
  0xeb   :  { %v564_v32 = vsub.s32 0, %v8436_v28  ;;  %v719_v58 = vshrl.u32 %v718_v23, 5  ;;  %v729_v60 = vshll.u32 %v12008_v63, %v720_v26  ;;  %v732_v62 = vshll.u32 %v12012_v1, %v720_v26 }
  0xec   :  { %v455_v44 = vadd.s32 536870912, %v454_v37  ;;  %v725_v0 = vor.u32 %v724_v46, %v723_v53  ;;  %v728_v2 = vor.u32 %v727_v56, %v726_v54  ;;  %v735_v4 = vshll.u32 %v12021_v3, %v720_v26 }
  0xed   :  { %v7431_v43 = vmin.u32 %v564_v32, %v8436_v28  ;;  %v606_v5 = vshrl.u32 %v605_v47, 23  ;;  %v731_v7 = vor.u32 %v730_v50, %v729_v60  ;;  %v734_v8 = vor.u32 %v733_v51, %v732_v62 }
  0xee   :  { %v8450_v48 = vshrl.u32 %v455_v44, 30  ;;  %v714_v9 = vor.u32 8388608, %v713_v49  ;;  %v737_v11 = vor.u32 %v736_v55, %v735_v4  ;;  %vm738_vm15 = vcmp.lt.s32.totalorder %v719_v58, 1 }
  0xef   :  { %v566_v45 = vclz %v7431_v43  ;;  %vm741_vm0 = vcmp.lt.s32.totalorder %v719_v58, 4  ;;  %v746_v14 = vsel %vm738_vm15, %v725_v0, %v728_v2  ;;  %v7434_v15 = vadd.s32 4294967169, %v606_v5 }
  0xf0   :  { %v457_v57 = vshll.u32 %v8450_v48, 30  ;;  %vm740_vm1 = vcmp.lt.s32.totalorder %v719_v58, 3  ;;  %v747_v16 = vsel %vm741_vm0, %v734_v8, 920167782  ;;  %v750_v17 = vsel %vm738_vm15, %v728_v2, %v731_v7 }
  0xf1   :  { %v7432_v52 = vadd.s32 4294967294, %v566_v45  ;;  %vm739_vm2 = vcmp.lt.s32.totalorder %v719_v58, 2  ;;  %v748_v19 = vsel %vm740_vm1, %v731_v7, %v747_v16  ;;  %v751_v21 = vsel %vm741_vm0, %v737_v11, 1326507024 }
  0xf2   :  { %v8463_v6 = vsub.s32 %v454_v37, %v457_v57  ;;  %v754_v23 = vshll.u32 %v714_v9, 8  ;;  %v749_v26 = vsel %vm739_vm2, %v746_v14, %v748_v19  ;;  %v752_v27 = vsel %vm740_vm1, %v734_v8, %v751_v21 }
  0xf3   :  { %vm7433_vm14 = vcmp.lt.s32.totalorder %v7432_v52, 0  ;;  %v753_v29 = vsel %vm739_vm2, %v750_v17, %v752_v27  ;;  %v612_v31 = vadd.s32 1, %v7434_v15  ;;  %v743_v32 = vsel %vm741_vm0, %v731_v7, 2102212464 }
  0xf4   :  { %v460_v12 = vsub.s32 0, %v8463_v6  ;;  %v569_v13 = vsel %vm7433_vm14, 0, %v7432_v52  ;;  %v8476_v37 = vmul.u32.u64.low %v754_v23, %v753_v29  ;;  %v8477_v43 = vmul.u32.u64.high %v754_v23, %v753_v29, %v8476_v37 }
  0xf5   :  { %v574_v24 = vsub.s32 4294967266, %v569_v13  ;;  %v570_v44 = vsub.s32 32, %v569_v13  ;;  %v8479_v45 = vmul.u32.u64.low %v754_v23, %v749_v26  ;;  %v8480_v46 = vmul.u32.u64.high %v754_v23, %v749_v26, %v8479_v45  ;;  %v8512_v37 = vpop.f32.mrf.mxu0 }
  0xf6   :  { %v7427_v25 = vmin.u32 %v460_v12, %v8463_v6  ;;  %vm613_vm3 = vcmp.gt.s32.totalorder %v612_v31, 0  ;;  %v722_v49 = vshrl.u32 %v12017_v59, %v721_v30  ;;  %v554_v51 = vadd.s32 %v8401_v42, %v8398_v40  ;;  %12168 = vst [vmem:[#allocation4_spill] sm:$0xff] %v8512_v37 }
  0xf7   :  { %v575_v56 = vadd.s32 127, %v574_v24  ;;  %v614_v50 = vsel %vm613_vm3, %v612_v31, 0  ;;  %v744_v54 = vsel %vm740_vm1, %v728_v2, %v743_v32  ;;  %v764_v57 = vadd.s32 1, %v8480_v46 }
  0xf8   :  { %v462_v47 = vclz %v7427_v25  ;;  %v616_v52 = vand.u32 31, %v614_v50  ;;  %v742_v53 = vsel %vm738_vm15, %v722_v49, %v725_v0  ;;  %v572_v55 = vshrl.u32 %v554_v51, %v570_v44 }
  0xf9   :  { %v12014_v60 = vand.u32 2147483647, %v8444_v38  ;;  %v576_v4 = vshll.u32 %v575_v56, 23  ;;  %vm763_vm4 = vc.u32 %v8477_v43, %v8479_v45  ;;  %v571_v30 = vshll.u32 %v8436_v28, %v569_v13 }
  0xfa   :  { %v617_v62 = vsub.s32 32, %v616_v52  ;;  %v7428_v5 = vadd.s32 4294967294, %v462_v47  ;;  %v745_v40 = vsel %vm739_vm2, %v742_v53, %v744_v54  ;;  %v765_v2 = vsel %vm763_vm4, %v764_v57, %v8480_v46 }
  0xfb   :  { %v573_v0 = vor.u32 %v572_v55, %v571_v30  ;;  %v609_v7 = vand.u32 8388607, %v12014_v60  ;;  %v577_v9 = vor.u32 4788187, %v576_v4  ;;  %v761_v11 = vmul.u32 %v754_v23, %v745_v40 }
  0xfc   :  { %v620_v42 = vshrl.u32 %v12010_v61, %v617_v62  ;;  %v623_v8 = vshrl.u32 %v12008_v63, %v617_v62  ;;  %vm7429_vm5 = vcmp.lt.s32.totalorder %v7428_v5, 0  ;;  %v619_v12 = vshll.u32 %v12017_v59, %v616_v52 }
  0xfd   :  { %v622_v14 = vshll.u32 %v12010_v61, %v616_v52  ;;  %v626_v28 = vshrl.u32 %v12012_v1, %v617_v62  ;;  %v628_v58 = vshll.u32 %v12012_v1, %v616_v52  ;;  %v629_v13 = vshrl.u32 %v12021_v3, %v617_v62 }
  0xfe   :  { %v8504_v15 = vadd.s32 %v765_v2, %v761_v11  ;;  %v615_v16 = vshrl.u32 %v614_v50, 5  ;;  %v621_v17 = vor.u32 %v620_v42, %v619_v12  ;;  %v632_v19 = vshrl.u32 %v12019_v10, %v617_v62 }
  0xff   :  { %v624_v21 = vor.u32 %v623_v8, %v622_v14  ;;  %v625_v24 = vshll.u32 %v12008_v63, %v616_v52  ;;  %v630_v23 = vor.u32 %v629_v13, %v628_v58  ;;  %v631_v25 = vshll.u32 %v12021_v3, %v616_v52 }
 0x100   :  { %v610_v26 = vor.u32 8388608, %v609_v7  ;;  %v3723_v27 = vlaneseq  ;;  %v8510_v29 = vsel %vm7429_vm5, 0, %v7428_v5  ;;  %v578_v44 = vand.u32 2147483647, %v577_v9 }
 0x101   :  { %v627_v31 = vor.u32 %v626_v28, %v625_v24  ;;  %v633_v32 = vor.u32 %v632_v19, %v631_v25  ;;  %v767_v46 = vadd.s32 536870912, %v8504_v15  ;;  %vm634_vm6 = vcmp.lt.s32.totalorder %v615_v16, 1  ;;  %v38_v25 = vld [vmem:[%s12002_s2] sm:$0x1] }
 0x102   :  { %vm637_vm7 = vcmp.lt.s32.totalorder %v615_v16, 4  ;;  %v580_v56 = vcvt.s32.f32 %v573_v0  ;;  %v584_v47 = vsub.s32 4, %v8427_v20  ;;  %v642_v49 = vsel %vm634_vm6, %v621_v17, %v624_v21 }
 0x103   :  { %v643_v50 = vsel %vm637_vm7, %v630_v23, 920167782  ;;  %v470_v51 = vsub.s32 4294967266, %v8510_v29  ;;  %vm636_vm8 = vcmp.lt.s32.totalorder %v615_v16, 3  ;;  %v650_v52 = vshll.u32 %v610_v26, 8 }
 0x104   :  { %v917_v53 = vand.u32 2139095040, %v8512_v37  ;;  %vm635_vm9 = vcmp.lt.s32.totalorder %v615_v16, 2  ;;  %v644_v54 = vsel %vm636_vm8, %v627_v31, %v643_v50  ;;  %v646_v55 = vsel %vm634_vm6, %v624_v21, %v627_v31 }
 0x105   :  { %v647_v57 = vsel %vm637_vm7, %v633_v32, 1326507024  ;;  %v581_v4 = vmul.f32 %v580_v56, %v578_v44  ;;  %v8521_v5 = vshrl.u32 %v767_v46, 30  ;;  %v639_v30 = vsel %vm637_vm7, %v627_v31, 2102212464 }
 0x106   :  { %v645_v40 = vsel %vm635_vm9, %v642_v49, %v644_v54  ;;  %v618_v42 = vshrl.u32 %v12017_v59, %v617_v62  ;;  %v648_v0 = vsel %vm636_vm8, %v630_v23, %v647_v57  ;;  %v466_v8 = vsub.s32 32, %v8510_v29 }
 0x107   :  { %v8526_v2 = vmul.u32.u64.low %v650_v52, %v645_v40  ;;  %v8527_v7 = vmul.u32.u64.high %v650_v52, %v645_v40, %v8526_v2  ;;  %v471_v9 = vadd.s32 127, %v470_v51  ;;  %v649_v11 = vsel %vm635_vm9, %v646_v55, %v648_v0 }
 0x108   :  { %v918_v12 = vshrl.u32 %v917_v53, 23  ;;  %v638_v14 = vsel %vm634_vm6, %v618_v42, %v621_v17  ;;  %v640_v28 = vsel %vm636_vm8, %v624_v21, %v639_v30  ;;  %v582_v62 = vxor.u32 2147483648, %v581_v4 }
 0x109   :  { %v8534_v58 = vmul.u32.u64.low %v650_v52, %v649_v11  ;;  %v8535_v13 = vmul.u32.u64.high %v650_v52, %v649_v11, %v8534_v58  ;;  %v3724_v19 = vshrl.u32 %v3723_v27, 7  ;;  %v769_v24 = vshll.u32 %v8521_v5, 30 }
 0x10a   :  { %v7446_v23 = vadd.s32 4294967169, %v918_v12  ;;  %vm500_vm10 = vcmp.lt.s32.totalorder %v8355_v33, 0  ;;  %v450_v26 = vadd.s32 %v8423_v18, %v8431_v22  ;;  %v472_v17 = vshll.u32 %v471_v9, 23 }
 0x10b   :  { %v641_v21 = vsel %vm635_vm9, %v638_v14, %v640_v28  ;;  %v660_v31 = vadd.s32 1, %v8527_v7  ;;  %v585_v27 = vsel %vm500_vm10, %v584_v47, %v8427_v20  ;;  %v39_v46 = vsub.f32 1.0, %v38_v25 }
 0x10c   :  { %v924_v32 = vadd.s32 1, %v7446_v23  ;;  %v468_v44 = vshrl.u32 %v450_v26, %v466_v8  ;;  %v583_v56 = vsel %vm500_vm10, %v582_v62, %v581_v4  ;;  %v3725_v49 = vsub.s32 0, %v3724_v19 }
 0x10d   :  { %v8548_v50 = vsub.s32 %v8504_v15, %v769_v24  ;;  %vm499_vm11 = vcmp.le.f32.partialorder %v498_v34, 0.7853982  ;;  %v467_v18 = vshll.u32 %v8463_v6, %v8510_v29  ;;  %v657_v22 = vmul.u32 %v650_v52, %v641_v21 }
 0x10e   :  { %vm659_vm12 = vc.u32 %v8535_v13, %v8526_v2  ;;  %v587_v16 = vsel %vm499_vm11, 0, %v585_v27  ;;  %v473_v51 = vor.u32 4788187, %v472_v17  ;;  %vm925_vm13 = vcmp.gt.s32.totalorder %v924_v32, 0 }
 0x10f   :  { %v661_v20 = vsel %vm659_vm12, %v660_v31, %v8527_v7  ;;  %v586_v47 = vsel %vm499_vm11, %v8355_v33, %v583_v56  ;;  %v469_v53 = vor.u32 %v468_v44, %v467_v18  ;;  %v926_v54 = vsel %vm925_vm13, %v924_v32, 0  ;;  %v8593_v32 = vpop.f32.mrf.mxu0 }
 0x110   :  { %v8558_v15 = vadd.s32 %v661_v20, %v657_v22  ;;  %v8560_v55 = vrot.slane %v39_v46, %v3725_v49  ;;  %v8562_v34 = vrot.slane %v38_v25, %v3725_v49  ;;  %v772_v6 = vsub.s32 0, %v8548_v50  ;;  %12173 = vst [vmem:[#allocation7_spill] sm:$0xff] %v8593_v32 }
 0x111   :  { %v928_v29 = vand.u32 31, %v926_v54  ;;  %v591_v52 = vadd.s32 3, %v587_v16  ;;  %vm8567_vm14 = vcmp.le.f32.partialorder %v394_v39, 0.7853982  ;;  %vm396_vm15 = vcmp.lt.s32.totalorder %v8359_v36, 0 }
 0x112   :  { %12169 = vst [vmem:[#allocation5_spill] sm:$0xff] %v8560_v55  ;;  %12170 = vst [vmem:[#allocation6_spill] sm:$0xff] %v8562_v34  ;;  %v12007_v4 = vand.u32 2147483647, %v8512_v37  ;;  %8060 = vcosq.f32 %v586_v47  ;;  %v474_v30 = vand.u32 2147483647, %v473_v51  ;;  %v476_v7 = vcvt.s32.f32 %v469_v53 }
 0x113   :  { %v480_v40 = vsub.s32 4, %v8450_v48  ;;  %v929_v42 = vsub.s32 32, %v928_v29  ;;  %8062 = vsinq.f32 %v586_v47  ;;  %v8574_v0 = vand.u32 3, %v587_v16 }
 0x114   :  { %v663_v8 = vadd.s32 536870912, %v8558_v15  ;;  %v7439_v39 = vmin.u32 %v772_v6, %v8548_v50  ;;  %v921_v14 = vand.u32 8388607, %v12007_v4  ;;  %v931_v28 = vshll.u32 %v12017_v59, %v928_v29 }
 0x115   :  { %v932_v9 = vshrl.u32 %v12010_v61, %v929_v42  ;;  %v935_v11 = vshrl.u32 %v12008_v63, %v929_v42  ;;  %v938_v12 = vshrl.u32 %v12012_v1, %v929_v42  ;;  %v934_v58 = vshll.u32 %v12010_v61, %v928_v29 }
 0x116   :  { %v941_v62 = vshrl.u32 %v12021_v3, %v929_v42  ;;  %v477_v19 = vmul.f32 %v476_v7, %v474_v30  ;;  %v481_v24 = vsel %vm396_vm15, %v480_v40, %v8450_v48  ;;  %v937_v23 = vshll.u32 %v12008_v63, %v928_v29 }
 0x117   :  { %v940_v25 = vshll.u32 %v12012_v1, %v928_v29  ;;  %v8591_v26 = vshrl.u32 %v663_v8, 30  ;;  %v927_v17 = vshrl.u32 %v926_v54, 5  ;;  %v933_v21 = vor.u32 %v932_v9, %v931_v28 }
 0x118   :  { %v936_v31 = vor.u32 %v935_v11, %v934_v58  ;;  %vm708_vm0 = vcmp.lt.s32.totalorder %v8365_v41, 0  ;;  %v939_v27 = vor.u32 %v938_v12, %v937_v23  ;;  %v943_v46 = vshll.u32 %v12021_v3, %v928_v29 }
 0x119   :  { %v942_v44 = vor.u32 %v941_v62, %v940_v25  ;;  %v944_v56 = vshrl.u32 %v12019_v10, %v929_v42  ;;  %v8598_v48 = vand.u32 3, %v591_v52  ;;  %v483_v49 = vsel %vm8567_vm14, 0, %v481_v24 }
 0x11a   :  { %v774_v18 = vclz %v7439_v39  ;;  %v922_v22 = vor.u32 8388608, %v921_v14  ;;  %v478_v16 = vxor.u32 2147483648, %v477_v19  ;;  %v792_v51 = vsub.s32 4, %v8521_v5 }
 0x11b   :  { %v945_v20 = vor.u32 %v944_v56, %v943_v46  ;;  %v813_v47 = vand.u32 2139095040, %v8593_v32  ;;  %v665_v53 = vshll.u32 %v8591_v26, 30  ;;  %v930_v54 = vshrl.u32 %v12017_v59, %v929_v42 }
 0x11c   :  { %vm946_vm1 = vcmp.lt.s32.totalorder %v927_v17, 1  ;;  %vm949_vm2 = vcmp.lt.s32.totalorder %v927_v17, 4  ;;  %vm8608_vm3 = vcmp.le.f32.partialorder %v706_v35, 0.7853982  ;;  %vm948_vm4 = vcmp.lt.s32.totalorder %v927_v17, 3 }
 0x11d   :  { %v951_v29 = vsel %vm949_vm2, %v939_v27, 2102212464  ;;  %v954_v52 = vsel %vm946_vm1, %v933_v21, %v936_v31  ;;  %v955_v30 = vsel %vm949_vm2, %v942_v44, 920167782  ;;  %v7440_v40 = vadd.s32 4294967294, %v774_v18 }
 0x11e   :  { %vm947_vm5 = vcmp.lt.s32.totalorder %v927_v17, 2  ;;  %v956_v7 = vsel %vm948_vm4, %v939_v27, %v955_v30  ;;  %v962_v8 = vshll.u32 %v922_v22, 8  ;;  %vm594_vm6 = vcmp.eq.s32.totalorder %v8598_v48, 0  ;;  %v8654_v30 = vpop.f32.mrf.mxu0 }
 0x11f   :  { %v950_v39 = vsel %vm946_vm1, %v930_v54, %v933_v21  ;;  %v957_v42 = vsel %vm947_vm5, %v954_v52, %v956_v7  ;;  %v958_v9 = vsel %vm946_vm1, %v936_v31, %v939_v27  ;;  %v959_v11 = vsel %vm949_vm2, %v945_v20, 1326507024  ;;  %v8061_v12 = vpop.eup %8060  ;;  %12177 = vst [vmem:[#allocation9_spill] sm:$0xff] %v8654_v30 }
 0x120   :  { %v952_v35 = vsel %vm948_vm4, %v936_v31, %v951_v29  ;;  %v960_v14 = vsel %vm948_vm4, %v942_v44, %v959_v11  ;;  %v8614_v28 = vmul.u32.u64.low %v962_v8, %v957_v42  ;;  %v8615_v58 = vmul.u32.u64.high %v962_v8, %v957_v42, %v8614_v28  ;;  %v8063_v62 = vpop.eup %8062 }
 0x121   :  { %v487_v24 = vadd.s32 3, %v483_v49  ;;  %v8619_v23 = vsub.s32 %v8558_v15, %v665_v53  ;;  %v961_v25 = vsel %vm947_vm5, %v958_v9, %v960_v14  ;;  %v814_v46 = vshrl.u32 %v813_v47, 23 }
 0x122   :  { %vm593_vm7 = vcmp.lt.s32.totalorder %v8598_v48, 2  ;;  %vm3958_vm8 = vcmp.eq.s32.totalorder %v8574_v0, 0  ;;  %vm3961_vm9 = vcmp.eq.s32.totalorder %v8574_v0, 2  ;;  %vm7441_vm10 = vcmp.lt.s32.totalorder %v7440_v40, 0 }
 0x123   :  { %v793_v21 = vsel %vm708_vm0, %v792_v51, %v8521_v5  ;;  %v8628_v31 = vmul.u32.u64.low %v962_v8, %v961_v25  ;;  %v8629_v27 = vmul.u32.u64.high %v962_v8, %v961_v25, %v8628_v31  ;;  %v598_v44 = vxor.u32 2147483648, %v8061_v12 }
 0x124   :  { %v479_v15 = vsel %vm396_vm15, %v478_v16, %v477_v19  ;;  %v953_v56 = vsel %vm947_vm5, %v950_v39, %v952_v35  ;;  %v7442_v18 = vadd.s32 4294967169, %v814_v46  ;;  %v595_v22 = vxor.u32 2147483648, %v8063_v62 }
 0x125   :  { %vm597_vm11 = vcmp.eq.s32.totalorder %v8598_v48, 2  ;;  %v8635_v20 = vand.u32 3, %v483_v49  ;;  %v972_v47 = vadd.s32 1, %v8615_v58  ;;  %v8638_v53 = vand.u32 3, %v487_v24 }
 0x126   :  { %v8640_v5 = vsel %vm7441_vm10, 0, %v7440_v40  ;;  %v668_v51 = vsub.s32 0, %v8619_v23  ;;  %v820_v54 = vadd.s32 1, %v7442_v18  ;;  %v8646_v19 = vsel %vm8567_vm14, %v8359_v36, %v479_v15 }
 0x127   :  { %12176 = vst [vmem:[#allocation8_spill] sm:$0xff] %v8635_v20  ;;  %v795_v17 = vsel %vm8608_vm3, 0, %v793_v21  ;;  %v969_v16 = vmul.u32 %v962_v8, %v953_v56  ;;  %vm971_vm12 = vc.u32 %v8629_v27, %v8614_v28  ;;  %v599_v49 = vsel %vm597_vm11, %v598_v44, %v8063_v62 }
 0x128   :  { %v973_v29 = vsel %vm971_vm12, %v972_v47, %v8615_v58  ;;  %v12006_v52 = vand.u32 2147483647, %v8593_v32  ;;  %vm821_vm13 = vcmp.gt.s32.totalorder %v820_v54, 0  ;;  %v596_v57 = vsel %vm594_vm6, %v8061_v12, %v595_v22 }
 0x129   :  { %v782_v40 = vsub.s32 4294967266, %v8640_v5  ;;  %v974_v7 = vadd.s32 %v973_v29, %v969_v16  ;;  %v822_v39 = vsel %vm821_vm13, %v820_v54, 0  ;;  %vm3957_vm14 = vcmp.lt.s32.totalorder %v8574_v0, 2 }
 0x12a   :  { %v762_v8 = vadd.s32 %v8479_v45, %v8477_v43  ;;  %v8662_v42 = vadd.s32 3, %v795_v17  ;;  %v7435_v9 = vmin.u32 %v668_v51, %v8619_v23  ;;  %v824_v11 = vand.u32 31, %v822_v39 }
 0x12b   :  { %8064 = vcosq.f32 %v8646_v19  ;;  %v8666_v35 = vand.u32 3, %v795_v17  ;;  %v975_v14 = vadd.s32 536870912, %v974_v7  ;;  %v1125_v58 = vand.u32 2139095040, %v8654_v30 }
 0x12c   :  { %v8671_v24 = vsel %vm593_vm7, %v596_v57, %v599_v49  ;;  %v3960_v25 = vsel %vm3958_vm8, %v8061_v12, %v595_v22  ;;  %v3963_v43 = vsel %vm3961_vm9, %v598_v44, %v8063_v62  ;;  %v825_v45 = vsub.s32 32, %v824_v11 }
 0x12d   :  { %12178 = vst [vmem:[#allocation10_spill] sm:$0xff] %v8666_v35  ;;  %v778_v46 = vsub.s32 32, %v8640_v5  ;;  %v783_v21 = vadd.s32 127, %v782_v40  ;;  %v8678_v31 = vshrl.u32 %v975_v14, 30  ;;  %v817_v15 = vand.u32 8388607, %v12006_v52 }
 0x12e   :  { %v670_v56 = vclz %v7435_v9  ;;  %v828_v48 = vshrl.u32 %v12010_v61, %v825_v45  ;;  %v831_v18 = vshrl.u32 %v12008_v63, %v825_v45  ;;  %v834_v47 = vshrl.u32 %v12012_v1, %v825_v45 }
 0x12f   :  { %v977_v12 = vshll.u32 %v8678_v31, 30  ;;  %v827_v62 = vshll.u32 %v12017_v59, %v824_v11  ;;  %v837_v44 = vshrl.u32 %v12021_v3, %v825_v45  ;;  %v1126_v22 = vshrl.u32 %v1125_v58, 23 }
 0x130   :  { %v830_v51 = vshll.u32 %v12010_v61, %v824_v11  ;;  %v833_v54 = vshll.u32 %v12008_v63, %v824_v11  ;;  %v836_v17 = vshll.u32 %v12012_v1, %v824_v11  ;;  %v840_v16 = vshrl.u32 %v12019_v10, %v825_v45 }
 0x131   :  { %v8692_v49 = vsub.s32 %v974_v7, %v977_v12  ;;  %v818_v29 = vor.u32 8388608, %v817_v15  ;;  %v823_v57 = vshrl.u32 %v822_v39, 5  ;;  %v839_v40 = vshll.u32 %v12021_v3, %v824_v11 }
 0x132   :  { %v829_v9 = vor.u32 %v828_v48, %v827_v62  ;;  %v832_v14 = vor.u32 %v831_v18, %v830_v51  ;;  %v835_v52 = vor.u32 %v834_v47, %v833_v54  ;;  %v838_v4 = vor.u32 %v837_v44, %v836_v17 }
 0x133   :  { %v3964_v58 = vsel %vm3957_vm14, %v3960_v25, %v3963_v43  ;;  %v779_v63 = vshll.u32 %v8548_v50, %v8640_v5  ;;  %v780_v61 = vshrl.u32 %v762_v8, %v778_v46  ;;  %v784_v1 = vshll.u32 %v783_v21, 23 }
 0x134   :  { %v7436_v60 = vadd.s32 4294967294, %v670_v56  ;;  %v980_v7 = vsub.s32 0, %v8692_v49  ;;  %v841_v12 = vor.u32 %v840_v16, %v839_v40  ;;  %v7454_v15 = vadd.s32 4294967169, %v1126_v22 }
 0x135   :  { %vm590_vm15 = vweird.f32 %v8355_v33  ;;  %v826_v39 = vshrl.u32 %v12017_v59, %v825_v45  ;;  %vm842_vm1 = vcmp.lt.s32.totalorder %v823_v57, 1  ;;  %vm845_vm2 = vcmp.lt.s32.totalorder %v823_v57, 4 }
 0x136   :  { %v858_v11 = vshll.u32 %v818_v29, 8  ;;  %vm844_vm4 = vcmp.lt.s32.totalorder %v823_v57, 3  ;;  %v847_v0 = vsel %vm845_vm2, %v835_v52, 2102212464  ;;  %v850_v25 = vsel %vm842_vm1, %v829_v9, %v832_v14 }
 0x137   :  { %v851_v43 = vsel %vm845_vm2, %v838_v4, 920167782  ;;  %vm843_vm5 = vcmp.lt.s32.totalorder %v823_v57, 2  ;;  %v846_v50 = vsel %vm842_vm1, %v826_v39, %v829_v9  ;;  %v854_v8 = vsel %vm842_vm1, %v832_v14, %v835_v52 }
 0x138   :  { %v852_v5 = vsel %vm844_vm4, %v835_v52, %v851_v43  ;;  %v8702_v46 = vpop.eup %8064  ;;  %v7447_v21 = vmin.u32 %v980_v7, %v8692_v49  ;;  %v855_v48 = vsel %vm845_vm2, %v841_v12, 1326507024  ;;  %v1132_v18 = vadd.s32 1, %v7454_v15 }
 0x139   :  { %v853_v56 = vsel %vm843_vm5, %v850_v25, %v852_v5  ;;  %v848_v45 = vsel %vm844_vm4, %v832_v14, %v847_v0  ;;  %v856_v47 = vsel %vm844_vm4, %v838_v4, %v855_v48  ;;  %v781_v22 = vor.u32 %v780_v61, %v779_v63 }
 0x13a   :  { %v8706_v62 = vmul.u32.u64.low %v858_v11, %v853_v56  ;;  %v8707_v44 = vmul.u32.u64.high %v858_v11, %v853_v56, %v8706_v62  ;;  %vm7437_vm6 = vcmp.lt.s32.totalorder %v7436_v60, 0  ;;  %v857_v51 = vsel %vm843_vm5, %v854_v8, %v856_v47 }
 0x13b   :  { %vm1133_vm7 = vcmp.gt.s32.totalorder %v1132_v18, 0  ;;  %v785_v52 = vor.u32 4788187, %v784_v1  ;;  %v8711_v54 = vmul.u32.u64.low %v858_v11, %v857_v51  ;;  %v8712_v17 = vmul.u32.u64.high %v858_v11, %v857_v51, %v8711_v54 }
 0x13c   :  { %v1134_v16 = vsel %vm1133_vm7, %v1132_v18, 0  ;;  %v8715_v29 = vand.u32 3, %v8662_v42  ;;  %v982_v40 = vclz %v7447_v21  ;;  %v849_v4 = vsel %vm843_vm5, %v846_v50, %v848_v45 }
 0x13d   :  { %v1136_v9 = vand.u32 31, %v1134_v16  ;;  %8066 = vsinq.f32 %v8646_v19  ;;  %vm604_vm8 = vcmp.lt.s32.totalorder %v8444_v38, 0  ;;  %v8722_v61 = vadd.s32 %v8526_v2, %v8535_v13 }
 0x13e   :  { %12179 = vst [vmem:[#allocation11_spill] sm:$0xff] %v8715_v29  ;;  %v8724_v63 = vsel %vm7437_vm6, 0, %v7436_v60  ;;  %v868_v1 = vadd.s32 1, %v8707_v44  ;;  %v8730_v42 = vsel %vm590_vm15, nan, %v8671_v24  ;;  %v8734_v57 = vsel %vm590_vm15, nan, %v3964_v58 }
 0x13f   :  { %v12015_v19 = vand.u32 2147483647, %v8654_v30  ;;  %v1137_v14 = vsub.s32 32, %v1136_v9  ;;  %v786_v7 = vand.u32 2147483647, %v785_v52  ;;  %v788_v12 = vcvt.s32.f32 %v781_v22 }
 0x140   :  { %v865_v2 = vmul.u32 %v858_v11, %v849_v4  ;;  %vm867_vm9 = vc.u32 %v8712_v17, %v8706_v62  ;;  %v678_v60 = vsub.s32 4294967266, %v8724_v63  ;;  %v688_v13 = vsub.s32 4, %v8591_v26 }
 0x141   :  { %v7448_v15 = vadd.s32 4294967294, %v982_v40  ;;  %v869_v24 = vsel %vm867_vm9, %v868_v1, %v8707_v44  ;;  %v12180_v33 = vand.u32 2147483647, %v8444_v38  ;;  %v12183_v0 = vmov 2475754826   ;;  %v8764_v1 = vpop.f32.mrf.mxu0 }
 0x142   :  { %v870_v39 = vadd.s32 %v869_v24, %v865_v2  ;;  %v1140_v25 = vshrl.u32 %v12183_v0, %v1137_v14  ;;  %v12184_v11 = vmov 2131351028   ;;  %v12185_v50 = vmov 2102212464   ;;  %12186 = vst [vmem:[#allocation12_spill] sm:$0xff] %v8764_v1 }
 0x143   :  { %vm8744_vm10 = vcmp.le.f32.partialorder %v12180_v33, 0.7853982  ;;  %v1143_v43 = vshrl.u32 %v12184_v11, %v1137_v14  ;;  %v1146_v5 = vshrl.u32 %v12185_v50, %v1137_v14  ;;  %v1129_v8 = vand.u32 8388607, %v12015_v19 }
 0x144   :  { %v8753_v21 = vshrl.u32 %v1134_v16, 5  ;;  %v1148_v56 = vshll.u32 %v12185_v50, %v1136_v9  ;;  %v1149_v48 = vshrl.u32 %v12021_v3, %v1137_v14  ;;  %v871_v18 = vadd.s32 536870912, %v870_v39 }
 0x145   :  { %v1139_v45 = vshll.u32 %v12017_v59, %v1136_v9  ;;  %v1142_v47 = vshll.u32 %v12183_v0, %v1136_v9  ;;  %v1145_v44 = vshll.u32 %v12184_v11, %v1136_v9  ;;  %vm7449_vm11 = vcmp.lt.s32.totalorder %v7448_v15, 0 }
 0x146   :  { %v1150_v22 = vor.u32 %v1149_v48, %v1148_v56  ;;  %v1151_v51 = vshll.u32 %v12021_v3, %v1136_v9  ;;  %v1152_v52 = vshrl.u32 %v12019_v10, %v1137_v14  ;;  %v8762_v54 = vshrl.u32 %v871_v18, 30 }
 0x147   :  { %v1141_v16 = vor.u32 %v1140_v25, %v1139_v45  ;;  %v1144_v40 = vor.u32 %v1143_v43, %v1142_v47  ;;  %v1147_v4 = vor.u32 %v1146_v5, %v1145_v44  ;;  %v789_v2 = vmul.f32 %v788_v12, %v786_v7 }
 0x148   :  { %v679_v24 = vadd.s32 127, %v678_v60  ;;  %v689_v33 = vsel %vm604_vm8, %v688_v13, %v8591_v26  ;;  %v1153_v19 = vor.u32 %v1152_v52, %v1151_v51  ;;  %v674_v56 = vsub.s32 32, %v8724_v63 }
 0x149   :  { %v8770_v48 = vsel %vm7449_vm11, 0, %v7448_v15  ;;  %v1130_v9 = vor.u32 8388608, %v1129_v8  ;;  %vm1157_vm12 = vcmp.lt.s32.totalorder %v8753_v21, 4  ;;  %vm1154_vm13 = vcmp.lt.s32.totalorder %v8753_v21, 1 }
 0x14a   :  { %v1163_v25 = vsel %vm1157_vm12, %v1150_v22, 920167782  ;;  %v1167_v7 = vsel %vm1157_vm12, %v1153_v19, 1326507024  ;;  %v1021_v12 = vand.u32 2139095040, %v8764_v1  ;;  %v873_v26 = vshll.u32 %v8762_v54, 30  ;;  %v8785_v15 = vpop.eup %8066 }
 0x14b   :  { %vm1156_vm14 = vcmp.lt.s32.totalorder %v8753_v21, 3  ;;  %v1162_v60 = vsel %vm1154_vm13, %v1141_v16, %v1144_v40  ;;  %v1166_v13 = vsel %vm1154_vm13, %v1144_v40, %v1147_v4  ;;  %v680_v43 = vshll.u32 %v679_v24, 23 }
 0x14c   :  { %v691_v5 = vsel %vm8744_vm10, 0, %v689_v33  ;;  %v1164_v19 = vsel %vm1156_vm14, %v1147_v4, %v1163_v25  ;;  %v1168_v8 = vsel %vm1156_vm14, %v1150_v22, %v1167_v7  ;;  %v1138_v18 = vshrl.u32 %v12017_v59, %v1137_v14 }
 0x14d   :  { %vm1155_vm15 = vcmp.lt.s32.totalorder %v8753_v21, 2  ;;  %v1159_v45 = vsel %vm1157_vm12, %v1147_v4, 2102212464  ;;  %v1170_v47 = vshll.u32 %v1130_v9, 8  ;;  %v990_v44 = vsub.s32 4294967266, %v8770_v48 }
 0x14e   :  { %v1165_v51 = vsel %vm1155_vm15, %v1162_v60, %v1164_v19  ;;  %v1169_v52 = vsel %vm1155_vm15, %v1166_v13, %v1168_v8  ;;  %v1022_v24 = vshrl.u32 %v1021_v12, 23  ;;  %v675_v22 = vshll.u32 %v8619_v23, %v8724_v63 }
 0x14f   :  { %v676_v14 = vshrl.u32 %v8722_v61, %v674_v56  ;;  %v8805_v33 = vsub.s32 %v870_v39, %v873_v26  ;;  %v1158_v4 = vsel %vm1154_vm13, %v1138_v18, %v1141_v16  ;;  %v1160_v9 = vsel %vm1156_vm14, %v1144_v40, %v1159_v45 }
 0x150   :  { %v8811_v25 = vmul.u32.u64.low %v1170_v47, %v1169_v52  ;;  %v8812_v7 = vmul.u32.u64.high %v1170_v47, %v1169_v52, %v8811_v25  ;;  %v7450_v60 = vadd.s32 4294967169, %v1022_v24  ;;  %v681_v19 = vor.u32 4788187, %v680_v43 }
 0x151   :  { %v986_v12 = vsub.s32 32, %v8770_v48  ;;  %v8815_v13 = vmul.u32.u64.low %v1170_v47, %v1165_v51  ;;  %v8816_v8 = vmul.u32.u64.high %v1170_v47, %v1165_v51, %v8815_v13  ;;  %v8821_v23 = vmul.f32 %v8560_v55, %v8730_v42 }
 0x152   :  { %v790_v61 = vxor.u32 2147483648, %v789_v2  ;;  %v991_v63 = vadd.s32 127, %v990_v44  ;;  %v1028_v39 = vadd.s32 1, %v7450_v60  ;;  %v677_v16 = vor.u32 %v676_v14, %v675_v22 }
 0x153   :  { %12187 = vst [vmem:[#allocation13_spill] sm:$0xff] %v8821_v23  ;;  %v970_v40 = vadd.s32 %v8614_v28, %v8629_v27  ;;  %v876_v56 = vsub.s32 0, %v8805_v33  ;;  %v1161_v26 = vsel %vm1155_vm15, %v1158_v4, %v1160_v9  ;;  %v8830_v43 = vmul.f32 %v8562_v34, %v8734_v57 }
 0x154   :  { %v695_v18 = vadd.s32 3, %v691_v5  ;;  %vm1179_vm1 = vc.u32 %v8812_v7, %v8815_v13  ;;  %vm1029_vm2 = vcmp.gt.s32.totalorder %v1028_v39, 0  ;;  %v682_v42 = vand.u32 2147483647, %v681_v19 }
 0x155   :  { %12188 = vst [vmem:[#allocation14_spill] sm:$0xff] %v8830_v43  ;;  %v988_v45 = vshrl.u32 %v970_v40, %v986_v12  ;;  %v1180_v44 = vadd.s32 1, %v8816_v8  ;;  %v1030_v51 = vsel %vm1029_vm2, %v1028_v39, 0  ;;  %v791_v28 = vsel %vm708_vm0, %v790_v61, %v789_v2 }
 0x156   :  { %v992_v27 = vshll.u32 %v991_v63, 23  ;;  %v1177_v21 = vmul.u32 %v1170_v47, %v1161_v26  ;;  %v1032_v52 = vand.u32 31, %v1030_v51  ;;  %v684_v24 = vcvt.s32.f32 %v677_v16 }
 0x157   :  { %vm916_vm4 = vcmp.lt.s32.totalorder %v8512_v37, 0  ;;  %v987_v57 = vshll.u32 %v8692_v49, %v8770_v48  ;;  %v7443_v22 = vmin.u32 %v876_v56, %v8805_v33  ;;  %v1181_v14 = vsel %vm1179_vm1, %v1180_v44, %v8816_v8  ;;  %v8853_v48 = vpop.f32.mrf.mxu0 }
 0x158   :  { %v8842_v4 = vand.u32 3, %v691_v5  ;;  %v1182_v9 = vadd.s32 %v1181_v14, %v1177_v21  ;;  %v12016_v25 = vand.u32 2147483647, %v8764_v1  ;;  %v1033_v60 = vsub.s32 32, %v1032_v52  ;;  %12190 = vst [vmem:[#allocation16_spill] sm:$0xff] %v8853_v48 }
 0x159   :  { %v8848_v2 = vsel %vm8608_vm3, %v8365_v41, %v791_v28  ;;  %v8850_v47 = vmul.f32 %v684_v24, %v682_v42  ;;  %v989_v19 = vor.u32 %v988_v45, %v987_v57  ;;  %v1000_v49 = vsub.s32 4, %v8678_v31 }
 0x15a   :  { %12189 = vst [vmem:[#allocation15_spill] sm:$0xff] %v8842_v4  ;;  %v993_v12 = vor.u32 4788187, %v992_v27  ;;  %v1183_v8 = vadd.s32 536870912, %v1182_v9  ;;  %v1036_v5 = vshrl.u32 %v12183_v0, %v1033_v60  ;;  %v1039_v61 = vshrl.u32 %v12184_v11, %v1033_v60 }
 0x15b   :  { %v878_v63 = vclz %v7443_v22  ;;  %v1035_v39 = vshll.u32 %v12017_v59, %v1032_v52  ;;  %v1042_v6 = vshrl.u32 %v12185_v50, %v1033_v60  ;;  %v1045_v16 = vshrl.u32 %v12021_v3, %v1033_v60 }
 0x15c   :  { %v8860_v40 = vshrl.u32 %v1183_v8, 30  ;;  %v1025_v56 = vand.u32 8388607, %v12016_v25  ;;  %v1038_v26 = vshll.u32 %v12183_v0, %v1032_v52  ;;  %v1333_v42 = vand.u32 2139095040, %v8853_v48 }
 0x15d   :  { %v1031_v45 = vshrl.u32 %v1030_v51, 5  ;;  %v1037_v44 = vor.u32 %v1036_v5, %v1035_v39  ;;  %v1041_v28 = vshll.u32 %v12184_v11, %v1032_v52  ;;  %v1044_v27 = vshll.u32 %v12185_v50, %v1032_v52 }
 0x15e   :  { %v1185_v21 = vshll.u32 %v8860_v40, 30  ;;  %v1040_v24 = vor.u32 %v1039_v61, %v1038_v26  ;;  %v1047_v57 = vshll.u32 %v12021_v3, %v1032_v52  ;;  %v1048_v22 = vshrl.u32 %v12019_v10, %v1033_v60 }
 0x15f   :  { %v8871_v14 = vand.u32 3, %v695_v18  ;;  %v12192_v8 = vand.u32 2147483647, %v8512_v37  ;;  %v7444_v51 = vadd.s32 4294967294, %v878_v63  ;;  %v1043_v5 = vor.u32 %v1042_v6, %v1041_v28 }
 0x160   :  { %v1046_v39 = vor.u32 %v1045_v16, %v1044_v27  ;;  %8068 = vcosq.f32 %v8848_v2  ;;  %v686_v59 = vxor.u32 2147483648, %v8850_v47  ;;  %v1001_v52 = vsel %vm916_vm4, %v1000_v49, %v8678_v31 }
 0x161   :  { %12191 = vst [vmem:[#allocation17_spill] sm:$0xff] %v8871_v14  ;;  %vm8875_vm0 = vcmp.le.f32.partialorder %v12192_v8, 0.7853982  ;;  %v1049_v61 = vor.u32 %v1048_v22, %v1047_v57  ;;  %v994_v18 = vand.u32 2147483647, %v993_v12  ;;  %v996_v26 = vcvt.s32.f32 %v989_v19 }
 0x162   :  { %v1026_v10 = vor.u32 8388608, %v1025_v56  ;;  %vm1050_vm3 = vcmp.lt.s32.totalorder %v1031_v45, 1  ;;  %v8884_v8 = vsub.s32 %v1182_v9, %v1185_v21  ;;  %vm1053_vm5 = vcmp.lt.s32.totalorder %v1031_v45, 4 }
 0x163   :  { %v1058_v63 = vsel %vm1050_vm3, %v1037_v44, %v1040_v24  ;;  %v1334_v6 = vshrl.u32 %v1333_v42, 23  ;;  %vm7445_vm6 = vcmp.lt.s32.totalorder %v7444_v51, 0  ;;  %vm1052_vm7 = vcmp.lt.s32.totalorder %v1031_v45, 3 }
 0x164   :  { %v1059_v16 = vsel %vm1053_vm5, %v1046_v39, 920167782  ;;  %v1062_v28 = vsel %vm1050_vm3, %v1040_v24, %v1043_v5  ;;  %vm812_vm9 = vcmp.lt.s32.totalorder %v8593_v32, 0  ;;  %vm1051_vm11 = vcmp.lt.s32.totalorder %v1031_v45, 2 }
 0x165   :  { %v1055_v31 = vsel %vm1053_vm5, %v1043_v5, 2102212464  ;;  %v1060_v49 = vsel %vm1052_vm7, %v1043_v5, %v1059_v16  ;;  %v1063_v19 = vsel %vm1053_vm5, %v1049_v61, 1326507024  ;;  %v12195_v12 = vmov 683565275  }
 0x166   :  { %v1034_v56 = vshrl.u32 %v12195_v12, %v1033_v60  ;;  %v1061_v9 = vsel %vm1051_vm11, %v1058_v63, %v1060_v49  ;;  %v1064_v27 = vsel %vm1052_vm7, %v1046_v39, %v1063_v19  ;;  %v1066_v21 = vshll.u32 %v1026_v10, 8 }
 0x167   :  { %v8893_v42 = vsel %vm7445_vm6, 0, %v7444_v51  ;;  %v1188_v57 = vsub.s32 0, %v8884_v8  ;;  %v1065_v22 = vsel %vm1051_vm11, %v1062_v28, %v1064_v27  ;;  %v7462_v3 = vadd.s32 4294967169, %v1334_v6 }
 0x168   :  { %v12196_v35 = vand.u32 2147483647, %v8593_v32  ;;  %v1054_v60 = vsel %vm1050_vm3, %v1034_v56, %v1037_v44  ;;  %v1056_v5 = vsel %vm1052_vm7, %v1040_v24, %v1055_v31  ;;  %v997_v10 = vmul.f32 %v996_v26, %v994_v18 }
 0x169   :  { %v8905_v61 = vmul.u32.u64.low %v1066_v21, %v1065_v22  ;;  %v8906_v39 = vmul.u32.u64.high %v1066_v21, %v1065_v22, %v8905_v61  ;;  %v1003_v51 = vsel %vm8875_vm0, 0, %v1001_v52  ;;  %v886_v6 = vsub.s32 4294967266, %v8893_v42 }
 0x16a   :  { %vm8899_vm12 = vcmp.le.f32.partialorder %v12196_v35, 0.7853982  ;;  %v8910_v63 = vmul.u32.u64.low %v1066_v21, %v1061_v9  ;;  %v8911_v16 = vmul.u32.u64.high %v1066_v21, %v1061_v9, %v8910_v63  ;;  %v687_v35 = vsel %vm604_vm8, %v686_v59, %v8850_v47 }
 0x16b   :  { %v896_v44 = vsub.s32 4, %v8762_v54  ;;  %v1340_v24 = vadd.s32 1, %v7462_v3  ;;  %8070 = vsinq.f32 %v8848_v2  ;;  %v7455_v18 = vmin.u32 %v1188_v57, %v8884_v8 }
 0x16c   :  { %v1057_v26 = vsel %vm1051_vm11, %v1054_v60, %v1056_v5  ;;  %v12025_v52 = vand.u32 2147483647, %v8853_v48  ;;  %v1007_v28 = vadd.s32 3, %v1003_v51  ;;  %v8923_v31 = vand.u32 3, %v1003_v51  ;;  %v8944_v60 = vpop.f32.mrf.mxu0 }
 0x16d   :  { %vm1075_vm13 = vc.u32 %v8906_v39, %v8910_v63  ;;  %vm1341_vm8 = vcmp.gt.s32.totalorder %v1340_v24, 0  ;;  %v8930_v59 = vsel %vm8744_vm10, %v8444_v38, %v687_v35  ;;  %v998_v3 = vxor.u32 2147483648, %v997_v10  ;;  %v8934_v45 = vpop.eup %8068  ;;  %12201 = vst [vmem:[#allocation20_spill] sm:$0xff] %v8944_v60 }
 0x16e   :  { %12199 = vst [vmem:[#allocation18_spill] sm:$0xff] %v8923_v31  ;;  %v882_v2 = vsub.s32 32, %v8893_v42  ;;  %v1076_v47 = vadd.s32 1, %v8911_v16  ;;  %12200 = vst [vmem:[#allocation19_spill] sm:$0xff] %v8934_v45  ;;  %v887_v49 = vadd.s32 127, %v886_v6  ;;  %v897_v19 = vsel %vm812_vm9, %v896_v44, %v8762_v54 }
 0x16f   :  { %v1073_v56 = vmul.u32 %v1066_v21, %v1057_v26  ;;  %v1342_v9 = vsel %vm1341_vm8, %v1340_v24, 0  ;;  %v866_v27 = vadd.s32 %v8706_v62, %v8712_v17  ;;  %v1190_v58 = vclz %v7455_v18 }
 0x170   :  { %v1077_v57 = vsel %vm1075_vm13, %v1076_v47, %v8911_v16  ;;  %v1337_v22 = vand.u32 8388607, %v12025_v52  ;;  %8072 = vcosq.f32 %v8930_v59  ;;  %v8947_v5 = vand.u32 3, %v1007_v28 }
 0x171   :  { %v1078_v61 = vadd.s32 %v1077_v57, %v1073_v56  ;;  %v1344_v51 = vand.u32 31, %v1342_v9  ;;  %v8951_v54 = vsel %vm916_vm4, %v998_v3, %v997_v10  ;;  %v883_v62 = vshll.u32 %v8805_v33, %v8893_v42 }
 0x172   :  { %12202 = vst [vmem:[#allocation21_spill] sm:$0xff] %v8947_v5  ;;  %v884_v17 = vshrl.u32 %v866_v27, %v882_v2  ;;  %v8957_v21 = vsel %vm8899_vm12, 0, %v897_v19  ;;  %v888_v16 = vshll.u32 %v887_v49, 23  ;;  %v1229_v44 = vand.u32 2139095040, %v8944_v60 }
 0x173   :  { %v1079_v35 = vadd.s32 536870912, %v1078_v61  ;;  %v1345_v6 = vsub.s32 32, %v1344_v51  ;;  %v7456_v24 = vadd.s32 4294967294, %v1190_v58  ;;  %v1338_v18 = vor.u32 8388608, %v1337_v22 }
 0x174   :  { %v8960_v26 = vshrl.u32 %v1342_v9, 5  ;;  %v1347_v10 = vshll.u32 %v12195_v12, %v1344_v51  ;;  %v1350_v42 = vshll.u32 %v12183_v0, %v1344_v51  ;;  %v1353_v2 = vshll.u32 %v12184_v11, %v1344_v51 }
 0x175   :  { %v8963_v28 = vshrl.u32 %v1079_v35, 30  ;;  %v1348_v33 = vshrl.u32 %v12183_v0, %v1345_v6  ;;  %v1351_v3 = vshrl.u32 %v12184_v11, %v1345_v6  ;;  %v1354_v47 = vshrl.u32 %v12185_v50, %v1345_v6 }
 0x176   :  { %v1356_v49 = vshll.u32 %v12185_v50, %v1344_v51  ;;  %v12203_v19 = vmov 920167782   ;;  %v1230_v57 = vshrl.u32 %v1229_v44, 23  ;;  %v12204_v31 = vmov 1326507024  }
 0x177   :  { %v1357_v56 = vshrl.u32 %v12203_v19, %v1345_v6  ;;  %v1081_v9 = vshll.u32 %v8963_v28, 30  ;;  %v1349_v27 = vor.u32 %v1348_v33, %v1347_v10  ;;  %v1352_v58 = vor.u32 %v1351_v3, %v1350_v42 }
 0x178   :  { %v1355_v22 = vor.u32 %v1354_v47, %v1353_v2  ;;  %v1359_v52 = vshll.u32 %v12203_v19, %v1344_v51  ;;  %v1360_v5 = vshrl.u32 %v12204_v31, %v1345_v6  ;;  %v8975_v45 = vpop.eup %8070  ;;  %v885_v41 = vor.u32 %v884_v17, %v883_v62 }
 0x179   :  { %v1358_v35 = vor.u32 %v1357_v56, %v1356_v49  ;;  %12205 = vst [vmem:[#allocation22_spill] sm:$0xff] %v8975_v45  ;;  %v889_v4 = vor.u32 4788187, %v888_v16  ;;  %v8977_v14 = vsub.s32 %v1078_v61, %v1081_v9  ;;  %v12037_v38 = vand.u32 2147483647, %v8944_v60 }
 0x17a   :  { %v1361_v34 = vor.u32 %v1360_v5, %v1359_v52  ;;  %vm1362_vm10 = vcmp.lt.s32.totalorder %v8960_v26, 1  ;;  %vm1365_vm14 = vcmp.lt.s32.totalorder %v8960_v26, 4  ;;  %v1378_v44 = vshll.u32 %v1338_v18, 8 }
 0x17b   :  { %v1084_v10 = vsub.s32 0, %v8977_v14  ;;  %vm1364_vm15 = vcmp.lt.s32.totalorder %v8960_v26, 3  ;;  %v1370_v51 = vsel %vm1362_vm10, %v1349_v27, %v1352_v58  ;;  %v1371_v62 = vsel %vm1365_vm14, %v1358_v35, 920167782 }
 0x17c   :  { %vm1124_vm1 = vcmp.lt.s32.totalorder %v8654_v30, 0  ;;  %vm7457_vm2 = vcmp.lt.s32.totalorder %v7456_v24, 0  ;;  %vm1363_vm4 = vcmp.lt.s32.totalorder %v8960_v26, 2  ;;  %v1372_v52 = vsel %vm1364_vm15, %v1355_v22, %v1371_v62 }
 0x17d   :  { %v7458_v5 = vadd.s32 4294967169, %v1230_v57  ;;  %v890_v61 = vand.u32 2147483647, %v889_v4  ;;  %v1367_v17 = vsel %vm1365_vm14, %v1355_v22, 2102212464  ;;  %v1373_v16 = vsel %vm1363_vm4, %v1370_v51, %v1372_v52  ;;  %v8998_v33 = vpop.eup %8072 }
 0x17e   :  { %v1374_v18 = vsel %vm1362_vm10, %v1352_v58, %v1355_v22  ;;  %12206 = vst [vmem:[#allocation23_spill] sm:$0xff] %v8998_v33  ;;  %v1346_v42 = vshrl.u32 %v12195_v12, %v1345_v6  ;;  %v1375_v3 = vsel %vm1365_vm14, %v1361_v34, 1326507024  ;;  %v892_v4 = vcvt.s32.f32 %v885_v41 }
 0x17f   :  { %v9003_v2 = vmul.u32.u64.low %v1378_v44, %v1373_v16  ;;  %v9004_v47 = vmul.u32.u64.high %v1378_v44, %v1373_v16, %v9003_v2  ;;  %v9007_v49 = vsel %vm7457_vm2, 0, %v7456_v24  ;;  %v7451_v56 = vmin.u32 %v1084_v10, %v8977_v14 }
 0x180   :  { %v1376_v9 = vsel %vm1364_vm15, %v1358_v35, %v1375_v3  ;;  %v1366_v57 = vsel %vm1362_vm10, %v1346_v42, %v1349_v27  ;;  %v1368_v6 = vsel %vm1364_vm15, %v1352_v58, %v1367_v17  ;;  %v1236_v22 = vadd.s32 1, %v7458_v5 }
 0x181   :  { %v1377_v34 = vsel %vm1363_vm4, %v1374_v18, %v1376_v9  ;;  %v9018_v51 = vmul.f32 %v892_v4, %v890_v61  ;;  %v1208_v41 = vsub.s32 4, %v8860_v40  ;;  %8074 = vsinq.f32 %v8930_v59 }
 0x182   :  { %v9021_v24 = vmul.u32.u64.low %v1378_v44, %v1377_v34  ;;  %v9022_v62 = vmul.u32.u64.high %v1378_v44, %v1377_v34, %v9021_v24  ;;  %v1198_v35 = vsub.s32 4294967266, %v9007_v49  ;;  %v1233_v27 = vand.u32 8388607, %v12037_v38 }
 0x183   :  { %vm1237_vm3 = vcmp.gt.s32.totalorder %v1236_v22, 0  ;;  %v1086_v58 = vclz %v7451_v56  ;;  %v1369_v10 = vsel %vm1363_vm4, %v1366_v57, %v1368_v6  ;;  %v1388_v52 = vadd.s32 1, %v9004_v47 }
 0x184   :  { %v1238_v5 = vsel %vm1237_vm3, %v1236_v22, 0  ;;  %v9035_v61 = vsel %vm8875_vm0, %v8512_v37, %v8951_v54  ;;  %v9038_v59 = vadd.s32 3, %v8957_v21  ;;  %v9041_v17 = vand.u32 3, %v8957_v21  ;;  %v9052_v54 = vpop.f32.mrf.mxu0 }
 0x185   :  { %v1240_v16 = vand.u32 31, %v1238_v5  ;;  %v1178_v26 = vadd.s32 %v8815_v13, %v8812_v7  ;;  %v1194_v42 = vsub.s32 32, %v9007_v49  ;;  %v9050_v25 = vsel %vm1124_vm1, %v1208_v41, %v8860_v40  ;;  %12208 = vst [vmem:[#allocation25_spill] sm:$0xff] %v9052_v54 }
 0x186   :  { %12207 = vst [vmem:[#allocation24_spill] sm:$0xff] %v9041_v17  ;;  %v1195_v3 = vshll.u32 %v8884_v8, %v9007_v49  ;;  %v1385_v21 = vmul.u32 %v1378_v44, %v1369_v10  ;;  %vm1387_vm0 = vc.u32 %v9022_v62, %v9003_v2  ;;  %v1199_v56 = vadd.s32 127, %v1198_v35 }
 0x187   :  { %v1241_v4 = vsub.s32 32, %v1240_v16  ;;  %v7452_v9 = vadd.s32 4294967294, %v1086_v58  ;;  %v1389_v7 = vsel %vm1387_vm0, %v1388_v52, %v9004_v47  ;;  %v1234_v13 = vor.u32 8388608, %v1233_v27 }
 0x188   :  { %v1390_v57 = vadd.s32 %v1389_v7, %v1385_v21  ;;  %v1541_v34 = vand.u32 2139095040, %v9052_v54  ;;  %v1239_v22 = vshrl.u32 %v1238_v5, 5  ;;  %v1243_v8 = vshll.u32 %v12195_v12, %v1240_v16 }
 0x189   :  { %v1244_v6 = vshrl.u32 %v12183_v0, %v1241_v4  ;;  %v1247_v40 = vshrl.u32 %v12184_v11, %v1241_v4  ;;  %v1246_v44 = vshll.u32 %v12183_v0, %v1240_v16  ;;  %v1250_v49 = vshrl.u32 %v12185_v50, %v1241_v4 }
 0x18a   :  { %v1391_v41 = vadd.s32 536870912, %v1390_v57  ;;  %v1249_v24 = vshll.u32 %v12184_v11, %v1240_v16  ;;  %v1252_v47 = vshll.u32 %v12185_v50, %v1240_v16  ;;  %v1253_v35 = vshrl.u32 %v12203_v19, %v1241_v4 }
 0x18b   :  { %v1196_v27 = vshrl.u32 %v1178_v26, %v1194_v42  ;;  %vm7453_vm5 = vcmp.lt.s32.totalorder %v7452_v9, 0  ;;  %v1245_v58 = vor.u32 %v1244_v6, %v1243_v8  ;;  %v1248_v10 = vor.u32 %v1247_v40, %v1246_v44 }
 0x18c   :  { %v9068_v52 = vshrl.u32 %v1391_v41, 30  ;;  %v1251_v5 = vor.u32 %v1250_v49, %v1249_v24  ;;  %v1254_v21 = vor.u32 %v1253_v35, %v1252_v47  ;;  %v1256_v7 = vshrl.u32 %v12204_v31, %v1241_v4 }
 0x18d   :  { %v1200_v38 = vshll.u32 %v1199_v56, 23  ;;  %v1255_v18 = vshll.u32 %v12203_v19, %v1240_v16  ;;  %v9072_v37 = vshll.u32 %v1234_v13, 8  ;;  %v1542_v17 = vshrl.u32 %v1541_v34, 23 }
 0x18e   :  { %v9074_v45 = vsel %vm7453_vm5, 0, %v7452_v9  ;;  %v1393_v33 = vshll.u32 %v9068_v52, 30  ;;  %vm1258_vm6 = vcmp.lt.s32.totalorder %v1239_v22, 1  ;;  %vm1261_vm7 = vcmp.lt.s32.totalorder %v1239_v22, 4  ;;  %v9077_v26 = vpop.eup %8074 }
 0x18f   :  { %12209 = vst [vmem:[#allocation26_spill] sm:$0xff] %v9077_v26  ;;  %v12210_v42 = vand.u32 2147483647, %v8654_v30  ;;  %v1257_v56 = vor.u32 %v1256_v7, %v1255_v18  ;;  %vm1260_vm13 = vcmp.lt.s32.totalorder %v1239_v22, 3  ;;  %v1266_v16 = vsel %vm1258_vm6, %v1245_v58, %v1248_v10 }
 0x190   :  { %v1267_v13 = vsel %vm1261_vm7, %v1254_v21, 920167782  ;;  %v1197_v9 = vor.u32 %v1196_v27, %v1195_v3  ;;  %v9087_v40 = vsub.s32 %v1390_v57, %v1393_v33  ;;  %vm1259_vm8 = vcmp.lt.s32.totalorder %v1239_v22, 2 }
 0x191   :  { %vm9081_vm11 = vcmp.le.f32.partialorder %v12210_v42, 0.7853982  ;;  %v1268_v34 = vsel %vm1260_vm13, %v1251_v5, %v1267_v13  ;;  %v1201_v8 = vor.u32 4788187, %v1200_v38  ;;  %v1263_v44 = vsel %vm1261_vm7, %v1251_v5, 2102212464 }
 0x192   :  { %v1269_v49 = vsel %vm1259_vm8, %v1266_v16, %v1268_v34  ;;  %v7470_v41 = vadd.s32 4294967169, %v1542_v17  ;;  %v1094_v24 = vsub.s32 4294967266, %v9074_v45  ;;  %v1396_v18 = vsub.s32 0, %v9087_v40 }
 0x193   :  { %v1242_v47 = vshrl.u32 %v12195_v12, %v1241_v4  ;;  %v1270_v35 = vsel %vm1258_vm6, %v1248_v10, %v1251_v5  ;;  %v1271_v33 = vsel %vm1261_vm7, %v1257_v56, 1326507024  ;;  %v1264_v7 = vsel %vm1260_vm13, %v1248_v10, %v1263_v44 }
 0x194   :  { %v9098_v3 = vmul.u32.u64.low %v9072_v37, %v1269_v49  ;;  %v9099_v57 = vmul.u32.u64.high %v9072_v37, %v1269_v49, %v9098_v3  ;;  %v7463_v27 = vmin.u32 %v1396_v18, %v9087_v40  ;;  %v1272_v42 = vsel %vm1260_vm13, %v1254_v21, %v1271_v33 }
 0x195   :  { %v1262_v17 = vsel %vm1258_vm6, %v1242_v47, %v1245_v58  ;;  %v1202_v4 = vand.u32 2147483647, %v1201_v8  ;;  %v1204_v16 = vcvt.s32.f32 %v1197_v9  ;;  %v1273_v5 = vsel %vm1259_vm8, %v1270_v35, %v1272_v42 }
 0x196   :  { %v1548_v56 = vadd.s32 1, %v7470_v41  ;;  %v1090_v13 = vsub.s32 32, %v9074_v45  ;;  %v1095_v34 = vadd.s32 127, %v1094_v24  ;;  %v1398_v38 = vclz %v7463_v27 }
 0x197   :  { %v9110_v49 = vmul.u32.u64.low %v9072_v37, %v1273_v5  ;;  %v9111_v26 = vmul.u32.u64.high %v9072_v37, %v1273_v5, %v9110_v49  ;;  %v1265_v18 = vsel %vm1259_vm8, %v1262_v17, %v1264_v7  ;;  %v1284_v58 = vadd.s32 1, %v9099_v57 }
 0x198   :  { %vm1549_vm10 = vcmp.gt.s32.totalorder %v1548_v56, 0  ;;  %8076 = vcosq.f32 %v9035_v61  ;;  %v1211_v10 = vsel %vm9081_vm11, 0, %v9050_v25  ;;  %v1074_v21 = vadd.s32 %v8910_v63, %v8906_v39 }
 0x199   :  { %v1550_v9 = vsel %vm1549_vm10, %v1548_v56, 0  ;;  %v12213_v8 = vxor.u32 2147483648, %v9018_v51  ;;  %v1205_v44 = vmul.f32 %v1204_v16, %v1202_v4  ;;  %v12214_v41 = vand.u32 2147483647, %v9052_v54  ;;  %v9140_v4 = vpop.f32.mrf.mxu0 }
 0x19a   :  { %v1552_v47 = vand.u32 31, %v1550_v9  ;;  %v1092_v35 = vshrl.u32 %v1074_v21, %v1090_v13  ;;  %v1096_v33 = vshll.u32 %v1095_v34, 23  ;;  %v1281_v27 = vmul.u32 %v9072_v37, %v1265_v18  ;;  %12216 = vst [vmem:[#allocation28_spill] sm:$0xff] %v9140_v4 }
 0x19b   :  { %v895_v22 = vsel %vm812_vm9, %v12213_v8, %v9018_v51  ;;  %v1545_v24 = vand.u32 8388607, %v12214_v41  ;;  %vm1283_vm14 = vc.u32 %v9111_v26, %v9098_v3  ;;  %v9132_v39 = vand.u32 3, %v9038_v59 }
 0x19c   :  { %v7464_v63 = vadd.s32 4294967294, %v1398_v38  ;;  %v1285_v25 = vsel %vm1283_vm14, %v1284_v58, %v9099_v57  ;;  %v1553_v17 = vsub.s32 32, %v1552_v47  ;;  %8078 = vsinq.f32 %v9035_v61 }
 0x19d   :  { %12215 = vst [vmem:[#allocation27_spill] sm:$0xff] %v9132_v39  ;;  %v9136_v51 = vadd.s32 3, %v1211_v10  ;;  %v1091_v7 = vshll.u32 %v8977_v14, %v9074_v45  ;;  %v1286_v42 = vadd.s32 %v1285_v25, %v1281_v27  ;;  %v9145_v37 = vsel %vm8899_vm12, %v8593_v32, %v895_v22 }
 0x19e   :  { %v1206_v59 = vxor.u32 2147483648, %v1205_v44  ;;  %v9147_v38 = vand.u32 3, %v1211_v10  ;;  %v1546_v57 = vor.u32 8388608, %v1545_v24  ;;  %v9151_v61 = vor.u32 4788187, %v1096_v33 }
 0x19f   :  { %v9149_v16 = vor.u32 %v1092_v35, %v1091_v7  ;;  %v1287_v5 = vadd.s32 536870912, %v1286_v42  ;;  %v1556_v56 = vshrl.u32 %v12183_v0, %v1553_v17  ;;  %vm7465_vm9 = vcmp.lt.s32.totalorder %v7464_v63, 0 }
 0x1a0   :  { %12217 = vst [vmem:[#allocation29_spill] sm:$0xff] %v9147_v38  ;;  %v1559_v14 = vshrl.u32 %v12184_v11, %v1553_v17  ;;  %v1562_v45 = vshrl.u32 %v12185_v50, %v1553_v17  ;;  %v1437_v29 = vand.u32 2139095040, %v9140_v4  ;;  %v1555_v34 = vshll.u32 %v12195_v12, %v1552_v47 }
 0x1a1   :  { %v9157_v13 = vshrl.u32 %v1287_v5, 30  ;;  %v1558_v49 = vshll.u32 %v12183_v0, %v1552_v47  ;;  %v1565_v18 = vshrl.u32 %v12203_v19, %v1553_v17  ;;  %v1561_v58 = vshll.u32 %v12184_v11, %v1552_v47 }
 0x1a2   :  { %v1564_v10 = vshll.u32 %v12185_v50, %v1552_v47  ;;  %v1567_v21 = vshll.u32 %v12203_v19, %v1552_v47  ;;  %v1568_v8 = vshrl.u32 %v12204_v31, %v1553_v17  ;;  %v9166_v22 = vsel %vm7465_vm9, 0, %v7464_v63 }
 0x1a3   :  { %v1289_v41 = vshll.u32 %v9157_v13, 30  ;;  %v1551_v24 = vshrl.u32 %v1550_v9, 5  ;;  %v1557_v35 = vor.u32 %v1556_v56, %v1555_v34  ;;  %v1560_v33 = vor.u32 %v1559_v14, %v1558_v49 }
 0x1a4   :  { %v1563_v27 = vor.u32 %v1562_v45, %v1561_v58  ;;  %v1566_v25 = vor.u32 %v1565_v18, %v1564_v10  ;;  %v1569_v7 = vor.u32 %v1568_v8, %v1567_v21  ;;  %v1207_v5 = vsel %vm1124_vm1, %v1206_v59, %v1205_v44 }
 0x1a5   :  { %v1104_v38 = vsub.s32 4, %v8963_v28  ;;  %v9172_v39 = vsub.s32 %v1286_v42, %v1289_v41  ;;  %v9175_v32 = vpop.eup %8076  ;;  %v1098_v63 = vand.u32 2147483647, %v9151_v61  ;;  %v1100_v9 = vcvt.s32.f32 %v9149_v16 }
 0x1a6   :  { %12218 = vst [vmem:[#allocation30_spill] sm:$0xff] %v9175_v32  ;;  %v1586_v56 = vshll.u32 %v1546_v57, 8  ;;  %v1438_v14 = vshrl.u32 %v1437_v29, 23  ;;  %vm1020_vm12 = vcmp.lt.s32.totalorder %v8764_v1, 0  ;;  %vm1332_vm15 = vcmp.lt.s32.totalorder %v8853_v48, 0 }
 0x1a7   :  { %v1406_v44 = vsub.s32 4294967266, %v9166_v22  ;;  %v1292_v59 = vsub.s32 0, %v9172_v39  ;;  %vm1570_vm1 = vcmp.lt.s32.totalorder %v1551_v24, 1  ;;  %vm1573_vm2 = vcmp.lt.s32.totalorder %v1551_v24, 4 }
 0x1a8   :  { %v1578_v42 = vsel %vm1570_vm1, %v1557_v35, %v1560_v33  ;;  %v1579_v45 = vsel %vm1573_vm2, %v1566_v25, 920167782  ;;  %v1582_v34 = vsel %vm1570_vm1, %v1560_v33, %v1563_v27  ;;  %v1583_v61 = vsel %vm1573_vm2, %v1569_v7, 1326507024 }
 0x1a9   :  { %v7459_v16 = vmin.u32 %v1292_v59, %v9172_v39  ;;  %v1554_v57 = vshrl.u32 %v12195_v12, %v1553_v17  ;;  %vm1572_vm4 = vcmp.lt.s32.totalorder %v1551_v24, 3  ;;  %v1575_v29 = vsel %vm1573_vm2, %v1563_v27, 2102212464  ;;  %v9187_v49 = vpop.eup %8078 }
 0x1aa   :  { %12219 = vst [vmem:[#allocation31_spill] sm:$0xff] %v9187_v49  ;;  %v12220_v18 = vand.u32 2147483647, %v8853_v48  ;;  %vm1571_vm0 = vcmp.lt.s32.totalorder %v1551_v24, 2  ;;  %v1580_v10 = vsel %vm1572_vm4, %v1563_v27, %v1579_v45  ;;  %v1584_v21 = vsel %vm1572_vm4, %v1566_v25, %v1583_v61 }
 0x1ab   :  { %v7466_v8 = vadd.s32 4294967169, %v1438_v14  ;;  %v1416_v41 = vsub.s32 4, %v9068_v52  ;;  %v1574_v7 = vsel %vm1570_vm1, %v1554_v57, %v1557_v35  ;;  %v1581_v17 = vsel %vm1571_vm0, %v1578_v42, %v1580_v10 }
 0x1ac   :  { %vm9191_vm3 = vcmp.le.f32.partialorder %v12220_v18, 0.7853982  ;;  %v1585_v59 = vsel %vm1571_vm0, %v1582_v34, %v1584_v21  ;;  %v1576_v47 = vsel %vm1572_vm4, %v1560_v33, %v1575_v29  ;;  %v1407_v43 = vadd.s32 127, %v1406_v44 }
 0x1ad   :  { %v9199_v32 = vmul.u32.u64.low %v1586_v56, %v1585_v59  ;;  %v9200_v49 = vmul.u32.u64.high %v1586_v56, %v1585_v59, %v9199_v32  ;;  %v1444_v18 = vadd.s32 1, %v7466_v8  ;;  %v1294_v23 = vclz %v7459_v16 }
 0x1ae   :  { %v9202_v55 = vmul.u32.u64.low %v1586_v56, %v1581_v17  ;;  %v9203_v20 = vmul.u32.u64.high %v1586_v56, %v1581_v17, %v9202_v55  ;;  %8080 = vcosq.f32 %v9145_v37  ;;  %v9210_v35 = vsel %vm9081_vm11, %v8654_v30, %v1207_v5 }
 0x1af   :  { %v9213_v27 = vand.u32 3, %v9136_v51  ;;  %vm1445_vm5 = vcmp.gt.s32.totalorder %v1444_v18, 0  ;;  %v9215_v33 = vmul.f32 %v1100_v9, %v1098_v63  ;;  %v1577_v32 = vsel %vm1571_vm0, %v1574_v7, %v1576_v47 }
 0x1b0   :  { %v12224_v25 = vand.u32 2147483647, %v9140_v4  ;;  %v1446_v44 = vsel %vm1445_vm5, %v1444_v18, 0  ;;  %8082 = vsinq.f32 %v9145_v37  ;;  %v9224_v6 = vsel %vm1020_vm12, %v1104_v38, %v8963_v28 }
 0x1b1   :  { %12223 = vst [vmem:[#allocation32_spill] sm:$0xff] %v9213_v27  ;;  %v1417_v51 = vsel %vm1332_vm15, %v1416_v41, %v9068_v52  ;;  %vm1595_vm6 = vc.u32 %v9200_v49, %v9202_v55  ;;  %v1402_v24 = vsub.s32 32, %v9166_v22  ;;  %v1408_v5 = vshll.u32 %v1407_v43, 23 }
 0x1b2   :  { %v1441_v14 = vand.u32 8388607, %v12224_v25  ;;  %v7460_v47 = vadd.s32 4294967294, %v1294_v23  ;;  %v1596_v63 = vadd.s32 1, %v9203_v20  ;;  %8084 = vcosq.f32 %v9210_v35 }
 0x1b3   :  { %v1386_v37 = vadd.s32 %v9003_v2, %v9022_v62  ;;  %v1593_v28 = vmul.u32 %v1586_v56, %v1577_v32  ;;  %v1448_v38 = vand.u32 31, %v1446_v44  ;;  %v9239_v52 = vsel %vm9191_vm3, 0, %v1417_v51  ;;  %v9263_v51 = vpop.f32.mrf.mxu0 }
 0x1b4   :  { %v1597_v42 = vsel %vm1595_vm6, %v1596_v63, %v9203_v20  ;;  %v1442_v45 = vor.u32 8388608, %v1441_v14  ;;  %v1403_v23 = vshll.u32 %v9087_v40, %v9166_v22  ;;  %v9244_v34 = vshrl.u32 %v1446_v44, 5  ;;  %12225 = vst [vmem:[#allocation33_spill] sm:$0xff] %v9263_v51 }
 0x1b5   :  { %v1598_v43 = vadd.s32 %v1597_v42, %v1593_v28  ;;  %v1449_v61 = vsub.s32 32, %v1448_v38  ;;  %v1404_v16 = vshrl.u32 %v1386_v37, %v1402_v24  ;;  %v1409_v2 = vor.u32 4788187, %v1408_v5 }
 0x1b6   :  { %vm7461_vm7 = vcmp.lt.s32.totalorder %v7460_v47, 0  ;;  %v1451_v62 = vshll.u32 %v12195_v12, %v1448_v38  ;;  %v1454_v29 = vshll.u32 %v12183_v0, %v1448_v38  ;;  %v1457_v10 = vshll.u32 %v12184_v11, %v1448_v38 }
 0x1b7   :  { %v1599_v56 = vadd.s32 536870912, %v1598_v43  ;;  %v1452_v57 = vshrl.u32 %v12183_v0, %v1449_v61  ;;  %v1455_v20 = vshrl.u32 %v12184_v11, %v1449_v61  ;;  %v1458_v40 = vshrl.u32 %v12185_v50, %v1449_v61 }
 0x1b8   :  { %v1460_v22 = vshll.u32 %v12185_v50, %v1448_v38  ;;  %v1461_v21 = vshrl.u32 %v12203_v19, %v1449_v61  ;;  %vm1466_vm11 = vcmp.lt.s32.totalorder %v9244_v34, 1  ;;  %v1463_v18 = vshll.u32 %v12203_v19, %v1448_v38 }
 0x1b9   :  { %v9254_v8 = vshrl.u32 %v1599_v56, 30  ;;  %v1453_v41 = vor.u32 %v1452_v57, %v1451_v62  ;;  %v1456_v7 = vor.u32 %v1455_v20, %v1454_v29  ;;  %v1459_v17 = vor.u32 %v1458_v40, %v1457_v10 }
 0x1ba   :  { %v1462_v59 = vor.u32 %v1461_v21, %v1460_v22  ;;  %v1464_v32 = vshrl.u32 %v12204_v31, %v1449_v61  ;;  %v1405_v25 = vor.u32 %v1404_v16, %v1403_v23  ;;  %vm1469_vm13 = vcmp.lt.s32.totalorder %v9244_v34, 4 }
 0x1bb   :  { %v1601_v14 = vshll.u32 %v9254_v8, 30  ;;  %v1474_v44 = vsel %vm1466_vm11, %v1453_v41, %v1456_v7  ;;  %v9265_v24 = vpop.eup %8080  ;;  %v12226_v5 = vand.u32 2147483647, %v8764_v1  ;;  %v9274_v37 = vsel %vm7461_vm7, 0, %v7460_v47 }
 0x1bc   :  { %v1465_v28 = vor.u32 %v1464_v32, %v1463_v18  ;;  %vm1468_vm10 = vcmp.lt.s32.totalorder %v9244_v34, 3  ;;  %v1475_v38 = vsel %vm1469_vm13, %v1462_v59, 920167782  ;;  %v1410_v42 = vand.u32 2147483647, %v1409_v2 }
 0x1bd   :  { %vm9269_vm8 = vcmp.le.f32.partialorder %v12226_v5, 0.7853982  ;;  %vm1228_vm14 = vcmp.lt.s32.totalorder %v8944_v60, 0  ;;  %v9280_v23 = vsub.s32 %v1598_v43, %v1601_v14  ;;  %vm1467_vm9 = vcmp.lt.s32.totalorder %v9244_v34, 2  ;;  %v9285_v62 = vpop.eup %8082 }
 0x1be   :  { %v1476_v16 = vsel %vm1468_vm10, %v1459_v17, %v1475_v38  ;;  %v1471_v47 = vsel %vm1469_vm13, %v1459_v17, 2102212464  ;;  %v1482_v57 = vshll.u32 %v1442_v45, 8  ;;  %v1749_v2 = vand.u32 2139095040, %v9263_v51 }
 0x1bf   :  { %v1477_v56 = vsel %vm1467_vm9, %v1474_v44, %v1476_v16  ;;  %v1302_v29 = vsub.s32 4294967266, %v9274_v37  ;;  %v1604_v43 = vsub.s32 0, %v9280_v23  ;;  %v1450_v20 = vshrl.u32 %v12195_v12, %v1449_v61  ;;  %v9297_v40 = vpop.eup %8084 }
 0x1c0   :  { %v1478_v10 = vsel %vm1466_vm11, %v1456_v7, %v1459_v17  ;;  %12229 = vst [vmem:[#allocation34_spill] sm:$0xff] %v9297_v40  ;;  %v1412_v22 = vcvt.s32.f32 %v1405_v25  ;;  %v1479_v21 = vsel %vm1469_vm13, %v1465_v28, 1326507024  ;;  %v12230_v45 = vand.u32 2147483647, %v8944_v60 }
 0x1c1   :  { %v9301_v18 = vmul.u32.u64.low %v1482_v57, %v1477_v56  ;;  %v9302_v32 = vmul.u32.u64.high %v1482_v57, %v1477_v56, %v9301_v18  ;;  %v7471_v61 = vmin.u32 %v1604_v43, %v9280_v23  ;;  %v1470_v17 = vsel %vm1466_vm11, %v1450_v20, %v1453_v41 }
 0x1c2   :  { %vm9307_vm1 = vcmp.le.f32.partialorder %v12230_v45, 0.7853982  ;;  %v1472_v25 = vsel %vm1468_vm10, %v1456_v7, %v1471_v47  ;;  %v1480_v44 = vsel %vm1468_vm10, %v1462_v59, %v1479_v21  ;;  %v1413_v5 = vmul.f32 %v1412_v22, %v1410_v42 }
 0x1c3   :  { %v1312_v28 = vsub.s32 4, %v9157_v13  ;;  %v1481_v38 = vsel %vm1467_vm9, %v1478_v10, %v1480_v44  ;;  %v1750_v16 = vshrl.u32 %v1749_v2, 23  ;;  %v1298_v56 = vsub.s32 32, %v9274_v37 }
 0x1c4   :  { %v1303_v45 = vadd.s32 127, %v1302_v29  ;;  %v9322_v43 = vmul.u32.u64.low %v1482_v57, %v1481_v38  ;;  %v9323_v9 = vmul.u32.u64.high %v1482_v57, %v1481_v38, %v9322_v43  ;;  %v1606_v41 = vclz %v7471_v61 }
 0x1c5   :  { %v1473_v7 = vsel %vm1467_vm9, %v1470_v17, %v1472_v25  ;;  %v1492_v47 = vadd.s32 1, %v9302_v32  ;;  %v7478_v59 = vadd.s32 4294967169, %v1750_v16  ;;  %8086 = vsinq.f32 %v9210_v35  ;;  %v9347_v17 = vpop.f32.mrf.mxu0 }
 0x1c6   :  { %v9332_v42 = vsel %vm9269_vm8, 0, %v9224_v6  ;;  %v1423_v2 = vadd.s32 3, %v9239_v52  ;;  %v1282_v29 = vadd.s32 %v9098_v3, %v9111_v26  ;;  %v12233_v20 = vxor.u32 2147483648, %v9215_v33  ;;  %12234 = vst [vmem:[#allocation35_spill] sm:$0xff] %v9347_v17 }
 0x1c7   :  { %v1414_v10 = vxor.u32 2147483648, %v1413_v5  ;;  %v1313_v35 = vsel %vm1228_vm14, %v1312_v28, %v9157_v13  ;;  %v1756_v22 = vadd.s32 1, %v7478_v59  ;;  %v1304_v6 = vshll.u32 %v1303_v45, 23 }
 0x1c8   :  { %v1103_v34 = vsel %vm1020_vm12, %v12233_v20, %v9215_v33  ;;  %v1300_v21 = vshrl.u32 %v1282_v29, %v1298_v56  ;;  %v1489_v61 = vmul.u32 %v1482_v57, %v1473_v7  ;;  %vm1491_vm2 = vc.u32 %v9323_v9, %v9301_v18 }
 0x1c9   :  { %v7472_v26 = vadd.s32 4294967294, %v1606_v41  ;;  %v1493_v3 = vsel %vm1491_vm2, %v1492_v47, %v9302_v32  ;;  %v12053_v25 = vand.u32 2147483647, %v9263_v51  ;;  %vm1757_vm12 = vcmp.gt.s32.totalorder %v1756_v22, 0 }
 0x1ca   :  { %v1106_v33 = vsel %vm9269_vm8, %v8764_v1, %v1103_v34  ;;  %v9355_v13 = vand.u32 3, %v9239_v52  ;;  %v1299_v57 = vshll.u32 %v9172_v39, %v9274_v37  ;;  %v1494_v44 = vadd.s32 %v1493_v3, %v1489_v61 }
 0x1cb   :  { %v9359_v28 = vand.u32 3, %v1423_v2  ;;  %v1315_v38 = vsel %vm9307_vm1, 0, %v1313_v35  ;;  %v1758_v32 = vsel %vm1757_vm12, %v1756_v22, 0  ;;  %v1645_v16 = vand.u32 2139095040, %v9347_v17 }
 0x1cc   :  { %12235 = vst [vmem:[#allocation36_spill] sm:$0xff] %v9355_v13  ;;  %v1415_v56 = vsel %vm1332_vm15, %v1414_v10, %v1413_v5  ;;  %v1301_v63 = vor.u32 %v1300_v21, %v1299_v57  ;;  %v1305_v45 = vor.u32 4788187, %v1304_v6  ;;  %v1495_v43 = vadd.s32 536870912, %v1494_v44 }
 0x1cd   :  { %12236 = vst [vmem:[#allocation37_spill] sm:$0xff] %v9359_v28  ;;  %8088 = vcosq.f32 %v1106_v33  ;;  %vm7473_vm4 = vcmp.lt.s32.totalorder %v7472_v26, 0  ;;  %v1753_v39 = vand.u32 8388607, %v12053_v25  ;;  %v1760_v52 = vand.u32 31, %v1758_v32 }
 0x1ce   :  { %8090 = vsinq.f32 %v1106_v33  ;;  %v9368_v37 = vadd.s32 3, %v1315_v38  ;;  %v9370_v41 = vand.u32 3, %v1315_v38  ;;  %v9372_v7 = vshrl.u32 %v1495_v43, 30 }
 0x1cf   :  { %v9377_v5 = vsel %vm9191_vm3, %v8853_v48, %v1415_v56  ;;  %v1594_v47 = vadd.s32 %v9202_v55, %v9200_v49  ;;  %v1761_v59 = vsub.s32 32, %v1760_v52  ;;  %v1646_v2 = vshrl.u32 %v1645_v16, 23 }
 0x1d0   :  { %12237 = vst [vmem:[#allocation38_spill] sm:$0xff] %v9370_v41  ;;  %v1306_v29 = vand.u32 2147483647, %v1305_v45  ;;  %v1308_v20 = vcvt.s32.f32 %v1301_v63  ;;  %v9381_v34 = vsel %vm7473_vm4, 0, %v7472_v26  ;;  %v1497_v10 = vshll.u32 %v9372_v7, 30 }
 0x1d1   :  { %v1754_v35 = vor.u32 8388608, %v1753_v39  ;;  %v1764_v22 = vshrl.u32 %v12183_v0, %v1761_v59  ;;  %v1767_v21 = vshrl.u32 %v12184_v11, %v1761_v59  ;;  %v1770_v58 = vshrl.u32 %v12185_v50, %v1761_v59 }
 0x1d2   :  { %v9387_v6 = vsub.s32 %v1494_v44, %v1497_v10  ;;  %v1763_v61 = vshll.u32 %v12195_v12, %v1760_v52  ;;  %v1766_v55 = vshll.u32 %v12183_v0, %v1760_v52  ;;  %v1769_v49 = vshll.u32 %v12184_v11, %v1760_v52  ;;  %v9392_v3 = vpop.eup %8086 }
 0x1d3   :  { %12238 = vst [vmem:[#allocation39_spill] sm:$0xff] %v9392_v3  ;;  %v1614_v26 = vsub.s32 4294967266, %v9381_v34  ;;  %v1624_v33 = vsub.s32 4, %v9254_v8  ;;  %v1759_v57 = vshrl.u32 %v1758_v32, 5  ;;  %v7474_v38 = vadd.s32 4294967169, %v1646_v2 }
 0x1d4   :  { %v1500_v16 = vsub.s32 0, %v9387_v6  ;;  %v1765_v56 = vor.u32 %v1764_v22, %v1763_v61  ;;  %v1768_v63 = vor.u32 %v1767_v21, %v1766_v55  ;;  %v1771_v44 = vor.u32 %v1770_v58, %v1769_v49 }
 0x1d5   :  { %v1772_v45 = vshll.u32 %v12185_v50, %v1760_v52  ;;  %v1773_v43 = vshrl.u32 %v12203_v19, %v1761_v59  ;;  %v1775_v39 = vshll.u32 %v12203_v19, %v1760_v52  ;;  %v1776_v10 = vshrl.u32 %v12204_v31, %v1761_v59 }
 0x1d6   :  { %v1309_v25 = vmul.f32 %v1308_v20, %v1306_v29  ;;  %v1610_v48 = vsub.s32 32, %v9381_v34  ;;  %v7467_v13 = vmin.u32 %v1500_v16, %v9387_v6  ;;  %v1794_v32 = vshll.u32 %v1754_v35, 8 }
 0x1d7   :  { %vm1540_vm15 = vcmp.lt.s32.totalorder %v9052_v54, 0  ;;  %v1774_v2 = vor.u32 %v1773_v43, %v1772_v45  ;;  %v1777_v22 = vor.u32 %v1776_v10, %v1775_v39  ;;  %vm1778_vm3 = vcmp.lt.s32.totalorder %v1759_v57, 1 }
 0x1d8   :  { %vm1781_vm0 = vcmp.lt.s32.totalorder %v1759_v57, 4  ;;  %v1615_v21 = vadd.s32 127, %v1614_v26  ;;  %v1502_v58 = vclz %v7467_v13  ;;  %v1786_v52 = vsel %vm1778_vm3, %v1765_v56, %v1768_v63 }
 0x1d9   :  { %v1783_v61 = vsel %vm1781_vm0, %v1771_v44, 2102212464  ;;  %v1762_v55 = vshrl.u32 %v12195_v12, %v1761_v59  ;;  %vm1780_vm5 = vcmp.lt.s32.totalorder %v1759_v57, 3  ;;  %v1787_v29 = vsel %vm1781_vm0, %v1774_v2, 920167782 }
 0x1da   :  { %v1652_v20 = vadd.s32 1, %v7474_v38  ;;  %v9408_v49 = vpop.eup %8088  ;;  %v7468_v35 = vadd.s32 4294967294, %v1502_v58  ;;  %vm1779_vm6 = vcmp.lt.s32.totalorder %v1759_v57, 2  ;;  %v1788_v16 = vsel %vm1780_vm5, %v1771_v44, %v1787_v29 }
 0x1db   :  { %v1790_v45 = vsel %vm1778_vm3, %v1768_v63, %v1771_v44  ;;  %v9411_v43 = vpop.eup %8090  ;;  %v1782_v13 = vsel %vm1778_vm3, %v1762_v55, %v1765_v56  ;;  %v1784_v26 = vsel %vm1780_vm5, %v1768_v63, %v1783_v61  ;;  %v1789_v39 = vsel %vm1779_vm6, %v1786_v52, %v1788_v16  ;;  %v9423_v61 = vpop.f32.mrf.mxu0 }
 0x1dc   :  { %v1791_v59 = vsel %vm1781_vm0, %v1777_v22, 1326507024  ;;  %vm7469_vm7 = vcmp.lt.s32.totalorder %v7468_v35, 0  ;;  %v9416_v28 = vmul.u32.u64.low %v1794_v32, %v1789_v39  ;;  %v9417_v38 = vmul.u32.u64.high %v1794_v32, %v1789_v39, %v9416_v28  ;;  %12239 = vst [vmem:[#allocation40_spill] sm:$0xff] %v9423_v61 }
 0x1dd   :  { %v1792_v10 = vsel %vm1780_vm5, %v1774_v2, %v1791_v59  ;;  %v1310_v58 = vxor.u32 2147483648, %v1309_v25  ;;  %v12059_v44 = vand.u32 2147483647, %v9347_v17  ;;  %vm1653_vm11 = vcmp.gt.s32.totalorder %v1652_v20, 0 }
 0x1de   :  { %v1793_v29 = vsel %vm1779_vm6, %v1790_v45, %v1792_v10  ;;  %v1612_v41 = vshrl.u32 %v1594_v47, %v1610_v48  ;;  %v1616_v40 = vshll.u32 %v1615_v21, 23  ;;  %v1785_v56 = vsel %vm1779_vm6, %v1782_v13, %v1784_v26 }
 0x1df   :  { %v1654_v63 = vsel %vm1653_vm11, %v1652_v20, 0  ;;  %v9425_v22 = vsel %vm7469_vm7, 0, %v7468_v35  ;;  %v9427_v2 = vmul.u32.u64.low %v1794_v32, %v1793_v29  ;;  %v9428_v52 = vmul.u32.u64.high %v1794_v32, %v1793_v29, %v9427_v2 }
 0x1e0   :  { %v1656_v55 = vand.u32 31, %v1654_v63  ;;  %8092 = vcosq.f32 %v9377_v5  ;;  %v1611_v16 = vshll.u32 %v9280_v23, %v9381_v34  ;;  %v9436_v48 = vsel %vm1540_vm15, %v1624_v33, %v9254_v8 }
 0x1e1   :  { %v1804_v47 = vadd.s32 1, %v9417_v38  ;;  %v9441_v57 = vsel %vm1228_vm14, %v1310_v58, %v1309_v25  ;;  %v1649_v21 = vand.u32 8388607, %v12059_v44  ;;  %v1957_v35 = vand.u32 2139095040, %v9423_v61 }
 0x1e2   :  { %v1657_v20 = vsub.s32 32, %v1656_v55  ;;  %v1613_v45 = vor.u32 %v1612_v41, %v1611_v16  ;;  %v1617_v13 = vor.u32 4788187, %v1616_v40  ;;  %v1510_v23 = vsub.s32 4294967266, %v9425_v22 }
 0x1e3   :  { %v1801_v34 = vmul.u32 %v1794_v32, %v1785_v56  ;;  %vm1803_vm13 = vc.u32 %v9428_v52, %v9416_v28  ;;  %v9449_v8 = vshrl.u32 %v1654_v63, 5  ;;  %v1659_v33 = vshll.u32 %v12195_v12, %v1656_v55 }
 0x1e4   :  { %v1660_v25 = vshrl.u32 %v12183_v0, %v1657_v20  ;;  %v1805_v26 = vsel %vm1803_vm13, %v1804_v47, %v9417_v38  ;;  %v1662_v39 = vshll.u32 %v12183_v0, %v1656_v55  ;;  %v1663_v59 = vshrl.u32 %v12184_v11, %v1657_v20 }
 0x1e5   :  { %v1665_v40 = vshll.u32 %v12184_v11, %v1656_v55  ;;  %v1806_v41 = vadd.s32 %v1805_v26, %v1801_v34  ;;  %v1666_v32 = vshrl.u32 %v12185_v50, %v1657_v20  ;;  %v1668_v10 = vshll.u32 %v12185_v50, %v1656_v55 }
 0x1e6   :  { %v1669_v58 = vshrl.u32 %v12203_v19, %v1657_v20  ;;  %v1661_v29 = vor.u32 %v1660_v25, %v1659_v33  ;;  %v1664_v56 = vor.u32 %v1663_v59, %v1662_v39  ;;  %v1671_v63 = vshll.u32 %v12203_v19, %v1656_v55 }
 0x1e7   :  { %v1672_v2 = vshrl.u32 %v12204_v31, %v1657_v20  ;;  %v1490_v38 = vadd.s32 %v9301_v18, %v9323_v9  ;;  %v1807_v16 = vadd.s32 536870912, %v1806_v41  ;;  %v1667_v47 = vor.u32 %v1666_v32, %v1665_v40 }
 0x1e8   :  { %v1670_v44 = vor.u32 %v1669_v58, %v1668_v10  ;;  %v1620_v3 = vcvt.s32.f32 %v1613_v45  ;;  %v1650_v34 = vor.u32 8388608, %v1649_v21  ;;  %v1958_v27 = vshrl.u32 %v1957_v35, 23 }
 0x1e9   :  { %v1673_v26 = vor.u32 %v1672_v2, %v1671_v63  ;;  %v1618_v30 = vand.u32 2147483647, %v1617_v13  ;;  %v9464_v1 = vshrl.u32 %v1807_v16, 30  ;;  %vm1674_vm8 = vcmp.lt.s32.totalorder %v9449_v8, 1 }
 0x1ea   :  { %vm1677_vm10 = vcmp.lt.s32.totalorder %v9449_v8, 4  ;;  %v12240_v55 = vand.u32 2147483647, %v9052_v54  ;;  %v1511_v9 = vadd.s32 127, %v1510_v23  ;;  %vm1676_vm9 = vcmp.lt.s32.totalorder %v9449_v8, 3 }
 0x1eb   :  { %v1682_v18 = vsel %vm1674_vm8, %v1661_v29, %v1664_v56  ;;  %v1683_v21 = vsel %vm1677_vm10, %v1670_v44, 920167782  ;;  %v1506_v35 = vsub.s32 32, %v9425_v22  ;;  %v1809_v45 = vshll.u32 %v9464_v1, 30 }
 0x1ec   :  { %vm9470_vm14 = vcmp.le.f32.partialorder %v12240_v55, 0.7853982  ;;  %v1684_v13 = vsel %vm1676_vm9, %v1667_v47, %v1683_v21  ;;  %v1686_v25 = vsel %vm1674_vm8, %v1664_v56, %v1667_v47  ;;  %vm1436_vm2 = vcmp.lt.s32.totalorder %v9140_v4, 0 }
 0x1ed   :  { %vm1675_vm12 = vcmp.lt.s32.totalorder %v9449_v8, 2  ;;  %v1679_v23 = vsel %vm1677_vm10, %v1667_v47, 2102212464  ;;  %v1687_v39 = vsel %vm1677_vm10, %v1673_v26, 1326507024  ;;  %v7486_v59 = vadd.s32 4294967169, %v1958_v27  ;;  %v9485_v40 = vpop.eup %8092 }
 0x1ee   :  { %12243 = vst [vmem:[#allocation41_spill] sm:$0xff] %v9485_v40  ;;  %v9487_v32 = vsub.s32 %v1806_v41, %v1809_v45  ;;  %v1658_v10 = vshrl.u32 %v12195_v12, %v1657_v20  ;;  %v1685_v58 = vsel %vm1675_vm12, %v1682_v18, %v1684_v13  ;;  %v1688_v63 = vsel %vm1676_vm9, %v1670_v44, %v1687_v39 }
 0x1ef   :  { %v1621_v2 = vmul.f32 %v1620_v3, %v1618_v30  ;;  %v1512_v16 = vshll.u32 %v1511_v9, 23  ;;  %v1689_v55 = vsel %vm1675_vm12, %v1686_v25, %v1688_v63  ;;  %v1690_v47 = vshll.u32 %v1650_v34, 8 }
 0x1f0   :  { %v1508_v26 = vshrl.u32 %v1490_v38, %v1506_v35  ;;  %v1812_v27 = vsub.s32 0, %v9487_v32  ;;  %v1678_v41 = vsel %vm1674_vm8, %v1658_v10, %v1661_v29  ;;  %v1680_v20 = vsel %vm1676_vm9, %v1664_v56, %v1679_v23 }
 0x1f1   :  { %v12244_v18 = vand.u32 2147483647, %v9140_v4  ;;  %v9507_v30 = vmul.u32.u64.low %v1690_v47, %v1689_v55  ;;  %v9508_v3 = vmul.u32.u64.high %v1690_v47, %v1689_v55, %v9507_v30  ;;  %v1520_v38 = vsub.s32 4, %v9372_v7 }
 0x1f2   :  { %v9510_v44 = vmul.u32.u64.low %v1690_v47, %v1685_v58  ;;  %v9511_v34 = vmul.u32.u64.high %v1690_v47, %v1685_v58, %v9510_v44  ;;  %v7479_v29 = vmin.u32 %v1812_v27, %v9487_v32  ;;  %v12066_v9 = vand.u32 2147483647, %v9423_v61 }
 0x1f3   :  { %vm9503_vm4 = vcmp.le.f32.partialorder %v12244_v18, 0.7853982  ;;  %v1964_v56 = vadd.s32 1, %v7486_v59  ;;  %v1622_v35 = vxor.u32 2147483648, %v1621_v2  ;;  %v1507_v45 = vshll.u32 %v9387_v6, %v9425_v22  ;;  %v9559_v18 = vpop.f32.mrf.mxu0 }
 0x1f4   :  { %v1513_v13 = vor.u32 4788187, %v1512_v16  ;;  %v1681_v25 = vsel %vm1675_vm12, %v1678_v41, %v1680_v20  ;;  %v9525_v23 = vsel %vm9307_vm1, %v8944_v60, %v9441_v57  ;;  %v1627_v39 = vsel %vm9470_vm14, 0, %v9436_v48  ;;  %12249 = vst [vmem:[#allocation44_spill] sm:$0xff] %v9559_v18 }
 0x1f5   :  { %v1814_v10 = vclz %v7479_v29  ;;  %vm1965_vm3 = vcmp.gt.s32.totalorder %v1964_v56, 0  ;;  %v1509_v59 = vor.u32 %v1508_v26, %v1507_v45  ;;  %vm1699_vm0 = vc.u32 %v9508_v3, %v9510_v44  ;;  %v9637_v21 = vpop.f32.mrf.mxu0 }
 0x1f6   :  { %v1700_v6 = vadd.s32 1, %v9511_v34  ;;  %v1966_v22 = vsel %vm1965_vm3, %v1964_v56, 0  ;;  %v1521_v8 = vsel %vm1436_vm2, %v1520_v38, %v9372_v7  ;;  %v1697_v57 = vmul.u32 %v1690_v47, %v1681_v25  ;;  %12256 = vst [vmem:[#allocation48_spill] sm:$0xff] %v9637_v21 }
 0x1f7   :  { %v7480_v14 = vadd.s32 4294967294, %v1814_v10  ;;  %v1968_v58 = vand.u32 31, %v1966_v22  ;;  %v1623_v63 = vsel %vm1540_vm15, %v1622_v35, %v1621_v2  ;;  %v1514_v48 = vand.u32 2147483647, %v1513_v13 }
 0x1f8   :  { %v1701_v16 = vsel %vm1699_vm0, %v1700_v6, %v9511_v34  ;;  %v1961_v55 = vand.u32 8388607, %v12066_v9  ;;  %8094 = vsinq.f32 %v9377_v5  ;;  %v9543_v26 = vand.u32 3, %v9368_v37 }
 0x1f9   :  { %v1702_v27 = vadd.s32 %v1701_v16, %v1697_v57  ;;  %v1969_v41 = vsub.s32 32, %v1968_v58  ;;  %8096 = vcosq.f32 %v9525_v23  ;;  %v9546_v7 = vadd.s32 3, %v1627_v39 }
 0x1fa   :  { %12247 = vst [vmem:[#allocation42_spill] sm:$0xff] %v9543_v26  ;;  %v9548_v47 = vand.u32 3, %v1627_v39  ;;  %v1516_v2 = vcvt.s32.f32 %v1509_v59  ;;  %v9553_v20 = vsel %vm9470_vm14, %v9052_v54, %v1623_v63  ;;  %v9557_v5 = vsel %vm9503_vm4, 0, %v1521_v8 }
 0x1fb   :  { %vm7481_vm1 = vcmp.lt.s32.totalorder %v7480_v14, 0  ;;  %v1703_v37 = vadd.s32 536870912, %v1702_v27  ;;  %v1962_v34 = vor.u32 8388608, %v1961_v55  ;;  %v1972_v38 = vshrl.u32 %v12183_v0, %v1969_v41 }
 0x1fc   :  { %12248 = vst [vmem:[#allocation43_spill] sm:$0xff] %v9548_v47  ;;  %v1517_v30 = vmul.f32 %v1516_v2, %v1514_v48  ;;  %v1975_v29 = vshrl.u32 %v12184_v11, %v1969_v41  ;;  %v1971_v33 = vshll.u32 %v12195_v12, %v1968_v58  ;;  %v1978_v35 = vshrl.u32 %v12185_v50, %v1969_v41 }
 0x1fd   :  { %v9563_v56 = vshrl.u32 %v1703_v37, 30  ;;  %v1981_v45 = vshrl.u32 %v12203_v19, %v1969_v41  ;;  %v9568_v13 = vsel %vm7481_vm1, 0, %v7480_v14  ;;  %v1974_v25 = vshll.u32 %v12183_v0, %v1968_v58 }
 0x1fe   :  { %v1980_v39 = vshll.u32 %v12185_v50, %v1968_v58  ;;  %v1853_v10 = vand.u32 2139095040, %v9559_v18  ;;  %v1967_v6 = vshrl.u32 %v1966_v22, 5  ;;  %v1973_v8 = vor.u32 %v1972_v38, %v1971_v33 }
 0x1ff   :  { %v1705_v59 = vshll.u32 %v9563_v56, 30  ;;  %v1977_v57 = vshll.u32 %v12184_v11, %v1968_v58  ;;  %v1976_v63 = vor.u32 %v1975_v29, %v1974_v25  ;;  %v1983_v16 = vshll.u32 %v12203_v19, %v1968_v58 }
 0x200   :  { %v1982_v48 = vor.u32 %v1981_v45, %v1980_v39  ;;  %v1984_v55 = vshrl.u32 %v12204_v31, %v1969_v41  ;;  %v1802_v14 = vadd.s32 %v9416_v28, %v9428_v52  ;;  %v1822_v2 = vsub.s32 4294967266, %v9568_v13 }
 0x201   :  { %v9580_v37 = vsub.s32 %v1702_v27, %v1705_v59  ;;  %v1979_v9 = vor.u32 %v1978_v35, %v1977_v57  ;;  %v1518_v54 = vxor.u32 2147483648, %v1517_v30  ;;  %v1832_v22 = vsub.s32 4, %v9464_v1 }
 0x202   :  { %v1985_v38 = vor.u32 %v1984_v55, %v1983_v16  ;;  %v2002_v33 = vshll.u32 %v1962_v34, 8  ;;  %vm1986_vm15 = vcmp.lt.s32.totalorder %v1967_v6, 1  ;;  %vm1989_vm5 = vcmp.lt.s32.totalorder %v1967_v6, 4 }
 0x203   :  { %v1708_v29 = vsub.s32 0, %v9580_v37  ;;  %v1854_v58 = vshrl.u32 %v1853_v10, 23  ;;  %vm1748_vm6 = vcmp.lt.s32.totalorder %v9263_v51, 0  ;;  %v1818_v45 = vsub.s32 32, %v9568_v13 }
 0x204   :  { %v1970_v28 = vshrl.u32 %v12195_v12, %v1969_v41  ;;  %v1994_v52 = vsel %vm1986_vm15, %v1973_v8, %v1976_v63  ;;  %v1995_v27 = vsel %vm1989_vm5, %v1982_v48, 920167782  ;;  %v1823_v35 = vadd.s32 127, %v1822_v2 }
 0x205   :  { %v7475_v25 = vmin.u32 %v1708_v29, %v9580_v37  ;;  %vm1988_vm7 = vcmp.lt.s32.totalorder %v1967_v6, 3  ;;  %v1991_v39 = vsel %vm1989_vm5, %v1979_v9, 2102212464  ;;  %v9589_v34 = vpop.eup %8094  ;;  %vm1987_vm11 = vcmp.lt.s32.totalorder %v1967_v6, 2 }
 0x206   :  { %12250 = vst [vmem:[#allocation45_spill] sm:$0xff] %v9589_v34  ;;  %v1996_v59 = vsel %vm1988_vm7, %v1979_v9, %v1995_v27  ;;  %v1998_v10 = vsel %vm1986_vm15, %v1976_v63, %v1979_v9  ;;  %v1999_v57 = vsel %vm1989_vm5, %v1985_v38, 1326507024  ;;  %v9592_v16 = vpop.eup %8096  ;;  %v1990_v41 = vsel %vm1986_vm15, %v1970_v28, %v1973_v8 }
 0x207   :  { %12251 = vst [vmem:[#allocation46_spill] sm:$0xff] %v9592_v16  ;;  %v1710_v55 = vclz %v7475_v25  ;;  %v1997_v47 = vsel %vm1987_vm11, %v1994_v52, %v1996_v59  ;;  %v2000_v40 = vsel %vm1988_vm7, %v1982_v48, %v1999_v57  ;;  %v1992_v2 = vsel %vm1988_vm7, %v1976_v63, %v1991_v39 }
 0x208   :  { %v2001_v29 = vsel %vm1987_vm11, %v1998_v10, %v2000_v40  ;;  %v9597_v26 = vmul.u32.u64.low %v2002_v33, %v1997_v47  ;;  %v9598_v60 = vmul.u32.u64.high %v2002_v33, %v1997_v47, %v9597_v26  ;;  %v12252_v27 = vand.u32 2147483647, %v9263_v51 }
 0x209   :  { %v7476_v38 = vadd.s32 4294967294, %v1710_v55  ;;  %v9607_v25 = vmul.u32.u64.low %v2002_v33, %v2001_v29  ;;  %v9608_v34 = vmul.u32.u64.high %v2002_v33, %v2001_v29, %v9607_v25  ;;  %v12074_v8 = vand.u32 2147483647, %v9559_v18 }
 0x20a   :  { %vm9603_vm13 = vcmp.le.f32.partialorder %v12252_v27, 0.7853982  ;;  %8098 = vsinq.f32 %v9525_v23  ;;  %v9613_v40 = vand.u32 3, %v9546_v7  ;;  %v1519_v47 = vsel %vm1436_vm2, %v1518_v54, %v1517_v30 }
 0x20b   :  { %v7482_v63 = vadd.s32 4294967169, %v1854_v58  ;;  %v1820_v48 = vshrl.u32 %v1802_v14, %v1818_v45  ;;  %v1824_v28 = vshll.u32 %v1823_v35, 23  ;;  %vm7477_vm8 = vcmp.lt.s32.totalorder %v7476_v38, 0 }
 0x20c   :  { %12255 = vst [vmem:[#allocation47_spill] sm:$0xff] %v9613_v40  ;;  %v1993_v52 = vsel %vm1987_vm11, %v1990_v41, %v1992_v2  ;;  %8100 = vcosq.f32 %v9553_v20  ;;  %v1527_v39 = vadd.s32 3, %v9557_v5  ;;  %v2012_v59 = vadd.s32 1, %v9598_v60 }
 0x20d   :  { %v1860_v10 = vadd.s32 1, %v7482_v63  ;;  %v9624_v23 = vsel %vm9503_vm4, %v9140_v4, %v1519_v47  ;;  %v1819_v54 = vshll.u32 %v9487_v32, %v9568_v13  ;;  %v1833_v7 = vsel %vm1748_vm6, %v1832_v22, %v9464_v1 }
 0x20e   :  { %v1857_v30 = vand.u32 8388607, %v12074_v8  ;;  %v9633_v6 = vsel %vm7477_vm8, 0, %v7476_v38  ;;  %v2009_v14 = vmul.u32 %v2002_v33, %v1993_v52  ;;  %vm2011_vm10 = vc.u32 %v9608_v34, %v9597_v26 }
 0x20f   :  { %vm1861_vm14 = vcmp.gt.s32.totalorder %v1860_v10, 0  ;;  %v1821_v58 = vor.u32 %v1820_v48, %v1819_v54  ;;  %v1825_v45 = vor.u32 4788187, %v1824_v28  ;;  %v2013_v32 = vsel %vm2011_vm10, %v2012_v59, %v9598_v60 }
 0x210   :  { %v1862_v13 = vsel %vm1861_vm14, %v1860_v10, 0  ;;  %8102 = vsinq.f32 %v9553_v20  ;;  %v9642_v1 = vand.u32 3, %v9557_v5  ;;  %vm1644_vm9 = vcmp.lt.s32.totalorder %v9347_v17, 0 }
 0x211   :  { %v2014_v22 = vadd.s32 %v2013_v32, %v2009_v14  ;;  %v1864_v33 = vand.u32 31, %v1862_v13  ;;  %8104 = vcosq.f32 %v9624_v23  ;;  %v9646_v35 = vand.u32 3, %v1527_v39 }
 0x212   :  { %12257 = vst [vmem:[#allocation49_spill] sm:$0xff] %v9642_v1  ;;  %v1718_v57 = vsub.s32 4294967266, %v9633_v6  ;;  %v2165_v55 = vand.u32 2139095040, %v9637_v21  ;;  %v9652_v60 = vsel %vm9603_vm13, 0, %v1833_v7  ;;  %v1698_v20 = vadd.s32 %v9510_v44, %v9508_v3 }
 0x213   :  { %12258 = vst [vmem:[#allocation50_spill] sm:$0xff] %v9646_v35  ;;  %v2015_v5 = vadd.s32 536870912, %v2014_v22  ;;  %v1865_v41 = vsub.s32 32, %v1864_v33  ;;  %v1826_v2 = vand.u32 2147483647, %v1825_v45  ;;  %v1828_v29 = vcvt.s32.f32 %v1821_v58 }
 0x214   :  { %v1728_v27 = vsub.s32 4, %v9563_v56  ;;  %v1858_v38 = vor.u32 8388608, %v1857_v30  ;;  %v1714_v25 = vsub.s32 32, %v9633_v6  ;;  %v1719_v28 = vadd.s32 127, %v1718_v57 }
 0x215   :  { %v9658_v47 = vshrl.u32 %v2015_v5, 30  ;;  %v1868_v63 = vshrl.u32 %v12183_v0, %v1865_v41  ;;  %v1871_v48 = vshrl.u32 %v12184_v11, %v1865_v41  ;;  %v1874_v52 = vshrl.u32 %v12185_v50, %v1865_v41 }
 0x216   :  { %v1877_v3 = vshrl.u32 %v12203_v19, %v1865_v41  ;;  %v2166_v44 = vshrl.u32 %v2165_v55, 23  ;;  %v1867_v59 = vshll.u32 %v12195_v12, %v1864_v33  ;;  %v1870_v10 = vshll.u32 %v12183_v0, %v1864_v33 }
 0x217   :  { %v2017_v39 = vshll.u32 %v9658_v47, 30  ;;  %v1873_v54 = vshll.u32 %v12184_v11, %v1864_v33  ;;  %v9668_v7 = vpop.eup %8098  ;;  %v1863_v30 = vshrl.u32 %v1862_v13, 5  ;;  %v1876_v14 = vshll.u32 %v12185_v50, %v1864_v33 }
 0x218   :  { %v1879_v58 = vshll.u32 %v12203_v19, %v1864_v33  ;;  %v1880_v45 = vshrl.u32 %v12204_v31, %v1865_v41  ;;  %v1869_v57 = vor.u32 %v1868_v63, %v1867_v59  ;;  %v1872_v55 = vor.u32 %v1871_v48, %v1870_v10 }
 0x219   :  { %v9673_v32 = vsub.s32 %v2014_v22, %v2017_v39  ;;  %v1875_v5 = vor.u32 %v1874_v52, %v1873_v54  ;;  %v9675_v8 = vpop.eup %8100  ;;  %v1829_v40 = vmul.f32 %v1828_v29, %v1826_v2  ;;  %v1715_v4 = vshll.u32 %v9580_v37, %v9633_v6 }
 0x21a   :  { %12259 = vst [vmem:[#allocation51_spill] sm:$0xff] %v9675_v8  ;;  %v1729_v13 = vsel %vm1644_vm9, %v1728_v27, %v9563_v56  ;;  %v1878_v1 = vor.u32 %v1877_v3, %v1876_v14  ;;  %v1716_v35 = vshrl.u32 %v1698_v20, %v1714_v25  ;;  %v1881_v16 = vor.u32 %v1880_v45, %v1879_v58 }
 0x21b   :  { %v2020_v33 = vsub.s32 0, %v9673_v32  ;;  %v1898_v22 = vshll.u32 %v1858_v38, 8  ;;  %v12260_v63 = vand.u32 2147483647, %v9347_v17  ;;  %v1720_v2 = vshll.u32 %v1719_v28, 23 }
 0x21c   :  { %vm1882_vm12 = vcmp.lt.s32.totalorder %v1863_v30, 1  ;;  %vm1885_vm4 = vcmp.lt.s32.totalorder %v1863_v30, 4  ;;  %v7494_v37 = vadd.s32 4294967169, %v2166_v44  ;;  %v1866_v56 = vshrl.u32 %v12195_v12, %v1865_v41 }
 0x21d   :  { %vm9685_vm2 = vcmp.le.f32.partialorder %v12260_v63, 0.7853982  ;;  %v7487_v6 = vmin.u32 %v2020_v33, %v9673_v32  ;;  %v1887_v29 = vsel %vm1885_vm4, %v1875_v5, 2102212464  ;;  %v1890_v20 = vsel %vm1882_vm12, %v1869_v57, %v1872_v55  ;;  %v9691_v27 = vpop.eup %8102 }
 0x21e   :  { %12263 = vst [vmem:[#allocation52_spill] sm:$0xff] %v9691_v27  ;;  %vm1883_vm3 = vcmp.lt.s32.totalorder %v1863_v30, 2  ;;  %vm1884_vm0 = vcmp.lt.s32.totalorder %v1863_v30, 3  ;;  %v1891_v38 = vsel %vm1885_vm4, %v1878_v1, 920167782  ;;  %v1894_v25 = vsel %vm1882_vm12, %v1872_v55, %v1875_v5  ;;  %v9693_v52 = vpop.eup %8104 }
 0x21f   :  { %12264 = vst [vmem:[#allocation53_spill] sm:$0xff] %v9693_v52  ;;  %v2022_v3 = vclz %v7487_v6  ;;  %v1886_v39 = vsel %vm1882_vm12, %v1866_v56, %v1869_v57  ;;  %v1892_v28 = vsel %vm1884_vm0, %v1875_v5, %v1891_v38  ;;  %v1895_v59 = vsel %vm1885_vm4, %v1881_v16, 1326507024 }
 0x220   :  { %v1888_v10 = vsel %vm1884_vm0, %v1872_v55, %v1887_v29  ;;  %v1893_v44 = vsel %vm1883_vm3, %v1890_v20, %v1892_v28  ;;  %v1896_v54 = vsel %vm1884_vm0, %v1878_v1, %v1895_v59  ;;  %v2172_v14 = vadd.s32 1, %v7494_v37 }
 0x221   :  { %v7488_v41 = vadd.s32 4294967294, %v2022_v3  ;;  %v1897_v58 = vsel %vm1883_vm3, %v1894_v25, %v1896_v54  ;;  %v9697_v45 = vmul.u32.u64.low %v1898_v22, %v1893_v44  ;;  %v9698_v33 = vmul.u32.u64.high %v1898_v22, %v1893_v44, %v9697_v45 }
 0x222   :  { %v1830_v63 = vxor.u32 2147483648, %v1829_v40  ;;  %v9701_v8 = vmul.u32.u64.low %v1898_v22, %v1897_v58  ;;  %v9702_v27 = vmul.u32.u64.high %v1898_v22, %v1897_v58, %v9701_v8  ;;  %vm2173_vm1 = vcmp.gt.s32.totalorder %v2172_v14, 0 }
 0x223   :  { %v1717_v57 = vor.u32 %v1716_v35, %v1715_v4  ;;  %v1889_v16 = vsel %vm1883_vm3, %v1886_v39, %v1888_v10  ;;  %v12082_v55 = vand.u32 2147483647, %v9637_v21  ;;  %v2174_v5 = vsel %vm2173_vm1, %v2172_v14, 0 }
 0x224   :  { %8106 = vsinq.f32 %v9624_v23  ;;  %v1721_v1 = vor.u32 4788187, %v1720_v2  ;;  %vm7489_vm15 = vcmp.lt.s32.totalorder %v7488_v41, 0  ;;  %v2176_v37 = vand.u32 31, %v2174_v5 }
 0x225   :  { %v9708_v6 = vadd.s32 3, %v9652_v60  ;;  %v9711_v56 = vand.u32 3, %v9652_v60  ;;  %v9715_v8 = vsel %vm9685_vm2, 0, %v1729_v13  ;;  %vm1956_vm5 = vcmp.lt.s32.totalorder %v9423_v61, 0 }
 0x226   :  { %v1908_v4 = vadd.s32 1, %v9698_v33  ;;  %v9721_v23 = vsel %vm1748_vm6, %v1830_v63, %v1829_v40  ;;  %v1905_v35 = vmul.u32 %v1898_v22, %v1889_v16  ;;  %vm1907_vm7 = vc.u32 %v9702_v27, %v9697_v45 }
 0x227   :  { %12265 = vst [vmem:[#allocation54_spill] sm:$0xff] %v9711_v56  ;;  %v2177_v30 = vsub.s32 32, %v2176_v37  ;;  %v1724_v2 = vcvt.s32.f32 %v1717_v57  ;;  %v9725_v60 = vsel %vm7489_vm15, 0, %v7488_v41  ;;  %v2169_v13 = vand.u32 8388607, %v12082_v55 }
 0x228   :  { %v1909_v29 = vsel %vm1907_vm7, %v1908_v4, %v9698_v33  ;;  %v1722_v20 = vand.u32 2147483647, %v1721_v1  ;;  %v2040_v22 = vsub.s32 4, %v9658_v47  ;;  %v2179_v3 = vshll.u32 %v12195_v12, %v2176_v37 }
 0x229   :  { %v1910_v38 = vadd.s32 %v1909_v29, %v1905_v35  ;;  %v2180_v25 = vshrl.u32 %v12183_v0, %v2177_v30  ;;  %v2183_v40 = vshrl.u32 %v12184_v11, %v2177_v30  ;;  %v2182_v39 = vshll.u32 %v12183_v0, %v2176_v37 }
 0x22a   :  { %v2186_v28 = vshrl.u32 %v12185_v50, %v2177_v30  ;;  %v2030_v59 = vsub.s32 4294967266, %v9725_v60  ;;  %v2175_v44 = vshrl.u32 %v2174_v5, 5  ;;  %v2185_v54 = vshll.u32 %v12184_v11, %v2176_v37 }
 0x22b   :  { %v1911_v10 = vadd.s32 536870912, %v1910_v38  ;;  %v2181_v14 = vor.u32 %v2180_v25, %v2179_v3  ;;  %v2184_v41 = vor.u32 %v2183_v40, %v2182_v39  ;;  %v2188_v58 = vshll.u32 %v12185_v50, %v2176_v37 }
 0x22c   :  { %v2189_v33 = vshrl.u32 %v12203_v19, %v2177_v30  ;;  %v1725_v63 = vmul.f32 %v1724_v2, %v1722_v20  ;;  %v2010_v57 = vadd.s32 %v9597_v26, %v9608_v34  ;;  %v2192_v1 = vshrl.u32 %v12204_v31, %v2177_v30 }
 0x22d   :  { %v9742_v16 = vshrl.u32 %v1911_v10, 30  ;;  %v2170_v4 = vor.u32 8388608, %v2169_v13  ;;  %v2187_v35 = vor.u32 %v2186_v28, %v2185_v54  ;;  %v2191_v5 = vshll.u32 %v12203_v19, %v2176_v37 }
 0x22e   :  { %v2190_v29 = vor.u32 %v2189_v33, %v2188_v58  ;;  %v2031_v55 = vadd.s32 127, %v2030_v59  ;;  %v2041_v25 = vsel %vm1956_vm5, %v2040_v22, %v9658_v47  ;;  %vm2194_vm6 = vcmp.lt.s32.totalorder %v2175_v44, 1  ;;  %v9761_v22 = vpop.f32.mrf.mxu0 }
 0x22f   :  { %v1913_v40 = vshll.u32 %v9742_v16, 30  ;;  %v2026_v2 = vsub.s32 32, %v9725_v60  ;;  %v2193_v26 = vor.u32 %v2192_v1, %v2191_v5  ;;  %vm2197_vm11 = vcmp.lt.s32.totalorder %v2175_v44, 4  ;;  %12269 = vst [vmem:[#allocation55_spill] sm:$0xff] %v9761_v22 }
 0x230   :  { %v2202_v34 = vsel %vm2194_vm6, %v2181_v14, %v2184_v41  ;;  %v1726_v20 = vxor.u32 2147483648, %v1725_v63  ;;  %v12266_v13 = vand.u32 2147483647, %v9423_v61  ;;  %vm2196_vm10 = vcmp.lt.s32.totalorder %v2175_v44, 3 }
 0x231   :  { %v9758_v37 = vsub.s32 %v1910_v38, %v1913_v40  ;;  %v2203_v47 = vsel %vm2197_vm11, %v2190_v29, 920167782  ;;  %v9763_v39 = vpop.eup %8106  ;;  %vm2195_vm14 = vcmp.lt.s32.totalorder %v2175_v44, 2  ;;  %v2199_v28 = vsel %vm2197_vm11, %v2187_v35, 2102212464 }
 0x232   :  { %vm9754_vm8 = vcmp.le.f32.partialorder %v12266_v13, 0.7853982  ;;  %v2204_v59 = vsel %vm2196_vm10, %v2187_v35, %v2203_v47  ;;  %v2210_v10 = vshll.u32 %v2170_v4, 8  ;;  %v2032_v54 = vshll.u32 %v2031_v55, 23 }
 0x233   :  { %v1916_v58 = vsub.s32 0, %v9758_v37  ;;  %v2178_v33 = vshrl.u32 %v12195_v12, %v2177_v30  ;;  %v2205_v38 = vsel %vm2195_vm14, %v2202_v34, %v2204_v59  ;;  %v2028_v1 = vshrl.u32 %v2010_v57, %v2026_v2 }
 0x234   :  { %v2206_v5 = vsel %vm2194_vm6, %v2184_v41, %v2187_v35  ;;  %v2207_v40 = vsel %vm2197_vm11, %v2193_v26, 1326507024  ;;  %v2061_v13 = vand.u32 2139095040, %v9761_v22  ;;  %v2200_v4 = vsel %vm2196_vm10, %v2184_v41, %v2199_v28 }
 0x235   :  { %v7483_v56 = vmin.u32 %v1916_v58, %v9758_v37  ;;  %v2198_v52 = vsel %vm2194_vm6, %v2178_v33, %v2181_v14  ;;  %v2208_v55 = vsel %vm2196_vm10, %v2190_v29, %v2207_v40  ;;  %v2027_v30 = vshll.u32 %v9673_v32, %v9725_v60 }
 0x236   :  { %v2209_v34 = vsel %vm2195_vm14, %v2206_v5, %v2208_v55  ;;  %v9780_v57 = vmul.u32.u64.low %v2210_v10, %v2205_v38  ;;  %v9781_v2 = vmul.u32.u64.high %v2210_v10, %v2205_v38, %v9780_v57  ;;  %v2033_v35 = vor.u32 4788187, %v2032_v54 }
 0x237   :  { %v1918_v26 = vclz %v7483_v56  ;;  %v9784_v47 = vmul.u32.u64.low %v2210_v10, %v2209_v34  ;;  %v9785_v59 = vmul.u32.u64.high %v2210_v10, %v2209_v34, %v9784_v47  ;;  %v9788_v14 = vand.u32 3, %v9708_v6 }
 0x238   :  { %v2201_v41 = vsel %vm2195_vm14, %v2198_v52, %v2200_v4  ;;  %v12085_v29 = vand.u32 2147483647, %v9761_v22  ;;  %v2062_v28 = vshrl.u32 %v2061_v13, 23  ;;  %v1735_v32 = vadd.s32 3, %v9715_v8 }
 0x239   :  { %12270 = vst [vmem:[#allocation56_spill] sm:$0xff] %v9788_v14  ;;  %v9794_v60 = vand.u32 3, %v9715_v8  ;;  %v2029_v58 = vor.u32 %v2028_v1, %v2027_v30  ;;  %v7484_v33 = vadd.s32 4294967294, %v1918_v26  ;;  %v1834_v56 = vsel %vm9603_vm13, %v9263_v51, %v9721_v23  ;;  %v9808_v1 = vpop.f32.mrf.mxu0 }
 0x23a   :  { %v2043_v6 = vsel %vm9754_vm8, 0, %v2041_v25  ;;  %vm1852_vm12 = vcmp.lt.s32.totalorder %v9559_v18, 0  ;;  %v2220_v52 = vadd.s32 1, %v9781_v2  ;;  %v7490_v44 = vadd.s32 4294967169, %v2062_v28  ;;  %12272 = vst [vmem:[#allocation58_spill] sm:$0xff] %v9808_v1 }
 0x23b   :  { %12271 = vst [vmem:[#allocation57_spill] sm:$0xff] %v9794_v60  ;;  %v1727_v54 = vsel %vm1644_vm9, %v1726_v20, %v1725_v63  ;;  %v2034_v8 = vand.u32 2147483647, %v2033_v35  ;;  %v2217_v38 = vmul.u32 %v2210_v10, %v2201_v41  ;;  %vm2219_vm4 = vc.u32 %v9785_v59, %v9780_v57 }
 0x23c   :  { %vm7485_vm3 = vcmp.lt.s32.totalorder %v7484_v33, 0  ;;  %v2221_v9 = vsel %vm2219_vm4, %v2220_v52, %v9781_v2  ;;  %v2065_v23 = vand.u32 8388607, %v12085_v29  ;;  %v2068_v25 = vadd.s32 1, %v7490_v44 }
 0x23d   :  { %8108 = vcosq.f32 %v1834_v56  ;;  %v2036_v5 = vcvt.s32.f32 %v2029_v58  ;;  %v2047_v40 = vadd.s32 3, %v2043_v6  ;;  %v2222_v13 = vadd.s32 %v2221_v9, %v2217_v38 }
 0x23e   :  { %v9816_v63 = vsel %vm9685_vm2, %v9347_v17, %v1727_v54  ;;  %v1936_v20 = vsub.s32 4, %v9742_v16  ;;  %vm2069_vm13 = vcmp.gt.s32.totalorder %v2068_v25, 0  ;;  %v2373_v10 = vand.u32 2139095040, %v9808_v1 }
 0x23f   :  { %v9820_v4 = vmul.f32 %v2036_v5, %v2034_v8  ;;  %v9822_v55 = vsel %vm7485_vm3, 0, %v7484_v33  ;;  %v2223_v30 = vadd.s32 536870912, %v2222_v13  ;;  %v2070_v34 = vsel %vm2069_vm13, %v2068_v25, 0 }
 0x240   :  { %8110 = vsinq.f32 %v1834_v56  ;;  %v9824_v2 = vand.u32 3, %v1735_v32  ;;  %v2066_v35 = vor.u32 8388608, %v2065_v23  ;;  %v2072_v26 = vand.u32 31, %v2070_v34 }
 0x241   :  { %8112 = vcosq.f32 %v9816_v63  ;;  %v9827_v48 = vand.u32 3, %v2047_v40  ;;  %v9829_v47 = vand.u32 3, %v2043_v6  ;;  %v9831_v41 = vshrl.u32 %v2223_v30, 30 }
 0x242   :  { %12273 = vst [vmem:[#allocation59_spill] sm:$0xff] %v9824_v2  ;;  %v1906_v28 = vadd.s32 %v9697_v45, %v9702_v27  ;;  %v1926_v58 = vsub.s32 4294967266, %v9822_v55  ;;  %v2073_v33 = vsub.s32 32, %v2072_v26  ;;  %v2374_v52 = vshrl.u32 %v2373_v10, 23 }
 0x243   :  { %12274 = vst [vmem:[#allocation60_spill] sm:$0xff] %v9827_v48  ;;  %12275 = vst [vmem:[#allocation61_spill] sm:$0xff] %v9829_v47  ;;  %v9840_v56 = vsel %vm1852_vm12, %v1936_v20, %v9742_v16  ;;  %v2225_v44 = vshll.u32 %v9831_v41, 30  ;;  %v9847_v45 = vshll.u32 %v2066_v35, 8  ;;  %v1922_v38 = vsub.s32 32, %v9822_v55 }
 0x244   :  { %v2076_v54 = vshrl.u32 %v12183_v0, %v2073_v33  ;;  %v2079_v8 = vshrl.u32 %v12184_v11, %v2073_v33  ;;  %v2082_v27 = vshrl.u32 %v12185_v50, %v2073_v33  ;;  %v2075_v23 = vshll.u32 %v12195_v12, %v2072_v26 }
 0x245   :  { %v9850_v9 = vsub.s32 %v2222_v13, %v2225_v44  ;;  %v2081_v16 = vshll.u32 %v12184_v11, %v2072_v26  ;;  %v1927_v25 = vadd.s32 127, %v1926_v58  ;;  %v2071_v5 = vshrl.u32 %v2070_v34, 5 }
 0x246   :  { %v2078_v40 = vshll.u32 %v12183_v0, %v2072_v26  ;;  %v7502_v20 = vadd.s32 4294967169, %v2374_v52  ;;  %v2077_v30 = vor.u32 %v2076_v54, %v2075_v23  ;;  %v2084_v35 = vshll.u32 %v12185_v50, %v2072_v26 }
 0x247   :  { %v2228_v10 = vsub.s32 0, %v9850_v9  ;;  %v2083_v29 = vor.u32 %v2082_v27, %v2081_v16  ;;  %v2085_v6 = vshrl.u32 %v12203_v19, %v2073_v33  ;;  %v2087_v13 = vshll.u32 %v12203_v19, %v2072_v26 }
 0x248   :  { %v2080_v32 = vor.u32 %v2079_v8, %v2078_v40  ;;  %v2088_v44 = vshrl.u32 %v12204_v31, %v2073_v33  ;;  %v1923_v58 = vshll.u32 %v9758_v37, %v9822_v55  ;;  %v1924_v34 = vshrl.u32 %v1906_v28, %v1922_v38 }
 0x249   :  { %v7495_v47 = vmin.u32 %v2228_v10, %v9850_v9  ;;  %v12276_v52 = vand.u32 2147483647, %v9808_v1  ;;  %v12278_v27 = vand.u32 2147483647, %v9559_v18  ;;  %v2086_v26 = vor.u32 %v2085_v6, %v2084_v35 }
 0x24a   :  { %v9865_v54 = vpop.eup %8108  ;;  %v2089_v23 = vor.u32 %v2088_v44, %v2087_v13  ;;  %vm2093_vm2 = vcmp.lt.s32.totalorder %v2071_v5, 4  ;;  %v2380_v16 = vadd.s32 1, %v7502_v20  ;;  %v2074_v37 = vshrl.u32 %v12195_v12, %v2073_v33 }
 0x24b   :  { %v2377_v48 = vand.u32 8388607, %v12276_v52  ;;  %12277 = vst [vmem:[#allocation62_spill] sm:$0xff] %v9865_v54  ;;  %vm9869_vm9 = vcmp.le.f32.partialorder %v12278_v27, 0.7853982  ;;  %v2230_v40 = vclz %v7495_v47  ;;  %vm2090_vm0 = vcmp.lt.s32.totalorder %v2071_v5, 1 }
 0x24c   :  { %v2095_v55 = vsel %vm2093_vm2, %v2083_v29, 2102212464  ;;  %v1928_v28 = vshll.u32 %v1927_v25, 23  ;;  %vm2092_vm1 = vcmp.lt.s32.totalorder %v2071_v5, 3  ;;  %v2098_v38 = vsel %vm2090_vm0, %v2077_v30, %v2080_v32 }
 0x24d   :  { %v2099_v10 = vsel %vm2093_vm2, %v2086_v26, 920167782  ;;  %v9876_v52 = vpop.eup %8110  ;;  %v7496_v27 = vadd.s32 4294967294, %v2230_v40  ;;  %vm2091_vm15 = vcmp.lt.s32.totalorder %v2071_v5, 2  ;;  %v2094_v51 = vsel %vm2090_vm0, %v2074_v37, %v2077_v30 }
 0x24e   :  { %12281 = vst [vmem:[#allocation63_spill] sm:$0xff] %v9876_v52  ;;  %v2100_v6 = vsel %vm2092_vm1, %v2083_v29, %v2099_v10  ;;  %v9878_v35 = vpop.eup %8112  ;;  %v2096_v20 = vsel %vm2092_vm1, %v2080_v32, %v2095_v55  ;;  %v2102_v33 = vsel %vm2090_vm0, %v2080_v32, %v2083_v29  ;;  %v2103_v13 = vsel %vm2093_vm2, %v2089_v23, 1326507024  ;;  %v9891_v32 = vpop.f32.mrf.mxu0 }
 0x24f   :  { %12282 = vst [vmem:[#allocation64_spill] sm:$0xff] %v9878_v35  ;;  %v2101_v47 = vsel %vm2091_vm15, %v2098_v38, %v2100_v6  ;;  %vm7497_vm7 = vcmp.lt.s32.totalorder %v7496_v27, 0  ;;  %v2104_v25 = vsel %vm2092_vm1, %v2086_v26, %v2103_v13  ;;  %v2378_v40 = vor.u32 8388608, %v2377_v48  ;;  %12283 = vst [vmem:[#allocation65_spill] sm:$0xff] %v9891_v32 }
 0x250   :  { %v9883_v44 = vmul.u32.u64.low %v9847_v45, %v2101_v47  ;;  %v9884_v54 = vmul.u32.u64.high %v9847_v45, %v2101_v47, %v9883_v44  ;;  %v9887_v52 = vsel %vm7497_vm7, 0, %v7496_v27  ;;  %v2105_v30 = vsel %vm2091_vm15, %v2102_v33, %v2104_v25 }
 0x251   :  { %vm2381_vm6 = vcmp.gt.s32.totalorder %v2380_v16, 0  ;;  %v1925_v37 = vor.u32 %v1924_v34, %v1923_v58  ;;  %v1929_v55 = vor.u32 4788187, %v1928_v28  ;;  %v2097_v38 = vsel %vm2091_vm15, %v2094_v51, %v2096_v20 }
 0x252   :  { %v2382_v29 = vsel %vm2381_vm6, %v2380_v16, 0  ;;  %v2238_v26 = vsub.s32 4294967266, %v9887_v52  ;;  %v9895_v23 = vmul.u32.u64.low %v9847_v45, %v2105_v30  ;;  %v9896_v10 = vmul.u32.u64.high %v9847_v45, %v2105_v30, %v9895_v23 }
 0x253   :  { %v2384_v6 = vand.u32 31, %v2382_v29  ;;  %8114 = vsinq.f32 %v9816_v63  ;;  %v12284_v48 = vxor.u32 2147483648, %v9820_v4  ;;  %v9909_v51 = vsel %vm9869_vm9, 0, %v9840_v56 }
 0x254   :  { %v2116_v5 = vadd.s32 1, %v9884_v54  ;;  %v2218_v34 = vadd.s32 %v9780_v57, %v9785_v59  ;;  %v9914_v28 = vshll.u32 %v2378_v40, 8  ;;  %v2269_v63 = vand.u32 2139095040, %v9891_v32 }
 0x255   :  { %v9904_v58 = vsel %vm1956_vm5, %v12284_v48, %v9820_v4  ;;  %v2385_v16 = vsub.s32 32, %v2384_v6  ;;  %v1930_v27 = vand.u32 2147483647, %v1929_v55  ;;  %v1932_v20 = vcvt.s32.f32 %v1925_v37 }
 0x256   :  { %v2113_v4 = vmul.u32 %v9847_v45, %v2097_v38  ;;  %v9918_v47 = vshrl.u32 %v2382_v29, 5  ;;  %v2239_v33 = vadd.s32 127, %v2238_v26  ;;  %vm2115_vm5 = vc.u32 %v9896_v10, %v9883_v44 }
 0x257   :  { %v2387_v56 = vshll.u32 %v12195_v12, %v2384_v6  ;;  %v2388_v13 = vshrl.u32 %v12183_v0, %v2385_v16  ;;  %v2117_v57 = vsel %vm2115_vm5, %v2116_v5, %v9884_v54  ;;  %v2390_v59 = vshll.u32 %v12183_v0, %v2384_v6 }
 0x258   :  { %v2391_v25 = vshrl.u32 %v12184_v11, %v2385_v16  ;;  %v2393_v30 = vshll.u32 %v12184_v11, %v2384_v6  ;;  %vm2164_vm11 = vcmp.lt.s32.totalorder %v9637_v21, 0  ;;  %v2118_v45 = vadd.s32 %v2117_v57, %v2113_v4 }
 0x259   :  { %v2394_v40 = vshrl.u32 %v12185_v50, %v2385_v16  ;;  %v2396_v37 = vshll.u32 %v12185_v50, %v2384_v6  ;;  %v2397_v55 = vshrl.u32 %v12203_v19, %v2385_v16  ;;  %v2389_v38 = vor.u32 %v2388_v13, %v2387_v56 }
 0x25a   :  { %v2392_v29 = vor.u32 %v2391_v25, %v2390_v59  ;;  %v2399_v26 = vshll.u32 %v12203_v19, %v2384_v6  ;;  %v2400_v54 = vshrl.u32 %v12204_v31, %v2385_v16  ;;  %v2234_v23 = vsub.s32 32, %v9887_v52 }
 0x25b   :  { %v2119_v48 = vadd.s32 536870912, %v2118_v45  ;;  %v2395_v5 = vor.u32 %v2394_v40, %v2393_v30  ;;  %v2398_v14 = vor.u32 %v2397_v55, %v2396_v37  ;;  %v1933_v17 = vmul.f32 %v1932_v20, %v1930_v27 }
 0x25c   :  { %v2235_v4 = vshll.u32 %v9850_v9, %v9887_v52  ;;  %v2248_v57 = vsub.s32 4, %v9831_v41  ;;  %v2401_v60 = vor.u32 %v2400_v54, %v2399_v26  ;;  %v2240_v35 = vshll.u32 %v2239_v33, 23 }
 0x25d   :  { %v9938_v2 = vshrl.u32 %v2119_v48, 30  ;;  %vm2402_vm10 = vcmp.lt.s32.totalorder %v9918_v47, 1  ;;  %vm2405_vm14 = vcmp.lt.s32.totalorder %v9918_v47, 4  ;;  %v12285_v6 = vand.u32 2147483647, %v9637_v21 }
 0x25e   :  { %vm2404_vm3 = vcmp.lt.s32.totalorder %v9918_v47, 3  ;;  %v2410_v9 = vsel %vm2402_vm10, %v2389_v38, %v2392_v29  ;;  %v2411_v52 = vsel %vm2405_vm14, %v2398_v14, 920167782  ;;  %v2270_v27 = vshrl.u32 %v2269_v63, 23 }
 0x25f   :  { %vm9944_vm4 = vcmp.le.f32.partialorder %v12285_v6, 0.7853982  ;;  %v2236_v20 = vshrl.u32 %v2218_v34, %v2234_v23  ;;  %v2121_v33 = vshll.u32 %v9938_v2, 30  ;;  %v2412_v13 = vsel %vm2404_vm3, %v2395_v5, %v2411_v52 }
 0x260   :  { %v2414_v59 = vsel %vm2402_vm10, %v2392_v29, %v2395_v5  ;;  %v2386_v25 = vshrl.u32 %v12195_v12, %v2385_v16  ;;  %vm2403_vm13 = vcmp.lt.s32.totalorder %v9918_v47, 2  ;;  %v2407_v30 = vsel %vm2405_vm14, %v2395_v5, 2102212464  ;;  %v9958_v37 = vpop.eup %8114 }
 0x261   :  { %v2415_v40 = vsel %vm2405_vm14, %v2401_v60, 1326507024  ;;  %v2241_v55 = vor.u32 4788187, %v2240_v35  ;;  %v9960_v26 = vsub.s32 %v2118_v45, %v2121_v33  ;;  %v2413_v34 = vsel %vm2403_vm13, %v2410_v9, %v2412_v13 }
 0x262   :  { %v2416_v63 = vsel %vm2404_vm3, %v2398_v14, %v2415_v40  ;;  %v1934_v54 = vxor.u32 2147483648, %v1933_v17  ;;  %v2249_v16 = vsel %vm2164_vm11, %v2248_v57, %v9831_v41  ;;  %v7498_v60 = vadd.s32 4294967169, %v2270_v27 }
 0x263   :  { %v2417_v23 = vsel %vm2403_vm13, %v2414_v59, %v2416_v63  ;;  %v2237_v48 = vor.u32 %v2236_v20, %v2235_v4  ;;  %v2124_v35 = vsub.s32 0, %v9960_v26  ;;  %v2406_v45 = vsel %vm2402_vm10, %v2386_v25, %v2389_v38 }
 0x264   :  { %v2408_v5 = vsel %vm2404_vm3, %v2392_v29, %v2407_v30  ;;  %v9977_v14 = vmul.u32.u64.low %v9914_v28, %v2417_v23  ;;  %v9978_v6 = vmul.u32.u64.high %v9914_v28, %v2417_v23, %v9977_v14  ;;  %v1943_v57 = vadd.s32 3, %v9909_v51  ;;  %v10012_v23 = vpop.f32.mrf.mxu0 }
 0x265   :  { %v9981_v9 = vmul.u32.u64.low %v9914_v28, %v2413_v34  ;;  %v9982_v41 = vmul.u32.u64.high %v9914_v28, %v2413_v34, %v9981_v9  ;;  %v2242_v4 = vand.u32 2147483647, %v2241_v55  ;;  %v7491_v52 = vmin.u32 %v2124_v35, %v9960_v26  ;;  %12290 = vst [vmem:[#allocation68_spill] sm:$0xff] %v10012_v23 }
 0x266   :  { %v2276_v27 = vadd.s32 1, %v7498_v60  ;;  %v2042_v38 = vsel %vm9754_vm8, %v9423_v61, %v9904_v58  ;;  %v9992_v29 = vand.u32 3, %v9909_v51  ;;  %v2409_v20 = vsel %vm2403_vm13, %v2406_v45, %v2408_v5 }
 0x267   :  { %v12096_v33 = vand.u32 2147483647, %v9891_v32  ;;  %v2244_v13 = vcvt.s32.f32 %v2237_v48  ;;  %v2251_v59 = vsel %vm9944_vm4, 0, %v2249_v16  ;;  %v2126_v25 = vclz %v7491_v52 }
 0x268   :  { %12288 = vst [vmem:[#allocation66_spill] sm:$0xff] %v9992_v29  ;;  %vm2277_vm2 = vcmp.gt.s32.totalorder %v2276_v27, 0  ;;  %v1935_v30 = vsel %vm1852_vm12, %v1934_v54, %v1933_v17  ;;  %vm2427_vm8 = vc.u32 %v9978_v6, %v9981_v9  ;;  %v2428_v3 = vadd.s32 1, %v9982_v41 }
 0x269   :  { %v2278_v58 = vsel %vm2277_vm2, %v2276_v27, 0  ;;  %v10004_v51 = vmul.f32 %v2244_v13, %v2242_v4  ;;  %v7492_v47 = vadd.s32 4294967294, %v2126_v25  ;;  %v2425_v40 = vmul.u32 %v9914_v28, %v2409_v20 }
 0x26a   :  { %v2280_v55 = vand.u32 31, %v2278_v58  ;;  %8116 = vcosq.f32 %v2042_v38  ;;  %v10007_v34 = vand.u32 3, %v1943_v57  ;;  %v2429_v63 = vsel %vm2427_vm8, %v2428_v3, %v9982_v41 }
 0x26b   :  { %v2273_v17 = vand.u32 8388607, %v12096_v33  ;;  %8118 = vsinq.f32 %v2042_v38  ;;  %vm7493_vm12 = vcmp.lt.s32.totalorder %v7492_v47, 0  ;;  %v2430_v54 = vadd.s32 %v2429_v63, %v2425_v40 }
 0x26c   :  { %12289 = vst [vmem:[#allocation67_spill] sm:$0xff] %v10007_v34  ;;  %v2281_v16 = vsub.s32 32, %v2280_v55  ;;  %v10017_v60 = vsel %vm9869_vm9, %v9559_v18, %v1935_v30  ;;  %v10019_v28 = vadd.s32 3, %v2251_v59  ;;  %v10021_v48 = vand.u32 3, %v2251_v59 }
 0x26d   :  { %v2129_v35 = vsel %vm7493_vm12, 0, %v7492_v47  ;;  %v2114_v5 = vadd.s32 %v9883_v44, %v9896_v10  ;;  %v2431_v41 = vadd.s32 536870912, %v2430_v54  ;;  %v2274_v57 = vor.u32 8388608, %v2273_v17 }
 0x26e   :  { %12291 = vst [vmem:[#allocation69_spill] sm:$0xff] %v10021_v48  ;;  %v2134_v14 = vsub.s32 4294967266, %v2129_v35  ;;  %v2284_v4 = vshrl.u32 %v12183_v0, %v2281_v16  ;;  %v2287_v52 = vshrl.u32 %v12184_v11, %v2281_v16  ;;  %v2581_v8 = vand.u32 2139095040, %v10012_v23 }
 0x26f   :  { %v10029_v27 = vshrl.u32 %v2431_v41, 30  ;;  %v2283_v38 = vshll.u32 %v12195_v12, %v2280_v55  ;;  %v2290_v20 = vshrl.u32 %v12185_v50, %v2281_v16  ;;  %v2293_v13 = vshrl.u32 %v12203_v19, %v2281_v16 }
 0x270   :  { %v2135_v59 = vadd.s32 127, %v2134_v14  ;;  %v2279_v25 = vshrl.u32 %v2278_v58, 5  ;;  %v2286_v44 = vshll.u32 %v12183_v0, %v2280_v55  ;;  %v2292_v10 = vshll.u32 %v12185_v50, %v2280_v55 }
 0x271   :  { %v2130_v30 = vsub.s32 32, %v2129_v35  ;;  %v2433_v3 = vshll.u32 %v10029_v27, 30  ;;  %v2285_v47 = vor.u32 %v2284_v4, %v2283_v38  ;;  %v2289_v40 = vshll.u32 %v12184_v11, %v2280_v55 }
 0x272   :  { %v2288_v63 = vor.u32 %v2287_v52, %v2286_v44  ;;  %v2294_v17 = vor.u32 %v2293_v13, %v2292_v10  ;;  %v2295_v41 = vshll.u32 %v12203_v19, %v2280_v55  ;;  %v2296_v33 = vshrl.u32 %v12204_v31, %v2281_v16 }
 0x273   :  { %vm2060_vm9 = vcmp.lt.s32.totalorder %v9761_v22, 0  ;;  %v2144_v58 = vsub.s32 4, %v9938_v2  ;;  %v10042_v14 = vsub.s32 %v2430_v54, %v2433_v3  ;;  %v2291_v45 = vor.u32 %v2290_v20, %v2289_v40 }
 0x274   :  { %v2136_v61 = vshll.u32 %v2135_v59, 23  ;;  %v2297_v18 = vor.u32 %v2296_v33, %v2295_v41  ;;  %v2314_v4 = vshll.u32 %v2274_v57, 8  ;;  %v2582_v38 = vshrl.u32 %v2581_v8, 23 }
 0x275   :  { %v2131_v52 = vshll.u32 %v9960_v26, %v2129_v35  ;;  %v2436_v13 = vsub.s32 0, %v10042_v14  ;;  %vm2298_vm0 = vcmp.lt.s32.totalorder %v2279_v25, 1  ;;  %vm2301_vm1 = vcmp.lt.s32.totalorder %v2279_v25, 4 }
 0x276   :  { %v12292_v55 = vand.u32 2147483647, %v9761_v22  ;;  %v2132_v54 = vshrl.u32 %v2114_v5, %v2130_v30  ;;  %v2282_v20 = vshrl.u32 %v12195_v12, %v2281_v16  ;;  %v2306_v59 = vsel %vm2298_vm0, %v2285_v47, %v2288_v63 }
 0x277   :  { %v2307_v33 = vsel %vm2301_vm1, %v2294_v17, 920167782  ;;  %v10055_v57 = vpop.eup %8116  ;;  %v7503_v26 = vmin.u32 %v2436_v13, %v10042_v14  ;;  %vm2299_vm7 = vcmp.lt.s32.totalorder %v2279_v25, 2  ;;  %vm2300_vm6 = vcmp.lt.s32.totalorder %v2279_v25, 3  ;;  %v10096_v25 = vpop.f32.mrf.mxu0 }
 0x278   :  { %vm10049_vm15 = vcmp.le.f32.partialorder %v12292_v55, 0.7853982  ;;  %12295 = vst [vmem:[#allocation70_spill] sm:$0xff] %v10055_v57  ;;  %v2303_v35 = vsel %vm2301_vm1, %v2291_v45, 2102212464  ;;  %v10058_v8 = vpop.eup %8118  ;;  %v2308_v3 = vsel %vm2300_vm6, %v2291_v45, %v2307_v33  ;;  %v2310_v40 = vsel %vm2298_vm0, %v2288_v63, %v2291_v45  ;;  %12300 = vst [vmem:[#allocation73_spill] sm:$0xff] %v10096_v25 }
 0x279   :  { %12296 = vst [vmem:[#allocation71_spill] sm:$0xff] %v10058_v8  ;;  %v2137_v10 = vor.u32 4788187, %v2136_v61  ;;  %v2311_v41 = vsel %vm2301_vm1, %v2297_v18, 1326507024  ;;  %v2438_v5 = vclz %v7503_v26  ;;  %v2302_v16 = vsel %vm2298_vm0, %v2282_v20, %v2285_v47 }
 0x27a   :  { %v2309_v30 = vsel %vm2299_vm7, %v2306_v59, %v2308_v3  ;;  %v2312_v55 = vsel %vm2300_vm6, %v2294_v17, %v2311_v41  ;;  %v2304_v48 = vsel %vm2300_vm6, %v2288_v63, %v2303_v35  ;;  %v2133_v34 = vor.u32 %v2132_v54, %v2131_v52 }
 0x27b   :  { %v2313_v57 = vsel %vm2299_vm7, %v2310_v40, %v2312_v55  ;;  %v10064_v13 = vmul.u32.u64.low %v2314_v4, %v2309_v30  ;;  %v10065_v29 = vmul.u32.u64.high %v2314_v4, %v2309_v30, %v10064_v13  ;;  %v7504_v8 = vadd.s32 4294967294, %v2438_v5 }
 0x27c   :  { %v10068_v61 = vmul.u32.u64.low %v2314_v4, %v2313_v57  ;;  %v10069_v33 = vmul.u32.u64.high %v2314_v4, %v2313_v57, %v10068_v61  ;;  %v12297_v18 = vxor.u32 2147483648, %v10004_v51  ;;  %v10077_v47 = vand.u32 3, %v10019_v28 }
 0x27d   :  { %v2145_v63 = vsel %vm2060_vm9, %v2144_v58, %v9938_v2  ;;  %vm2372_vm5 = vcmp.lt.s32.totalorder %v9808_v1, 0  ;;  %v7510_v17 = vadd.s32 4294967169, %v2582_v38  ;;  %8120 = vcosq.f32 %v10017_v60 }
 0x27e   :  { %v2247_v45 = vsel %vm2164_vm11, %v12297_v18, %v10004_v51  ;;  %12298 = vst [vmem:[#allocation72_spill] sm:$0xff] %v10077_v47  ;;  %v2138_v52 = vand.u32 2147483647, %v2137_v10  ;;  %vm7505_vm10 = vcmp.lt.s32.totalorder %v7504_v8, 0  ;;  %v2305_v54 = vsel %vm2299_vm7, %v2302_v16, %v2304_v48 }
 0x27f   :  { %8122 = vsinq.f32 %v10017_v60  ;;  %v10086_v20 = vsel %vm7505_vm10, 0, %v7504_v8  ;;  %v2324_v51 = vadd.s32 1, %v10065_v29  ;;  %v2588_v28 = vadd.s32 1, %v7510_v17 }
 0x280   :  { %v2250_v2 = vsel %vm9944_vm4, %v9637_v21, %v2247_v45  ;;  %v2140_v58 = vcvt.s32.f32 %v2133_v34  ;;  %v2147_v38 = vsel %vm10049_vm15, 0, %v2145_v63  ;;  %v12299_v59 = vand.u32 2147483647, %v10012_v23 }
 0x281   :  { %v2456_v60 = vsub.s32 4, %v10029_v27  ;;  %v2321_v48 = vmul.u32 %v2314_v4, %v2305_v54  ;;  %vm2323_vm11 = vc.u32 %v10069_v33, %v10064_v13  ;;  %vm2589_vm14 = vcmp.gt.s32.totalorder %v2588_v28, 0 }
 0x282   :  { %v2585_v57 = vand.u32 8388607, %v12299_v59  ;;  %v2141_v26 = vmul.f32 %v2140_v58, %v2138_v52  ;;  %v2446_v56 = vsub.s32 4294967266, %v10086_v20  ;;  %v2325_v34 = vsel %vm2323_vm11, %v2324_v51, %v10065_v29 }
 0x283   :  { %v2590_v35 = vsel %vm2589_vm14, %v2588_v28, 0  ;;  %8124 = vcosq.f32 %v2250_v2  ;;  %v12301_v8 = vand.u32 2147483647, %v9808_v1  ;;  %v2326_v3 = vadd.s32 %v2325_v34, %v2321_v48 }
 0x284   :  { %v2592_v40 = vand.u32 31, %v2590_v35  ;;  %v2477_v4 = vand.u32 2139095040, %v10096_v25  ;;  %8126 = vsinq.f32 %v2250_v2  ;;  %v10110_v41 = vadd.s32 3, %v2147_v38 }
 0x285   :  { %vm10105_vm4 = vcmp.le.f32.partialorder %v12301_v8, 0.7853982  ;;  %v10112_v5 = vand.u32 3, %v2147_v38  ;;  %v2442_v16 = vsub.s32 32, %v10086_v20  ;;  %v2426_v29 = vadd.s32 %v9981_v9, %v9978_v6 }
 0x286   :  { %v2327_v30 = vadd.s32 536870912, %v2326_v3  ;;  %v2593_v55 = vsub.s32 32, %v2592_v40  ;;  %v2142_v18 = vxor.u32 2147483648, %v2141_v26  ;;  %v2447_v45 = vadd.s32 127, %v2446_v56 }
 0x287   :  { %12304 = vst [vmem:[#allocation74_spill] sm:$0xff] %v10112_v5  ;;  %v2457_v63 = vsel %vm2372_vm5, %v2456_v60, %v10029_v27  ;;  %v2586_v17 = vor.u32 8388608, %v2585_v57  ;;  %v2478_v28 = vshrl.u32 %v2477_v4, 23  ;;  %v2444_v2 = vshrl.u32 %v2426_v29, %v2442_v16 }
 0x288   :  { %v10121_v52 = vshrl.u32 %v2327_v30, 30  ;;  %v2596_v54 = vshrl.u32 %v12183_v0, %v2593_v55  ;;  %v2599_v51 = vshrl.u32 %v12184_v11, %v2593_v55  ;;  %v2591_v6 = vshrl.u32 %v2590_v35, 5 }
 0x289   :  { %v2602_v9 = vshrl.u32 %v12185_v50, %v2593_v55  ;;  %v2605_v58 = vshrl.u32 %v12203_v19, %v2593_v55  ;;  %v2595_v59 = vshll.u32 %v12195_v12, %v2592_v40  ;;  %v2598_v27 = vshll.u32 %v12183_v0, %v2592_v40 }
 0x28a   :  { %v2329_v38 = vshll.u32 %v10121_v52, 30  ;;  %v2601_v57 = vshll.u32 %v12184_v11, %v2592_v40  ;;  %v2448_v60 = vshll.u32 %v2447_v45, 23  ;;  %v2604_v48 = vshll.u32 %v12185_v50, %v2592_v40  ;;  %v10134_v35 = vpop.eup %8120 }
 0x28b   :  { %v2607_v56 = vshll.u32 %v12203_v19, %v2592_v40  ;;  %v2608_v34 = vshrl.u32 %v12204_v31, %v2593_v55  ;;  %12305 = vst [vmem:[#allocation75_spill] sm:$0xff] %v10134_v35  ;;  %v2597_v4 = vor.u32 %v2596_v54, %v2595_v59  ;;  %v2600_v16 = vor.u32 %v2599_v51, %v2598_v27 }
 0x28c   :  { %v10136_v8 = vsub.s32 %v2326_v3, %v2329_v38  ;;  %v2603_v29 = vor.u32 %v2602_v9, %v2601_v57  ;;  %v10138_v30 = vpop.eup %8122  ;;  %v2143_v61 = vsel %vm2060_vm9, %v2142_v18, %v2141_v26  ;;  %v2443_v45 = vshll.u32 %v10042_v14, %v10086_v20 }
 0x28d   :  { %v10146_v40 = vsel %vm10105_vm4, 0, %v2457_v63  ;;  %v2606_v21 = vor.u32 %v2605_v58, %v2604_v48  ;;  %v2609_v3 = vor.u32 %v2608_v34, %v2607_v56  ;;  %v2626_v38 = vshll.u32 %v2586_v17, 8 }
 0x28e   :  { %v2332_v47 = vsub.s32 0, %v10136_v8  ;;  %v7506_v54 = vadd.s32 4294967169, %v2478_v28  ;;  %v2445_v51 = vor.u32 %v2444_v2, %v2443_v45  ;;  %v2449_v9 = vor.u32 4788187, %v2448_v60 }
 0x28f   :  { %vm2610_vm3 = vcmp.lt.s32.totalorder %v2591_v6, 1  ;;  %vm2613_vm13 = vcmp.lt.s32.totalorder %v2591_v6, 4  ;;  %v2594_v26 = vshrl.u32 %v12195_v12, %v2593_v55  ;;  %vm2611_vm2 = vcmp.lt.s32.totalorder %v2591_v6, 2 }
 0x290   :  { %v7499_v59 = vmin.u32 %v2332_v47, %v10136_v8  ;;  %v2615_v18 = vsel %vm2613_vm13, %v2603_v29, 2102212464  ;;  %v2618_v14 = vsel %vm2610_vm3, %v2597_v4, %v2600_v16  ;;  %v10151_v20 = vpop.eup %8124  ;;  %vm2612_vm8 = vcmp.lt.s32.totalorder %v2591_v6, 3 }
 0x291   :  { %12306 = vst [vmem:[#allocation76_spill] sm:$0xff] %v10151_v20  ;;  %v2619_v63 = vsel %vm2613_vm13, %v2606_v21, 920167782  ;;  %v2622_v58 = vsel %vm2610_vm3, %v2600_v16, %v2603_v29  ;;  %v10153_v27 = vpop.eup %8126  ;;  %v2614_v28 = vsel %vm2610_vm3, %v2594_v26, %v2597_v4  ;;  %v2623_v57 = vsel %vm2613_vm13, %v2609_v3, 1326507024 }
 0x292   :  { %12307 = vst [vmem:[#allocation77_spill] sm:$0xff] %v10153_v27  ;;  %v2334_v17 = vclz %v7499_v59  ;;  %v2620_v2 = vsel %vm2612_vm8, %v2603_v29, %v2619_v63  ;;  %v2616_v60 = vsel %vm2612_vm8, %v2600_v16, %v2615_v18  ;;  %v2624_v47 = vsel %vm2612_vm8, %v2606_v21, %v2623_v57 }
 0x293   :  { %v2621_v48 = vsel %vm2611_vm2, %v2618_v14, %v2620_v2  ;;  %v2484_v56 = vadd.s32 1, %v7506_v54  ;;  %v2625_v34 = vsel %vm2611_vm2, %v2622_v58, %v2624_v47  ;;  %v10162_v5 = vand.u32 3, %v10110_v41 }
 0x294   :  { %v7500_v55 = vadd.s32 4294967294, %v2334_v17  ;;  %v10157_v45 = vmul.u32.u64.low %v2626_v38, %v2621_v48  ;;  %v10158_v20 = vmul.u32.u64.high %v2626_v38, %v2621_v48, %v10157_v45  ;;  %v10168_v4 = vadd.s32 3, %v10146_v40 }
 0x295   :  { %12308 = vst [vmem:[#allocation78_spill] sm:$0xff] %v10162_v5  ;;  %v10164_v27 = vmul.u32.u64.low %v2626_v38, %v2625_v34  ;;  %v10165_v59 = vmul.u32.u64.high %v2626_v38, %v2625_v34, %v10164_v27  ;;  %vm2485_vm12 = vcmp.gt.s32.totalorder %v2484_v56, 0  ;;  %v2617_v21 = vsel %vm2611_vm2, %v2614_v28, %v2616_v60 }
 0x296   :  { %vm7501_vm9 = vcmp.lt.s32.totalorder %v7500_v55, 0  ;;  %v2486_v16 = vsel %vm2485_vm12, %v2484_v56, 0  ;;  %v10174_v29 = vsel %vm10049_vm15, %v9761_v22, %v2143_v61  ;;  %v2450_v3 = vand.u32 2147483647, %v2449_v9 }
 0x297   :  { %v2337_v54 = vsel %vm7501_vm9, 0, %v7500_v55  ;;  %v2488_v41 = vand.u32 31, %v2486_v16  ;;  %v2452_v26 = vcvt.s32.f32 %v2445_v51  ;;  %vm2268_vm0 = vcmp.lt.s32.totalorder %v9891_v32, 0 }
 0x298   :  { %v2342_v18 = vsub.s32 4294967266, %v2337_v54  ;;  %v2636_v14 = vadd.s32 1, %v10158_v20  ;;  %v12309_v63 = vand.u32 2147483647, %v10096_v25  ;;  %v2338_v6 = vsub.s32 32, %v2337_v54 }
 0x299   :  { %v2633_v27 = vmul.u32 %v2626_v38, %v2617_v21  ;;  %vm2635_vm1 = vc.u32 %v10165_v59, %v10157_v45  ;;  %v2489_v44 = vsub.s32 32, %v2488_v41  ;;  %v2322_v61 = vadd.s32 %v10064_v13, %v10069_v33 }
 0x29a   :  { %v2481_v58 = vand.u32 8388607, %v12309_v63  ;;  %v2343_v9 = vadd.s32 127, %v2342_v18  ;;  %v2352_v51 = vsub.s32 4, %v10121_v52  ;;  %v2637_v17 = vsel %vm2635_vm1, %v2636_v14, %v10158_v20 }
 0x29b   :  { %v2453_v28 = vmul.f32 %v2452_v26, %v2450_v3  ;;  %v2638_v2 = vadd.s32 %v2637_v17, %v2633_v27  ;;  %v2492_v57 = vshrl.u32 %v12183_v0, %v2489_v44  ;;  %v2495_v60 = vshrl.u32 %v12184_v11, %v2489_v44 }
 0x29c   :  { %v2344_v48 = vshll.u32 %v2343_v9, 23  ;;  %v2491_v38 = vshll.u32 %v12195_v12, %v2488_v41  ;;  %v2494_v47 = vshll.u32 %v12183_v0, %v2488_v41  ;;  %v2498_v56 = vshrl.u32 %v12185_v50, %v2489_v44 }
 0x29d   :  { %v2340_v55 = vshrl.u32 %v2322_v61, %v2338_v6  ;;  %v2639_v13 = vadd.s32 536870912, %v2638_v2  ;;  %v2487_v33 = vshrl.u32 %v2486_v16, 5  ;;  %v2497_v34 = vshll.u32 %v12184_v11, %v2488_v41 }
 0x29e   :  { %v2493_v21 = vor.u32 %v2492_v57, %v2491_v38  ;;  %v2496_v20 = vor.u32 %v2495_v60, %v2494_v47  ;;  %v2500_v3 = vshll.u32 %v12185_v50, %v2488_v41  ;;  %v2501_v26 = vshrl.u32 %v12203_v19, %v2489_v44 }
 0x29f   :  { %v2339_v18 = vshll.u32 %v10136_v8, %v2337_v54  ;;  %v2640_v14 = vshrl.u32 %v2639_v13, 30  ;;  %v2482_v63 = vor.u32 8388608, %v2481_v58  ;;  %v2504_v27 = vshrl.u32 %v12204_v31, %v2489_v44 }
 0x2a0   :  { %v2345_v9 = vor.u32 4788187, %v2344_v48  ;;  %v2499_v17 = vor.u32 %v2498_v56, %v2497_v34  ;;  %v2502_v22 = vor.u32 %v2501_v26, %v2500_v3  ;;  %v2503_v6 = vshll.u32 %v12203_v19, %v2488_v41  ;;  %v10208_v48 = vpop.f32.mrf.mxu0 }
 0x2a1   :  { %v2454_v16 = vxor.u32 2147483648, %v2453_v28  ;;  %v2353_v61 = vsel %vm2268_vm0, %v2352_v51, %v10121_v52  ;;  %vm2580_vm15 = vcmp.lt.s32.totalorder %v10012_v23, 0  ;;  %v2641_v57 = vshll.u32 %v2640_v14, 30  ;;  %12313 = vst [vmem:[#allocation79_spill] sm:$0xff] %v10208_v48 }
 0x2a2   :  { %vm2506_vm7 = vcmp.lt.s32.totalorder %v2487_v33, 1  ;;  %v12310_v8 = vand.u32 2147483647, %v9891_v32  ;;  %v2341_v58 = vor.u32 %v2340_v55, %v2339_v18  ;;  %v2505_v60 = vor.u32 %v2504_v27, %v2503_v6 }
 0x2a3   :  { %vm2509_vm10 = vcmp.lt.s32.totalorder %v2487_v33, 4  ;;  %v2514_v41 = vsel %vm2506_vm7, %v2493_v21, %v2496_v20  ;;  %v10210_v38 = vsub.s32 %v2638_v2, %v2641_v57  ;;  %vm2508_vm11 = vcmp.lt.s32.totalorder %v2487_v33, 3 }
 0x2a4   :  { %vm10203_vm6 = vcmp.le.f32.partialorder %v12310_v8, 0.7853982  ;;  %v2515_v52 = vsel %vm2509_vm10, %v2502_v22, 920167782  ;;  %v2522_v51 = vshll.u32 %v2482_v63, 8  ;;  %vm2507_vm3 = vcmp.lt.s32.totalorder %v2487_v33, 2 }
 0x2a5   :  { %v2346_v47 = vand.u32 2147483647, %v2345_v9  ;;  %v12314_v56 = vand.u32 2147483647, %v10012_v23  ;;  %v2511_v55 = vsel %vm2509_vm10, %v2499_v17, 2102212464  ;;  %v2516_v34 = vsel %vm2508_vm11, %v2499_v17, %v2515_v52 }
 0x2a6   :  { %v2644_v3 = vsub.s32 0, %v10210_v38  ;;  %v2490_v2 = vshrl.u32 %v12195_v12, %v2489_v44  ;;  %v2517_v26 = vsel %vm2507_vm3, %v2514_v41, %v2516_v34  ;;  %v2789_v18 = vand.u32 2139095040, %v10208_v48 }
 0x2a7   :  { %vm10215_vm14 = vcmp.le.f32.partialorder %v12314_v56, 0.7853982  ;;  %v2348_v63 = vcvt.s32.f32 %v2341_v58  ;;  %v2664_v27 = vsub.s32 4, %v2640_v14  ;;  %v2518_v9 = vsel %vm2506_vm7, %v2496_v20, %v2499_v17 }
 0x2a8   :  { %v2519_v6 = vsel %vm2509_vm10, %v2505_v60, 1326507024  ;;  %v7511_v57 = vmin.u32 %v2644_v3, %v10210_v38  ;;  %v2510_v8 = vsel %vm2506_vm7, %v2490_v2, %v2493_v21  ;;  %v2512_v52 = vsel %vm2508_vm11, %v2496_v20, %v2511_v55 }
 0x2a9   :  { %v2520_v56 = vsel %vm2508_vm11, %v2502_v22, %v2519_v6  ;;  %v2349_v5 = vmul.f32 %v2348_v63, %v2346_v47  ;;  %v10232_v41 = vmul.u32.u64.low %v2522_v51, %v2517_v26  ;;  %v10233_v34 = vmul.u32.u64.high %v2522_v51, %v2517_v26, %v10232_v41 }
 0x2aa   :  { %v2521_v44 = vsel %vm2507_vm3, %v2518_v9, %v2520_v56  ;;  %v2455_v17 = vsel %vm2372_vm5, %v2454_v16, %v2453_v28  ;;  %v2646_v58 = vclz %v7511_v57  ;;  %v10242_v21 = vand.u32 3, %v10146_v40 }
 0x2ab   :  { %v10238_v60 = vmul.u32.u64.low %v2522_v51, %v2521_v44  ;;  %v10239_v35 = vmul.u32.u64.high %v2522_v51, %v2521_v44, %v10238_v60  ;;  %v2665_v22 = vsel %vm2580_vm15, %v2664_v27, %v2640_v14  ;;  %v2513_v20 = vsel %vm2507_vm3, %v2510_v8, %v2512_v52  ;;  %v10255_v14 = vpop.f32.mrf.mxu0 }
 0x2ac   :  { %12317 = vst [vmem:[#allocation80_spill] sm:$0xff] %v10242_v21  ;;  %v2790_v47 = vshrl.u32 %v2789_v18, 23  ;;  %8128 = vcosq.f32 %v10174_v29  ;;  %v2355_v55 = vsel %vm10203_vm6, 0, %v2353_v61  ;;  %v7512_v3 = vadd.s32 4294967294, %v2646_v58  ;;  %12318 = vst [vmem:[#allocation81_spill] sm:$0xff] %v10255_v14 }
 0x2ad   :  { %v12112_v28 = vand.u32 2147483647, %v10208_v48  ;;  %v2458_v16 = vsel %vm10105_vm4, %v9808_v1, %v2455_v17  ;;  %v2350_v40 = vxor.u32 2147483648, %v2349_v5  ;;  %v2532_v2 = vadd.s32 1, %v10233_v34 }
 0x2ae   :  { %v7518_v26 = vadd.s32 4294967169, %v2790_v47  ;;  %vm7513_vm5 = vcmp.lt.s32.totalorder %v7512_v3, 0  ;;  %v2667_v33 = vsel %vm10215_vm14, 0, %v2665_v22  ;;  %v2529_v18 = vmul.u32 %v2522_v51, %v2513_v20 }
 0x2af   :  { %vm2531_vm13 = vc.u32 %v10239_v35, %v10232_v41  ;;  %v2359_v61 = vadd.s32 3, %v2355_v55  ;;  %v2649_v63 = vsel %vm7513_vm5, 0, %v7512_v3  ;;  %8130 = vsinq.f32 %v10174_v29 }
 0x2b0   :  { %v2533_v27 = vsel %vm2531_vm13, %v2532_v2, %v10233_v34  ;;  %v2796_v10 = vadd.s32 1, %v7518_v26  ;;  %v10264_v9 = vand.u32 3, %v10168_v4  ;;  %v2685_v57 = vand.u32 2139095040, %v10255_v14 }
 0x2b1   :  { %v2534_v6 = vadd.s32 %v2533_v27, %v2529_v18  ;;  %8132 = vcosq.f32 %v2458_v16  ;;  %v2654_v8 = vsub.s32 4294967266, %v2649_v63  ;;  %v2671_v52 = vadd.s32 3, %v2667_v33 }
 0x2b2   :  { %12319 = vst [vmem:[#allocation82_spill] sm:$0xff] %v10264_v9  ;;  %vm2797_vm4 = vcmp.gt.s32.totalorder %v2796_v10, 0  ;;  %v2351_v51 = vsel %vm2268_vm0, %v2350_v40, %v2349_v5  ;;  %v2793_v44 = vand.u32 8388607, %v12112_v28  ;;  %8134 = vsinq.f32 %v2458_v16 }
 0x2b3   :  { %v2535_v56 = vadd.s32 536870912, %v2534_v6  ;;  %v2798_v34 = vsel %vm2797_vm4, %v2796_v10, 0  ;;  %v10271_v29 = vand.u32 3, %v2359_v61  ;;  %v10273_v4 = vand.u32 3, %v2355_v55 }
 0x2b4   :  { %v2800_v17 = vand.u32 31, %v2798_v34  ;;  %v2634_v58 = vadd.s32 %v10157_v45, %v10165_v59  ;;  %v10277_v60 = vand.u32 3, %v2667_v33  ;;  %v2686_v20 = vshrl.u32 %v2685_v57, 23 }
 0x2b5   :  { %v10279_v22 = vshrl.u32 %v2535_v56, 30  ;;  %v10284_v5 = vsel %vm10203_vm6, %v9891_v32, %v2351_v51  ;;  %v2650_v47 = vsub.s32 32, %v2649_v63  ;;  %v2655_v3 = vadd.s32 127, %v2654_v8 }
 0x2b6   :  { %12320 = vst [vmem:[#allocation83_spill] sm:$0xff] %v10277_v60  ;;  %v2801_v16 = vsub.s32 32, %v2800_v17  ;;  %v10286_v40 = vand.u32 3, %v2671_v52  ;;  %v2794_v2 = vor.u32 8388608, %v2793_v44  ;;  %v2651_v59 = vshll.u32 %v10210_v38, %v2649_v63 }
 0x2b7   :  { %v2537_v55 = vshll.u32 %v10279_v22, 30  ;;  %v2803_v61 = vshll.u32 %v12195_v12, %v2800_v17  ;;  %v2809_v27 = vshll.u32 %v12184_v11, %v2800_v17  ;;  %v7514_v10 = vadd.s32 4294967169, %v2686_v20 }
 0x2b8   :  { %12321 = vst [vmem:[#allocation84_spill] sm:$0xff] %v10286_v40  ;;  %v2804_v26 = vshrl.u32 %v12183_v0, %v2801_v16  ;;  %v2807_v33 = vshrl.u32 %v12184_v11, %v2801_v16  ;;  %v2810_v54 = vshrl.u32 %v12185_v50, %v2801_v16  ;;  %v2652_v8 = vshrl.u32 %v2634_v58, %v2650_v47 }
 0x2b9   :  { %v10294_v18 = vsub.s32 %v2534_v6, %v2537_v55  ;;  %v10298_v57 = vpop.eup %8128  ;;  %v2656_v52 = vshll.u32 %v2655_v3, 23  ;;  %v2799_v51 = vshrl.u32 %v2798_v34, 5  ;;  %v2806_v38 = vshll.u32 %v12183_v0, %v2800_v17 }
 0x2ba   :  { %v2805_v56 = vor.u32 %v2804_v26, %v2803_v61  ;;  %v2811_v44 = vor.u32 %v2810_v54, %v2809_v27  ;;  %v2812_v28 = vshll.u32 %v12185_v50, %v2800_v17  ;;  %v2813_v55 = vshrl.u32 %v12203_v19, %v2801_v16 }
 0x2bb   :  { %v2540_v63 = vsub.s32 0, %v10294_v18  ;;  %v2808_v6 = vor.u32 %v2807_v33, %v2806_v38  ;;  %v2815_v45 = vshll.u32 %v12203_v19, %v2800_v17  ;;  %v2816_v20 = vshrl.u32 %v12204_v31, %v2801_v16 }
 0x2bc   :  { %v2530_v58 = vadd.s32 %v10232_v41, %v10239_v35  ;;  %v10309_v47 = vshll.u32 %v2794_v2, 8  ;;  %v2692_v3 = vadd.s32 1, %v7514_v10  ;;  %v10311_v60 = vpop.eup %8130  ;;  %v2653_v26 = vor.u32 %v2652_v8, %v2651_v59 }
 0x2bd   :  { %v7507_v34 = vmin.u32 %v2540_v63, %v10294_v18  ;;  %v2814_v54 = vor.u32 %v2813_v55, %v2812_v28  ;;  %v2817_v61 = vor.u32 %v2816_v20, %v2815_v45  ;;  %vm2821_vm2 = vcmp.lt.s32.totalorder %v2799_v51, 4 }
 0x2be   :  { %v10313_v33 = vpop.eup %8132  ;;  %v2802_v17 = vshrl.u32 %v12195_v12, %v2801_v16  ;;  %vm2818_vm8 = vcmp.lt.s32.totalorder %v2799_v51, 1  ;;  %v2823_v38 = vsel %vm2821_vm2, %v2811_v44, 2102212464  ;;  %v2657_v35 = vor.u32 4788187, %v2656_v52 }
 0x2bf   :  { %12322 = vst [vmem:[#allocation85_spill] sm:$0xff] %v10313_v33  ;;  %v2542_v27 = vclz %v7507_v34  ;;  %vm2820_vm12 = vcmp.lt.s32.totalorder %v2799_v51, 3  ;;  %v2826_v41 = vsel %vm2818_vm8, %v2805_v56, %v2808_v6  ;;  %v2827_v2 = vsel %vm2821_vm2, %v2814_v54, 920167782  ;;  %v10318_v10 = vpop.eup %8134 }
 0x2c0   :  { %12323 = vst [vmem:[#allocation86_spill] sm:$0xff] %v10318_v10  ;;  %vm2819_vm9 = vcmp.lt.s32.totalorder %v2799_v51, 2  ;;  %v2822_v28 = vsel %vm2818_vm8, %v2802_v17, %v2805_v56  ;;  %v2828_v45 = vsel %vm2820_vm12, %v2811_v44, %v2827_v2  ;;  %v2824_v59 = vsel %vm2820_vm12, %v2808_v6, %v2823_v38 }
 0x2c1   :  { %v7508_v63 = vadd.s32 4294967294, %v2542_v27  ;;  %v2829_v8 = vsel %vm2819_vm9, %v2826_v41, %v2828_v45  ;;  %v2830_v55 = vsel %vm2818_vm8, %v2808_v6, %v2811_v44  ;;  %v2831_v16 = vsel %vm2821_vm2, %v2817_v61, 1326507024 }
 0x2c2   :  { %v2832_v20 = vsel %vm2820_vm12, %v2814_v54, %v2831_v16  ;;  %v10323_v52 = vmul.u32.u64.low %v10309_v47, %v2829_v8  ;;  %v10324_v34 = vmul.u32.u64.high %v10309_v47, %v2829_v8, %v10323_v52  ;;  %v2658_v40 = vand.u32 2147483647, %v2657_v35 }
 0x2c3   :  { %vm7509_vm0 = vcmp.lt.s32.totalorder %v7508_v63, 0  ;;  %v2833_v27 = vsel %vm2819_vm9, %v2830_v55, %v2832_v20  ;;  %vm2693_vm1 = vcmp.gt.s32.totalorder %v2692_v3, 0  ;;  %v2825_v38 = vsel %vm2819_vm9, %v2822_v28, %v2824_v59 }
 0x2c4   :  { %v2545_v1 = vsel %vm7509_vm0, 0, %v7508_v63  ;;  %v2694_v41 = vsel %vm2693_vm1, %v2692_v3, 0  ;;  %v2660_v44 = vcvt.s32.f32 %v2653_v26  ;;  %v2844_v8 = vadd.s32 1, %v10324_v34 }
 0x2c5   :  { %v2546_v56 = vsub.s32 32, %v2545_v1  ;;  %v2550_v17 = vsub.s32 4294967266, %v2545_v1  ;;  %v10330_v6 = vmul.u32.u64.low %v10309_v47, %v2833_v27  ;;  %v10331_v61 = vmul.u32.u64.high %v10309_v47, %v2833_v27, %v10330_v6 }
 0x2c6   :  { %v2696_v54 = vand.u32 31, %v2694_v41  ;;  %v12324_v35 = vand.u32 2147483647, %v10255_v14  ;;  %v2661_v55 = vmul.f32 %v2660_v44, %v2658_v40  ;;  %v2547_v16 = vshll.u32 %v10294_v18, %v2545_v1 }
 0x2c7   :  { %v2548_v2 = vshrl.u32 %v2530_v58, %v2546_v56  ;;  %v2551_v45 = vadd.s32 127, %v2550_v17  ;;  %v2841_v51 = vmul.u32 %v10309_v47, %v2825_v38  ;;  %vm2476_vm7 = vcmp.lt.s32.totalorder %v10096_v25, 0 }
 0x2c8   :  { %v10336_v63 = vand.u32 8388607, %v12324_v35  ;;  %v2697_v3 = vsub.s32 32, %v2696_v54  ;;  %v10341_v28 = vshrl.u32 %v2694_v41, 5  ;;  %v2699_v58 = vshll.u32 %v12195_v12, %v2696_v54 }
 0x2c9   :  { %v2552_v26 = vshll.u32 %v2551_v45, 23  ;;  %v2702_v59 = vshll.u32 %v12183_v0, %v2696_v54  ;;  %v2549_v20 = vor.u32 %v2548_v2, %v2547_v16  ;;  %vm2843_vm6 = vc.u32 %v10331_v61, %v10323_v52  ;;  %v10362_v16 = vpop.f32.mrf.mxu0 }
 0x2ca   :  { %v2700_v40 = vshrl.u32 %v12183_v0, %v2697_v3  ;;  %v2705_v1 = vshll.u32 %v12184_v11, %v2696_v54  ;;  %v2845_v47 = vsel %vm2843_vm6, %v2844_v8, %v10324_v34  ;;  %v2703_v27 = vshrl.u32 %v12184_v11, %v2697_v3  ;;  %12328 = vst [vmem:[#allocation87_spill] sm:$0xff] %v10362_v16 }
 0x2cb   :  { %v2553_v18 = vor.u32 4788187, %v2552_v26  ;;  %v2708_v56 = vshll.u32 %v12185_v50, %v2696_v54  ;;  %v2846_v17 = vadd.s32 %v2845_v47, %v2841_v51  ;;  %v2706_v38 = vshrl.u32 %v12185_v50, %v2697_v3  ;;  %v36_v51 = vld [vmem:[%s12003_s3 + $0x78] sm:$0xff] }
 0x2cc   :  { %v2709_v41 = vshrl.u32 %v12203_v19, %v2697_v3  ;;  %v2711_v44 = vshll.u32 %v12203_v19, %v2696_v54  ;;  %v12325_v6 = vand.u32 2147483647, %v10096_v25  ;;  %v2701_v35 = vor.u32 %v2700_v40, %v2699_v58  ;;  %7814 = vmatprep.subr.mxu0 %v36_v51  ;;  %7894 = vmatprep.subr.mxu1 %v36_v51 }
 0x2cd   :  { %v2554_v45 = vand.u32 2147483647, %v2553_v18  ;;  %v2704_v34 = vor.u32 %v2703_v27, %v2702_v59  ;;  %v2712_v8 = vshrl.u32 %v12204_v31, %v2697_v3  ;;  %v2560_v26 = vsub.s32 4, %v10279_v22  ;;  %7815 = vmatpush3.msra.mxu0 %v36_v51  ;;  %7910 = vmatpush3.msra.mxu1 %v36_v51 }
 0x2ce   :  { %vm10357_vm10 = vcmp.le.f32.partialorder %v12325_v6, 0.7853982  ;;  %v2847_v54 = vadd.s32 536870912, %v2846_v17  ;;  %v2707_v47 = vor.u32 %v2706_v38, %v2705_v1  ;;  %v2710_v21 = vor.u32 %v2709_v41, %v2708_v56 }
 0x2cf   :  { %v2662_v6 = vxor.u32 2147483648, %v2661_v55  ;;  %v2556_v33 = vcvt.s32.f32 %v2549_v20  ;;  %v2690_v58 = vor.u32 8388608, %v10336_v63  ;;  %v2713_v59 = vor.u32 %v2712_v8, %v2711_v44 }
 0x2d0   :  { %v2848_v40 = vshrl.u32 %v2847_v54, 30  ;;  %vm2714_vm11 = vcmp.lt.s32.totalorder %v10341_v28, 1  ;;  %vm2717_vm3 = vcmp.lt.s32.totalorder %v10341_v28, 4  ;;  %v2997_v18 = vand.u32 2139095040, %v10362_v16 }
 0x2d1   :  { %v2557_v27 = vmul.f32 %v2556_v33, %v2554_v45  ;;  %vm2716_vm5 = vcmp.lt.s32.totalorder %v10341_v28, 3  ;;  %v2722_v1 = vsel %vm2714_vm11, %v2701_v35, %v2704_v34  ;;  %v2723_v56 = vsel %vm2717_vm3, %v2710_v21, 920167782 }
 0x2d2   :  { %v2561_v63 = vsel %vm2476_vm7, %v2560_v26, %v10279_v22  ;;  %v2849_v20 = vshll.u32 %v2848_v40, 30  ;;  %v2724_v38 = vsel %vm2716_vm5, %v2707_v47, %v2723_v56  ;;  %v2726_v41 = vsel %vm2714_vm11, %v2704_v34, %v2707_v47 }
 0x2d3   :  { %v2663_v33 = vsel %vm2580_vm15, %v2662_v6, %v2661_v55  ;;  %vm2715_vm13 = vcmp.lt.s32.totalorder %v10341_v28, 2  ;;  %v2719_v44 = vsel %vm2717_vm3, %v2707_v47, 2102212464  ;;  %v2727_v45 = vsel %vm2717_vm3, %v2713_v59, 1326507024 }
 0x2d4   :  { %v10385_v8 = vsub.s32 %v2846_v17, %v2849_v20  ;;  %v2698_v51 = vshrl.u32 %v12195_v12, %v2697_v3  ;;  %v2725_v22 = vsel %vm2715_vm13, %v2722_v1, %v2724_v38  ;;  %v2728_v26 = vsel %vm2716_vm5, %v2710_v21, %v2727_v45 }
 0x2d5   :  { %v2558_v54 = vxor.u32 2147483648, %v2557_v27  ;;  %vm2788_vm4 = vcmp.lt.s32.totalorder %v10208_v48, 0  ;;  %v2729_v55 = vsel %vm2715_vm13, %v2726_v41, %v2728_v26  ;;  %v2730_v6 = vshll.u32 %v2690_v58, 8  ;;  %v10426_v26 = vpop.f32.mrf.mxu0 }
 0x2d6   :  { %v2998_v56 = vshrl.u32 %v2997_v18, 23  ;;  %v2563_v17 = vsel %vm10357_vm10, 0, %v2561_v63  ;;  %v2852_v47 = vsub.s32 0, %v10385_v8  ;;  %v2718_v3 = vsel %vm2714_vm11, %v2698_v51, %v2701_v35  ;;  %12332 = vst [vmem:[#allocation88_spill] sm:$0xff] %v10426_v26  ;;  %v33_v35 = vld [vmem:[%s12003_s3 + $0x60] sm:$0xff] }
 0x2d7   :  { %v2720_v59 = vsel %vm2716_vm5, %v2704_v34, %v2719_v44  ;;  %v10402_v21 = vmul.u32.u64.low %v2730_v6, %v2729_v55  ;;  %v10403_v1 = vmul.u32.u64.high %v2730_v6, %v2729_v55, %v10402_v21  ;;  %8136 = vcosq.f32 %v10284_v5 }
 0x2d8   :  { %v10405_v20 = vmul.u32.u64.low %v2730_v6, %v2725_v22  ;;  %v10406_v38 = vmul.u32.u64.high %v2730_v6, %v2725_v22, %v10405_v20  ;;  %v2666_v58 = vsel %vm10215_vm14, %v10012_v23, %v2663_v33  ;;  %v12329_v18 = vand.u32 2147483647, %v10208_v48 }
 0x2d9   :  { %v7519_v34 = vmin.u32 %v2852_v47, %v10385_v8  ;;  %v7526_v63 = vadd.s32 4294967169, %v2998_v56  ;;  %8138 = vsinq.f32 %v10284_v5  ;;  %v2559_v41 = vsel %vm2476_vm7, %v2558_v54, %v2557_v27 }
 0x2da   :  { %vm10415_vm15 = vcmp.le.f32.partialorder %v12329_v18, 0.7853982  ;;  %v2721_v44 = vsel %vm2715_vm13, %v2718_v3, %v2720_v59  ;;  %v12118_v13 = vand.u32 2147483647, %v10362_v16  ;;  %v2567_v33 = vadd.s32 3, %v2563_v17 }
 0x2db   :  { %v2854_v45 = vclz %v7519_v34  ;;  %v2872_v51 = vsub.s32 4, %v2848_v40  ;;  %v3004_v22 = vadd.s32 1, %v7526_v63  ;;  %8140 = vcosq.f32 %v2666_v58 }
 0x2dc   :  { %v10428_v55 = vand.u32 3, %v2563_v17  ;;  %vm2739_vm14 = vc.u32 %v10403_v1, %v10405_v20  ;;  %v2740_v5 = vadd.s32 1, %v10406_v38  ;;  %v2562_v28 = vsel %vm10357_vm10, %v10096_v25, %v2559_v41 }
 0x2dd   :  { %v7520_v27 = vadd.s32 4294967294, %v2854_v45  ;;  %v2737_v54 = vmul.u32 %v2730_v6, %v2721_v44  ;;  %vm3005_vm2 = vcmp.gt.s32.totalorder %v3004_v22, 0  ;;  %v3001_v47 = vand.u32 8388607, %v12118_v13 }
 0x2de   :  { %12333 = vst [vmem:[#allocation89_spill] sm:$0xff] %v10428_v55  ;;  %v2741_v56 = vsel %vm2739_vm14, %v2740_v5, %v10406_v38  ;;  %v3006_v3 = vsel %vm3005_vm2, %v3004_v22, 0  ;;  %v2893_v17 = vand.u32 2139095040, %v10426_v26  ;;  %v2873_v59 = vsel %vm2788_vm4, %v2872_v51, %v2848_v40  ;;  %v35_v38 = vld [vmem:[%s12003_s3 + $0x70] sm:$0xff] }
 0x2df   :  { %vm7521_vm8 = vcmp.lt.s32.totalorder %v7520_v27, 0  ;;  %v2742_v21 = vadd.s32 %v2741_v56, %v2737_v54  ;;  %v3008_v18 = vand.u32 31, %v3006_v3  ;;  %8142 = vsinq.f32 %v2666_v58  ;;  %7816 = vmatprep.subr.mxu0 %v35_v38  ;;  %7895 = vmatprep.subr.mxu1 %v35_v38 }
 0x2e0   :  { %v10442_v2 = vand.u32 3, %v2567_v33  ;;  %v2842_v6 = vadd.s32 %v10323_v52, %v10331_v61  ;;  %v2857_v34 = vsel %vm7521_vm8, 0, %v7520_v27  ;;  %8144 = vcosq.f32 %v2562_v28  ;;  %7817 = vmatpush3.msra.mxu0 %v35_v38  ;;  %7911 = vmatpush3.msra.mxu1 %v35_v38 }
 0x2e1   :  { %v2858_v63 = vsub.s32 32, %v2857_v34  ;;  %v2862_v41 = vsub.s32 4294967266, %v2857_v34  ;;  %v2743_v44 = vadd.s32 536870912, %v2742_v21  ;;  %v10451_v40 = vsel %vm10415_vm15, 0, %v2873_v59 }
 0x2e2   :  { %12334 = vst [vmem:[#allocation90_spill] sm:$0xff] %v10442_v2  ;;  %v3002_v58 = vor.u32 8388608, %v3001_v47  ;;  %v3009_v33 = vsub.s32 32, %v3008_v18  ;;  %v2894_v45 = vshrl.u32 %v2893_v17, 23  ;;  %v10455_v22 = vshrl.u32 %v3006_v3, 5 }
 0x2e3   :  { %v2860_v52 = vshrl.u32 %v2842_v6, %v2858_v63  ;;  %v2863_v61 = vadd.s32 127, %v2862_v41  ;;  %v10453_v51 = vshrl.u32 %v2743_v44, 30  ;;  %v2859_v5 = vshll.u32 %v10385_v8, %v2857_v34 }
 0x2e4   :  { %v3012_v27 = vshrl.u32 %v12183_v0, %v3009_v33  ;;  %v3015_v54 = vshrl.u32 %v12184_v11, %v3009_v33  ;;  %v3018_v56 = vshrl.u32 %v12185_v50, %v3009_v33  ;;  %v3011_v17 = vshll.u32 %v12195_v12, %v3008_v18  ;;  %v10464_v38 = vpop.eup %8136 }
 0x2e5   :  { %v2864_v59 = vshll.u32 %v2863_v61, 23  ;;  %v2745_v47 = vshll.u32 %v10453_v51, 30  ;;  %v3014_v6 = vshll.u32 %v12183_v0, %v3008_v18  ;;  %v2861_v63 = vor.u32 %v2860_v52, %v2859_v5 }
 0x2e6   :  { %v3017_v3 = vshll.u32 %v12184_v11, %v3008_v18  ;;  %v3020_v8 = vshll.u32 %v12185_v50, %v3008_v18  ;;  %v3021_v34 = vshrl.u32 %v12203_v19, %v3009_v33  ;;  %v10469_v41 = vpop.eup %8138  ;;  %v3013_v61 = vor.u32 %v3012_v27, %v3011_v17 }
 0x2e7   :  { %v2865_v44 = vor.u32 4788187, %v2864_v59  ;;  %v10471_v13 = vsub.s32 %v2742_v21, %v2745_v47  ;;  %v3016_v23 = vor.u32 %v3015_v54, %v3014_v6  ;;  %v3023_v2 = vshll.u32 %v12203_v19, %v3008_v18  ;;  %v21_v6 = vld [vmem:[%s12003_s3] sm:$0xff] }
 0x2e8   :  { %v3019_v25 = vor.u32 %v3018_v56, %v3017_v3  ;;  %v3022_v55 = vor.u32 %v3021_v34, %v3020_v8  ;;  %v3024_v10 = vshrl.u32 %v12204_v31, %v3009_v33  ;;  %v10475_v52 = vpop.eup %8140  ;;  %8146 = vsinq.f32 %v2562_v28 }
 0x2e9   :  { %12335 = vst [vmem:[#allocation91_spill] sm:$0xff] %v10475_v52  ;;  %v10478_v5 = vadd.s32 3, %v10451_v40  ;;  %vm2684_vm12 = vcmp.lt.s32.totalorder %v10255_v14, 0  ;;  %v2748_v59 = vsub.s32 0, %v10471_v13  ;;  %v3042_v21 = vshll.u32 %v3002_v58, 8  ;;  %v10507_v52 = vpop.f32.mrf.mxu0 }
 0x2ea   :  { %v2866_v47 = vand.u32 2147483647, %v2865_v44  ;;  %v3010_v27 = vshrl.u32 %v12195_v12, %v3009_v33  ;;  %v3025_v54 = vor.u32 %v3024_v10, %v3023_v2  ;;  %v7522_v56 = vadd.s32 4294967169, %v2894_v45  ;;  %12341 = vst [vmem:[#allocation94_spill] sm:$0xff] %v10507_v52 }
 0x2eb   :  { %v2868_v17 = vcvt.s32.f32 %v2861_v63  ;;  %v7515_v18 = vmin.u32 %v2748_v59, %v10471_v13  ;;  %vm3026_vm9 = vcmp.lt.s32.totalorder %v10455_v22, 1  ;;  %vm3029_vm0 = vcmp.lt.s32.totalorder %v10455_v22, 4 }
 0x2ec   :  { %v12336_v28 = vand.u32 2147483647, %v10255_v14  ;;  %vm3028_vm7 = vcmp.lt.s32.totalorder %v10455_v22, 3  ;;  %v3031_v58 = vsel %vm3029_vm0, %v3019_v25, 2102212464  ;;  %v3034_v10 = vsel %vm3026_vm9, %v3013_v61, %v3016_v23  ;;  %v10495_v33 = vpop.eup %8142 }
 0x2ed   :  { %v3035_v2 = vsel %vm3029_vm0, %v3022_v55, 920167782  ;;  %12339 = vst [vmem:[#allocation92_spill] sm:$0xff] %v10495_v33  ;;  %v2750_v45 = vclz %v7515_v18  ;;  %v2768_v63 = vsub.s32 4, %v10453_v51  ;;  %vm3027_vm6 = vcmp.lt.s32.totalorder %v10455_v22, 2  ;;  %v10501_v8 = vpop.eup %8144 }
 0x2ee   :  { %vm10488_vm1 = vcmp.le.f32.partialorder %v12336_v28, 0.7853982  ;;  %v3036_v3 = vsel %vm3028_vm7, %v3019_v25, %v3035_v2  ;;  %12340 = vst [vmem:[#allocation93_spill] sm:$0xff] %v10501_v8  ;;  %v2869_v34 = vmul.f32 %v2868_v17, %v2866_v47  ;;  %v3038_v59 = vsel %vm3026_vm9, %v3016_v23, %v3019_v25 }
 0x2ef   :  { %v3037_v44 = vsel %vm3027_vm6, %v3034_v10, %v3036_v3  ;;  %v3039_v28 = vsel %vm3029_vm0, %v3025_v54, 1326507024  ;;  %v7516_v18 = vadd.s32 4294967294, %v2750_v45  ;;  %v3030_v33 = vsel %vm3026_vm9, %v3010_v27, %v3013_v61 }
 0x2f0   :  { %v3032_v9 = vsel %vm3028_vm7, %v3016_v23, %v3031_v58  ;;  %v3040_v2 = vsel %vm3028_vm7, %v3022_v55, %v3039_v28  ;;  %v10517_v17 = vmul.u32.u64.low %v3042_v21, %v3037_v44  ;;  %v10518_v10 = vmul.u32.u64.high %v3042_v21, %v3037_v44, %v10517_v17 }
 0x2f1   :  { %v3041_v47 = vsel %vm3027_vm6, %v3038_v59, %v3040_v2  ;;  %v12127_v25 = vand.u32 2147483647, %v10426_v26  ;;  %vm7517_vm10 = vcmp.lt.s32.totalorder %v7516_v18, 0  ;;  %v3205_v61 = vand.u32 2139095040, %v10507_v52 }
 0x2f2   :  { %v10522_v54 = vmul.u32.u64.low %v3042_v21, %v3041_v47  ;;  %v10523_v45 = vmul.u32.u64.high %v3042_v21, %v3041_v47, %v10522_v54  ;;  %v2753_v27 = vsel %vm7517_vm10, 0, %v7516_v18  ;;  %v2769_v23 = vsel %vm2684_vm12, %v2768_v63, %v10453_v51 }
 0x2f3   :  { %v3033_v55 = vsel %vm3027_vm6, %v3030_v33, %v3032_v9  ;;  %v2900_v58 = vadd.s32 1, %v7522_v56  ;;  %v2870_v3 = vxor.u32 2147483648, %v2869_v34  ;;  %v10532_v44 = vand.u32 3, %v10451_v40 }
 0x2f4   :  { %v2754_v59 = vsub.s32 32, %v2753_v27  ;;  %v2758_v28 = vsub.s32 4294967266, %v2753_v27  ;;  %v2738_v2 = vadd.s32 %v10405_v20, %v10403_v1  ;;  %v3052_v47 = vadd.s32 1, %v10518_v10 }
 0x2f5   :  { %12342 = vst [vmem:[#allocation95_spill] sm:$0xff] %v10532_v44  ;;  %v10539_v18 = vand.u32 8388607, %v12127_v25  ;;  %vm2901_vm11 = vcmp.gt.s32.totalorder %v2900_v58, 0  ;;  %v2771_v9 = vsel %vm10488_vm1, 0, %v2769_v23  ;;  %v3049_v22 = vmul.u32 %v3042_v21, %v3033_v55  ;;  %v10545_v40 = vpop.eup %8146 }
 0x2f6   :  { %v2759_v51 = vadd.s32 127, %v2758_v28  ;;  %vm3051_vm3 = vc.u32 %v10523_v45, %v10517_v17  ;;  %12343 = vst [vmem:[#allocation96_spill] sm:$0xff] %v10545_v40  ;;  %v2902_v1 = vsel %vm2901_vm11, %v2900_v58, 0  ;;  %v12130_v20 = vand.u32 2147483647, %v10507_v52  ;;  %v31_v40 = vld [vmem:[%s12003_s3 + $0x50] sm:$0xff] }
 0x2f7   :  { %v3053_v56 = vsel %vm3051_vm3, %v3052_v47, %v10518_v10  ;;  %v3206_v33 = vshrl.u32 %v3205_v61, 23  ;;  %v2871_v63 = vsel %vm2788_vm4, %v2870_v3, %v2869_v34  ;;  %v2756_v54 = vshrl.u32 %v2738_v2, %v2754_v59  ;;  %v34_v34 = vld [vmem:[%s12003_s3 + $0x68] sm:$0xff] }
 0x2f8   :  { %v2760_v28 = vshll.u32 %v2759_v51, 23  ;;  %v3054_v25 = vadd.s32 %v3053_v56, %v3049_v22  ;;  %v10552_v23 = vand.u32 3, %v10478_v5  ;;  %v2775_v21 = vadd.s32 3, %v2771_v9  ;;  %7818 = vmatprep.subr.mxu0 %v34_v34  ;;  %7896 = vmatprep.subr.mxu1 %v34_v34 }
 0x2f9   :  { %v2898_v55 = vor.u32 8388608, %v10539_v18  ;;  %v2904_v44 = vand.u32 31, %v2902_v1  ;;  %v2755_v8 = vshll.u32 %v10471_v13, %v2753_v27  ;;  %v10556_v58 = vand.u32 3, %v2771_v9  ;;  %7819 = vmatpush3.msra.mxu0 %v34_v34  ;;  %7912 = vmatpush3.msra.mxu1 %v34_v34 }
 0x2fa   :  { %12344 = vst [vmem:[#allocation97_spill] sm:$0xff] %v10552_v23  ;;  %v2761_v10 = vor.u32 4788187, %v2760_v28  ;;  %v3055_v47 = vadd.s32 536870912, %v3054_v25  ;;  %v10564_v61 = vsel %vm10415_vm15, %v10208_v48, %v2871_v63  ;;  %v7534_v3 = vadd.s32 4294967169, %v3206_v33  ;;  %7820 = vmatprep.subr.mxu0 %v33_v35  ;;  %7897 = vmatprep.subr.mxu1 %v33_v35 }
 0x2fb   :  { %12345 = vst [vmem:[#allocation98_spill] sm:$0xff] %v10556_v58  ;;  %v2905_v5 = vsub.s32 32, %v2904_v44  ;;  %v10568_v59 = vand.u32 8388607, %v12130_v20  ;;  %v2757_v13 = vor.u32 %v2756_v54, %v2755_v8  ;;  %v10572_v2 = vshrl.u32 %v2902_v1, 5  ;;  %7821 = vmatpush3.msra.mxu0 %v33_v35  ;;  %v32_v54 = vld [vmem:[%s12003_s3 + $0x58] sm:$0xff]  ;;  %7913 = vmatpush3.msra.mxu1 %v33_v35 }
 0x2fc   :  { %v10570_v27 = vshrl.u32 %v3055_v47, 30  ;;  %v2907_v18 = vshll.u32 %v12195_v12, %v2904_v44  ;;  %v2910_v9 = vshll.u32 %v12183_v0, %v2904_v44  ;;  %v2762_v56 = vand.u32 2147483647, %v2761_v10  ;;  %7822 = vmatprep.subr.mxu0 %v32_v54  ;;  %7898 = vmatprep.subr.mxu1 %v32_v54  ;;  %v30_v35 = vld [vmem:[%s12003_s3 + $0x48] sm:$0xff] }
 0x2fd   :  { %v2908_v51 = vshrl.u32 %v12183_v0, %v2905_v5  ;;  %v2911_v22 = vshrl.u32 %v12184_v11, %v2905_v5  ;;  %v2914_v8 = vshrl.u32 %v12185_v50, %v2905_v5  ;;  %v2913_v33 = vshll.u32 %v12184_v11, %v2904_v44  ;;  %7823 = vmatpush3.msra.mxu0 %v32_v54 }
 0x2fe   :  { %v3057_v1 = vshll.u32 %v10570_v27, 30  ;;  %v2917_v63 = vshrl.u32 %v12203_v19, %v2905_v5  ;;  %v2916_v47 = vshll.u32 %v12185_v50, %v2904_v44  ;;  %v2919_v34 = vshll.u32 %v12203_v19, %v2904_v44  ;;  %7824 = vmatprep.subr.mxu0 %v31_v40  ;;  %7914 = vmatpush3.msra.mxu1 %v32_v54 }
 0x2ff   :  { %v2909_v28 = vor.u32 %v2908_v51, %v2907_v18  ;;  %v2920_v20 = vshrl.u32 %v12204_v31, %v2905_v5  ;;  %v10591_v10 = vand.u32 3, %v2775_v21  ;;  %v2912_v23 = vor.u32 %v2911_v22, %v2910_v9  ;;  %7825 = vmatpush3.msra.mxu0 %v31_v40  ;;  %7899 = vmatprep.subr.mxu1 %v31_v40 }
 0x300   :  { %v10593_v48 = vsub.s32 %v3054_v25, %v3057_v1  ;;  %v2915_v58 = vor.u32 %v2914_v8, %v2913_v33  ;;  %8148 = vcosq.f32 %v10564_v61  ;;  %v2764_v18 = vcvt.s32.f32 %v2757_v13  ;;  %7826 = vmatprep.subr.mxu0 %v30_v35  ;;  %v29_v33 = vld [vmem:[%s12003_s3 + $0x40] sm:$0xff]  ;;  %7915 = vmatpush3.msra.mxu1 %v31_v40 }
 0x301   :  { %12346 = vst [vmem:[#allocation99_spill] sm:$0xff] %v10591_v10  ;;  %vm2996_vm5 = vcmp.lt.s32.totalorder %v10362_v16, 0  ;;  %v2918_v44 = vor.u32 %v2917_v63, %v2916_v47  ;;  %v10600_v51 = vshll.u32 %v2898_v55, 8  ;;  %v2921_v21 = vor.u32 %v2920_v20, %v2919_v34  ;;  %7827 = vmatpush3.msra.mxu0 %v30_v35  ;;  %7900 = vmatprep.subr.mxu1 %v30_v35 }
 0x302   :  { %v3060_v25 = vsub.s32 0, %v10593_v48  ;;  %v3212_v22 = vadd.s32 1, %v7534_v3  ;;  %v10607_v13 = vmul.f32 %v2764_v18, %v2762_v56  ;;  %v2906_v8 = vshrl.u32 %v12195_v12, %v2905_v5  ;;  %7828 = vmatprep.subr.mxu0 %v29_v33  ;;  %7916 = vmatpush3.msra.mxu1 %v30_v35 }
 0x303   :  { %vm2922_vm13 = vcmp.lt.s32.totalorder %v10572_v2, 1  ;;  %vm2925_vm4 = vcmp.lt.s32.totalorder %v10572_v2, 4  ;;  %v12347_v20 = vand.u32 2147483647, %v10362_v16  ;;  %v3080_v1 = vsub.s32 4, %v10570_v27  ;;  %7829 = vmatpush3.msra.mxu0 %v29_v33  ;;  %7901 = vmatprep.subr.mxu1 %v29_v33 }
 0x304   :  { %v7527_v3 = vmin.u32 %v3060_v25, %v10593_v48  ;;  %v2927_v56 = vsel %vm2925_vm4, %v2915_v58, 2102212464  ;;  %v2930_v5 = vsel %vm2922_vm13, %v2909_v28, %v2912_v23  ;;  %vm2923_vm14 = vcmp.lt.s32.totalorder %v10572_v2, 2  ;;  %v28_v25 = vld [vmem:[%s12003_s3 + $0x38] sm:$0xff]  ;;  %7917 = vmatpush3.msra.mxu1 %v29_v33  ;;  %v26_v33 = vld [vmem:[%s12003_s3 + $0x28] sm:$0xff] }
 0x305   :  { %vm10614_vm15 = vcmp.le.f32.partialorder %v12347_v20, 0.7853982  ;;  %vm2924_vm2 = vcmp.lt.s32.totalorder %v10572_v2, 3  ;;  %v2931_v63 = vsel %vm2925_vm4, %v2918_v44, 920167782  ;;  %v2934_v54 = vsel %vm2922_vm13, %v2912_v23, %v2915_v58  ;;  %7830 = vmatprep.subr.mxu0 %v28_v25  ;;  %7902 = vmatprep.subr.mxu1 %v28_v25 }
 0x306   :  { %v3062_v47 = vclz %v7527_v3  ;;  %v2926_v34 = vsel %vm2922_vm13, %v2906_v8, %v2909_v28  ;;  %v2932_v18 = vsel %vm2924_vm2, %v2915_v58, %v2931_v63  ;;  %v2935_v40 = vsel %vm2925_vm4, %v2921_v21, 1326507024  ;;  %v10649_v8 = vpop.f32.mrf.mxu0  ;;  %7831 = vmatpush3.msra.mxu0 %v28_v25  ;;  %7918 = vmatpush3.msra.mxu1 %v28_v25 }
 0x307   :  { %v2928_v20 = vsel %vm2924_vm2, %v2912_v23, %v2927_v56  ;;  %v2933_v9 = vsel %vm2923_vm14, %v2930_v5, %v2932_v18  ;;  %v2936_v10 = vsel %vm2924_vm2, %v2918_v44, %v2935_v40  ;;  %vm3213_vm8 = vcmp.gt.s32.totalorder %v3212_v22, 0  ;;  %v27_v23 = vld [vmem:[%s12003_s3 + $0x30] sm:$0xff] }
 0x308   :  { %v7528_v3 = vadd.s32 4294967294, %v3062_v47  ;;  %v2937_v58 = vsel %vm2923_vm14, %v2934_v54, %v2936_v10  ;;  %v10645_v28 = vmul.u32.u64.low %v10600_v51, %v2933_v9  ;;  %v10646_v21 = vmul.u32.u64.high %v10600_v51, %v2933_v9, %v10645_v28  ;;  %7832 = vmatprep.subr.mxu0 %v27_v23  ;;  %7903 = vmatprep.subr.mxu1 %v27_v23 }
 0x309   :  { %v2766_v44 = vxor.u32 2147483648, %v10607_v13  ;;  %v10656_v35 = vmul.u32.u64.low %v10600_v51, %v2937_v58  ;;  %v10657_v56 = vmul.u32.u64.high %v10600_v51, %v2937_v58, %v10656_v35  ;;  %v3214_v10 = vsel %vm3213_vm8, %v3212_v22, 0  ;;  %7833 = vmatpush3.msra.mxu0 %v27_v23  ;;  %7919 = vmatpush3.msra.mxu1 %v27_v23  ;;  %v24_v58 = vld [vmem:[%s12003_s3 + $0x18] sm:$0xff] }
 0x30a   :  { %vm7529_vm9 = vcmp.lt.s32.totalorder %v7528_v3, 0  ;;  %v3081_v9 = vsel %vm2996_vm5, %v3080_v1, %v10570_v27  ;;  %v2929_v5 = vsel %vm2923_vm14, %v2926_v34, %v2928_v20  ;;  %v10664_v63 = vand.u32 31, %v3214_v10  ;;  %7834 = vmatprep.subr.mxu0 %v26_v33  ;;  %7904 = vmatprep.subr.mxu1 %v26_v33 }
 0x30b   :  { %8150 = vsinq.f32 %v10564_v61  ;;  %v3050_v22 = vadd.s32 %v10517_v17, %v10523_v45  ;;  %v3065_v54 = vsel %vm7529_vm9, 0, %v7528_v3  ;;  %v2948_v1 = vadd.s32 1, %v10646_v21  ;;  %7835 = vmatpush3.msra.mxu0 %v26_v33  ;;  %v25_v61 = vld [vmem:[%s12003_s3 + $0x20] sm:$0xff]  ;;  %7920 = vmatpush3.msra.mxu1 %v26_v33  ;;  %v23_v33 = vld [vmem:[%s12003_s3 + $0x10] sm:$0xff] }
 0x30c   :  { %v3066_v27 = vsub.s32 32, %v3065_v54  ;;  %v3070_v2 = vsub.s32 4294967266, %v3065_v54  ;;  %v12350_v34 = vor.u32 8388608, %v10568_v59  ;;  %v3083_v17 = vsel %vm10614_vm15, 0, %v3081_v9  ;;  %7836 = vmatprep.subr.mxu0 %v25_v61  ;;  %7905 = vmatprep.subr.mxu1 %v25_v61 }
 0x30d   :  { %v2945_v45 = vmul.u32 %v10600_v51, %v2929_v5  ;;  %vm2947_vm0 = vc.u32 %v10657_v56, %v10645_v28  ;;  %v10687_v40 = vsub.s32 32, %v10664_v63  ;;  %v10689_v59 = vpop.eup %8148  ;;  %v2767_v25 = vsel %vm2684_vm12, %v2766_v44, %v10607_v13  ;;  %7837 = vmatpush3.msra.mxu0 %v25_v61  ;;  %7921 = vmatpush3.msra.mxu1 %v25_v61 }
 0x30e   :  { %v10676_v18 = vshll.u32 %v12350_v34, 8  ;;  %12351 = vst [vmem:[#allocation100_spill] sm:$0xff] %v10689_v59  ;;  %v3071_v20 = vadd.s32 127, %v3070_v2  ;;  %v2949_v3 = vsel %vm2947_vm0, %v2948_v1, %v10646_v21  ;;  %v3219_v51 = vshll.u32 %v12195_v12, %v10664_v63  ;;  %7838 = vmatprep.subr.mxu0 %v24_v58  ;;  %7906 = vmatprep.subr.mxu1 %v24_v58 }
 0x30f   :  { %v3068_v23 = vshrl.u32 %v3050_v22, %v3066_v27  ;;  %v2950_v35 = vadd.s32 %v2949_v3, %v2945_v45  ;;  %v3220_v9 = vshrl.u32 %v12183_v0, %v10687_v40  ;;  %v3223_v13 = vshrl.u32 %v12184_v11, %v10687_v40  ;;  %7839 = vmatpush3.msra.mxu0 %v24_v58 }
 0x310   :  { %v3072_v44 = vshll.u32 %v3071_v20, 23  ;;  %v10704_v21 = vshrl.u32 %v3214_v10, 5  ;;  %v3222_v5 = vshll.u32 %v12183_v0, %v10664_v63  ;;  %v3226_v2 = vshrl.u32 %v12185_v50, %v10687_v40  ;;  %7840 = vmatprep.subr.mxu0 %v23_v33  ;;  %7922 = vmatpush3.msra.mxu1 %v24_v58 }
 0x311   :  { %v3067_v22 = vshll.u32 %v10593_v48, %v3065_v54  ;;  %v2951_v27 = vadd.s32 536870912, %v2950_v35  ;;  %v3221_v1 = vor.u32 %v3220_v9, %v3219_v51  ;;  %v3225_v10 = vshll.u32 %v12184_v11, %v10664_v63  ;;  %7841 = vmatpush3.msra.mxu0 %v23_v33  ;;  %v22_v48 = vld [vmem:[%s12003_s3 + $0x8] sm:$0xff]  ;;  %7907 = vmatprep.subr.mxu1 %v23_v33 }
 0x312   :  { %v3073_v34 = vor.u32 4788187, %v3072_v44  ;;  %v3224_v45 = vor.u32 %v3223_v13, %v3222_v5  ;;  %v3228_v20 = vshll.u32 %v12185_v50, %v10664_v63  ;;  %v3229_v3 = vshrl.u32 %v12203_v19, %v10687_v40  ;;  %7842 = vmatprep.subr.mxu0 %v22_v48  ;;  %7923 = vmatpush3.msra.mxu1 %v23_v33 }
 0x313   :  { %v2770_v54 = vsel %vm10488_vm1, %v10255_v14, %v2767_v25  ;;  %v3069_v51 = vor.u32 %v3068_v23, %v3067_v22  ;;  %vm2892_vm12 = vcmp.lt.s32.totalorder %v10426_v26, 0  ;;  %v2952_v61 = vshrl.u32 %v2951_v27, 30  ;;  %7843 = vmatpush3.msra.mxu0 %v22_v48  ;;  %7908 = vmatprep.subr.mxu1 %v22_v48 }
 0x314   :  { %v3232_v9 = vshrl.u32 %v12204_v31, %v10687_v40  ;;  %v3087_v13 = vadd.s32 3, %v3083_v17  ;;  %v3227_v44 = vor.u32 %v3226_v2, %v3225_v10  ;;  %v3230_v5 = vor.u32 %v3229_v3, %v3228_v20  ;;  %7844 = vmatprep.subr.mxu0 %v21_v6  ;;  %7924 = vmatpush3.msra.mxu1 %v22_v48 }
 0x315   :  { %v3231_v47 = vshll.u32 %v12203_v19, %v10664_v63  ;;  %v3074_v25 = vand.u32 2147483647, %v3073_v34  ;;  %v10734_v23 = vand.u32 3, %v3083_v17  ;;  %v2953_v22 = vshll.u32 %v2952_v61, 30  ;;  %7845 = vmatpush3.msra.mxu0 %v21_v6  ;;  %7909 = vmatprep.subr.mxu1 %v21_v6 }
 0x316   :  { %vm3234_vm1 = vcmp.lt.s32.totalorder %v10704_v21, 1  ;;  %8152 = vcosq.f32 %v2770_v54  ;;  %v12353_v58 = vand.u32 2147483647, %v10426_v26  ;;  %vm3237_vm6 = vcmp.lt.s32.totalorder %v10704_v21, 4  ;;  %7925 = vmatpush3.msra.mxu1 %v21_v6  ;;  %v10777_v6 = vpop.f32.mrf.mxu0 }
 0x317   :  { %12352 = vst [vmem:[#allocation101_spill] sm:$0xff] %v10734_v23  ;;  %v3233_v63 = vor.u32 %v3232_v9, %v3231_v47  ;;  %v3242_v27 = vsel %vm3234_vm1, %v3221_v1, %v3224_v45  ;;  %v3076_v17 = vcvt.s32.f32 %v3069_v51  ;;  %v10746_v10 = vsub.s32 %v2950_v35, %v2953_v22  ;;  %12358 = vst [vmem:[#allocation104_spill] sm:$0xff] %v10777_v6 }
 0x318   :  { %vm10739_vm7 = vcmp.le.f32.partialorder %v12353_v58, 0.7853982  ;;  %vm3236_vm10 = vcmp.lt.s32.totalorder %v10704_v21, 3  ;;  %v3243_v33 = vsel %vm3237_vm6, %v3230_v5, 920167782  ;;  %v10751_v34 = vpop.eup %8150  ;;  %v2976_v20 = vsub.s32 4, %v2952_v61 }
 0x319   :  { %12356 = vst [vmem:[#allocation102_spill] sm:$0xff] %v10751_v34  ;;  %vm3235_vm11 = vcmp.lt.s32.totalorder %v10704_v21, 2  ;;  %v3239_v47 = vsel %vm3237_vm6, %v3227_v44, 2102212464  ;;  %v3244_v3 = vsel %vm3236_vm10, %v3227_v44, %v3243_v33  ;;  %v3077_v35 = vmul.f32 %v3076_v17, %v3074_v25 }
 0x31a   :  { %v2956_v51 = vsub.s32 0, %v10746_v10  ;;  %v3218_v9 = vshrl.u32 %v12195_v12, %v10687_v40  ;;  %v3245_v48 = vsel %vm3235_vm11, %v3242_v27, %v3244_v3  ;;  %v10763_v22 = vand.u32 3, %v3087_v13 }
 0x31b   :  { %v3246_v58 = vsel %vm3234_vm1, %v3224_v45, %v3227_v44  ;;  %v3247_v23 = vsel %vm3237_vm6, %v3233_v63, 1326507024  ;;  %v3101_v33 = vand.u32 2139095040, %v10649_v8  ;;  %v3240_v40 = vsel %vm3236_vm10, %v3224_v45, %v3239_v47 }
 0x31c   :  { %12357 = vst [vmem:[#allocation103_spill] sm:$0xff] %v10763_v22  ;;  %v7523_v25 = vmin.u32 %v2956_v51, %v10746_v10  ;;  %v3238_v17 = vsel %vm3234_vm1, %v3218_v9, %v3221_v1  ;;  %v3248_v13 = vsel %vm3236_vm10, %v3230_v5, %v3247_v23  ;;  %v2977_v44 = vsel %vm2892_vm12, %v2976_v20, %v2952_v61 }
 0x31d   :  { %v3249_v63 = vsel %vm3235_vm11, %v3246_v58, %v3248_v13  ;;  %v10784_v27 = vmul.u32.u64.low %v10676_v18, %v3245_v48  ;;  %v10785_v3 = vmul.u32.u64.high %v10676_v18, %v3245_v48, %v10784_v27  ;;  %v3078_v51 = vxor.u32 2147483648, %v3077_v35 }
 0x31e   :  { %v2958_v1 = vclz %v7523_v25  ;;  %v10788_v9 = vmul.u32.u64.low %v10676_v18, %v3249_v63  ;;  %v10789_v45 = vmul.u32.u64.high %v10676_v18, %v3249_v63, %v10788_v9  ;;  %8154 = vsinq.f32 %v2770_v54 }
 0x31f   :  { %v3241_v5 = vsel %vm3235_vm11, %v3238_v17, %v3240_v40  ;;  %v3102_v23 = vshrl.u32 %v3101_v33, 23  ;;  %v3413_v61 = vand.u32 2139095040, %v10777_v6  ;;  %v2979_v47 = vsel %vm10739_vm7, 0, %v2977_v44 }
 0x320   :  { %v7524_v20 = vadd.s32 4294967294, %v2958_v1  ;;  %v12359_v48 = vand.u32 2147483647, %v10649_v8  ;;  %v2946_v13 = vadd.s32 %v10645_v28, %v10657_v56  ;;  %v3260_v54 = vadd.s32 1, %v10785_v3 }
 0x321   :  { %v7530_v63 = vadd.s32 4294967169, %v3102_v23  ;;  %v3414_v21 = vshrl.u32 %v3413_v61, 23  ;;  %v3079_v33 = vsel %vm2996_vm5, %v3078_v51, %v3077_v35  ;;  %v3257_v17 = vmul.u32 %v10676_v18, %v3241_v5 }
 0x322   :  { %v3105_v58 = vand.u32 8388607, %v12359_v48  ;;  %vm7525_vm3 = vcmp.lt.s32.totalorder %v7524_v20, 0  ;;  %vm3259_vm13 = vc.u32 %v10789_v45, %v10784_v27  ;;  %v2983_v44 = vadd.s32 3, %v2979_v47 }
 0x323   :  { %v2961_v40 = vsel %vm7525_vm3, 0, %v7524_v20  ;;  %v3261_v1 = vsel %vm3259_vm13, %v3260_v54, %v10785_v3  ;;  %v3108_v9 = vadd.s32 1, %v7530_v63  ;;  %v10807_v48 = vpop.eup %8152  ;;  %v10812_v35 = vsel %vm10614_vm15, %v10362_v16, %v3079_v33 }
 0x324   :  { %12360 = vst [vmem:[#allocation105_spill] sm:$0xff] %v10807_v48  ;;  %v2962_v28 = vsub.s32 32, %v2961_v40  ;;  %v2966_v56 = vsub.s32 4294967266, %v2961_v40  ;;  %v3262_v25 = vadd.s32 %v3261_v1, %v3257_v17  ;;  %v3106_v23 = vor.u32 8388608, %v3105_v58 }
 0x325   :  { %vm3109_vm5 = vcmp.gt.s32.totalorder %v3108_v9, 0  ;;  %v7542_v18 = vadd.s32 4294967169, %v3414_v21  ;;  %v12361_v51 = vand.u32 2147483647, %v10777_v6  ;;  %v2963_v63 = vshll.u32 %v10746_v10, %v2961_v40 }
 0x326   :  { %v2964_v61 = vshrl.u32 %v2946_v13, %v2962_v28  ;;  %v2967_v20 = vadd.s32 127, %v2966_v56  ;;  %v3263_v3 = vadd.s32 536870912, %v3262_v25  ;;  %v3110_v54 = vsel %vm3109_vm5, %v3108_v9, 0 }
 0x327   :  { %v3417_v5 = vand.u32 8388607, %v12361_v51  ;;  %v10817_v22 = vand.u32 3, %v2983_v44  ;;  %v10819_v17 = vand.u32 3, %v2979_v47  ;;  %v3112_v58 = vand.u32 31, %v3110_v54 }
 0x328   :  { %8156 = vcosq.f32 %v10812_v35  ;;  %v2968_v55 = vshll.u32 %v2967_v20, 23  ;;  %v3264_v33 = vshrl.u32 %v3263_v3, 30  ;;  %v10822_v1 = vshll.u32 %v3106_v23, 8 }
 0x329   :  { %12362 = vst [vmem:[#allocation106_spill] sm:$0xff] %v10817_v22  ;;  %12363 = vst [vmem:[#allocation107_spill] sm:$0xff] %v10819_v17  ;;  %v2965_v21 = vor.u32 %v2964_v61, %v2963_v63  ;;  %vm3204_vm4 = vcmp.lt.s32.totalorder %v10507_v52, 0  ;;  %v10826_v13 = vadd.s32 %v10784_v27, %v10789_v45  ;;  %v3113_v9 = vsub.s32 32, %v3112_v58 }
 0x32a   :  { %v3420_v28 = vadd.s32 1, %v7542_v18  ;;  %v2969_v10 = vor.u32 4788187, %v2968_v55  ;;  %v3265_v40 = vshll.u32 %v3264_v33, 30  ;;  %v3111_v44 = vshrl.u32 %v3110_v54, 5  ;;  %v10839_v55 = vpop.f32.mrf.mxu0 }
 0x32b   :  { %v3418_v47 = vor.u32 8388608, %v3417_v5  ;;  %v3115_v56 = vshll.u32 %v12195_v12, %v3112_v58  ;;  %v3116_v51 = vshrl.u32 %v12183_v0, %v3113_v9  ;;  %v3119_v20 = vshrl.u32 %v12184_v11, %v3113_v9  ;;  %v10832_v61 = vpop.eup %8154 }
 0x32c   :  { %v3122_v23 = vshrl.u32 %v12185_v50, %v3113_v9  ;;  %12364 = vst [vmem:[#allocation108_spill] sm:$0xff] %v10832_v61  ;;  %v2970_v3 = vand.u32 2147483647, %v2969_v10  ;;  %v10834_v63 = vsub.s32 %v3262_v25, %v3265_v40  ;;  %v3118_v27 = vshll.u32 %v12183_v0, %v3112_v58 }
 0x32d   :  { %v3121_v45 = vshll.u32 %v12184_v11, %v3112_v58  ;;  %v2972_v18 = vcvt.s32.f32 %v2965_v21  ;;  %v3288_v54 = vsub.s32 4, %v3264_v33  ;;  %v3124_v5 = vshll.u32 %v12185_v50, %v3112_v58 }
 0x32e   :  { %vm3421_vm15 = vcmp.gt.s32.totalorder %v3420_v28, 0  ;;  %v3268_v16 = vsub.s32 0, %v10834_v63  ;;  %v3117_v17 = vor.u32 %v3116_v51, %v3115_v56  ;;  %v3120_v22 = vor.u32 %v3119_v20, %v3118_v27 }
 0x32f   :  { %v3123_v59 = vor.u32 %v3122_v23, %v3121_v45  ;;  %v2973_v34 = vmul.f32 %v2972_v18, %v2970_v3  ;;  %v3125_v25 = vshrl.u32 %v12203_v19, %v3113_v9  ;;  %v3127_v10 = vshll.u32 %v12203_v19, %v3112_v58 }
 0x330   :  { %v3128_v40 = vshrl.u32 %v12204_v31, %v3113_v9  ;;  %v12365_v21 = vand.u32 2147483647, %v10507_v52  ;;  %v7535_v48 = vmin.u32 %v3268_v16, %v10834_v63  ;;  %v3422_v61 = vsel %vm3421_vm15, %v3420_v28, 0 }
 0x331   :  { %v10852_v32 = vshll.u32 %v3418_v47, 8  ;;  %v3114_v51 = vshrl.u32 %v12195_v12, %v3113_v9  ;;  %v3126_v20 = vor.u32 %v3125_v25, %v3124_v5  ;;  %vm3133_vm2 = vcmp.lt.s32.totalorder %v3111_v44, 4 }
 0x332   :  { %vm10847_vm14 = vcmp.le.f32.partialorder %v12365_v21, 0.7853982  ;;  %v3129_v23 = vor.u32 %v3128_v40, %v3127_v10  ;;  %v3270_v58 = vclz %v7535_v48  ;;  %v3289_v3 = vsel %vm3204_vm4, %v3288_v54, %v3264_v33 }
 0x333   :  { %vm3130_vm8 = vcmp.lt.s32.totalorder %v3111_v44, 1  ;;  %v3135_v27 = vsel %vm3133_vm2, %v3123_v59, 2102212464  ;;  %v2974_v45 = vxor.u32 2147483648, %v2973_v34  ;;  %vm3132_vm9 = vcmp.lt.s32.totalorder %v3111_v44, 3 }
 0x334   :  { %v3138_v16 = vsel %vm3130_vm8, %v3117_v17, %v3120_v22  ;;  %v3139_v28 = vsel %vm3133_vm2, %v3126_v20, 920167782  ;;  %v7536_v47 = vadd.s32 4294967294, %v3270_v58  ;;  %vm3131_vm0 = vcmp.lt.s32.totalorder %v3111_v44, 2 }
 0x335   :  { %v3134_v18 = vsel %vm3130_vm8, %v3114_v51, %v3117_v17  ;;  %v3140_v21 = vsel %vm3132_vm9, %v3123_v59, %v3139_v28  ;;  %v10860_v9 = vpop.eup %8156  ;;  %v3136_v5 = vsel %vm3132_vm9, %v3120_v22, %v3135_v27  ;;  %v3142_v25 = vsel %vm3130_vm8, %v3120_v22, %v3123_v59 }
 0x336   :  { %12368 = vst [vmem:[#allocation109_spill] sm:$0xff] %v10860_v9  ;;  %v3141_v48 = vsel %vm3131_vm0, %v3138_v16, %v3140_v21  ;;  %v3143_v33 = vsel %vm3133_vm2, %v3129_v23, 1326507024  ;;  %vm7537_vm1 = vcmp.lt.s32.totalorder %v7536_v47, 0  ;;  %v2975_v58 = vsel %vm2892_vm12, %v2974_v45, %v2973_v34 }
 0x337   :  { %v3144_v54 = vsel %vm3132_vm9, %v3126_v20, %v3143_v33  ;;  %v10865_v10 = vmul.u32.u64.low %v10822_v1, %v3141_v48  ;;  %v10866_v40 = vmul.u32.u64.high %v10822_v1, %v3141_v48, %v10865_v10  ;;  %v3273_v17 = vsel %vm7537_vm1, 0, %v7536_v47 }
 0x338   :  { %v3145_v51 = vsel %vm3131_vm0, %v3142_v25, %v3144_v54  ;;  %v10872_v28 = vshrl.u32 %v3422_v61, 5  ;;  %v3274_v27 = vsub.s32 32, %v3273_v17  ;;  %v3278_v16 = vsub.s32 4294967266, %v3273_v17 }
 0x339   :  { %v3137_v59 = vsel %vm3131_vm0, %v3134_v18, %v3136_v5  ;;  %v3424_v22 = vand.u32 31, %v3422_v61  ;;  %v3275_v20 = vshll.u32 %v10834_v63, %v3273_v17  ;;  %v10878_v23 = vsel %vm10847_vm14, 0, %v3289_v3 }
 0x33a   :  { %v10881_v21 = vmul.u32.u64.low %v10822_v1, %v3145_v51  ;;  %v10882_v48 = vmul.u32.u64.high %v10822_v1, %v3145_v51, %v10881_v21  ;;  %v3276_v34 = vshrl.u32 %v10826_v13, %v3274_v27  ;;  %v3279_v45 = vadd.s32 127, %v3278_v16 }
 0x33b   :  { %v3156_v47 = vadd.s32 1, %v10866_v40  ;;  %v3425_v25 = vsub.s32 32, %v3424_v22  ;;  %v10889_v44 = vsel %vm10739_vm7, %v10426_v26, %v2975_v58  ;;  %v3153_v61 = vmul.u32 %v10822_v1, %v3137_v59 }
 0x33c   :  { %v3427_v63 = vshll.u32 %v12195_v12, %v3424_v22  ;;  %vm3442_vm12 = vcmp.lt.s32.totalorder %v10872_v28, 1  ;;  %v3277_v3 = vor.u32 %v3276_v34, %v3275_v20  ;;  %v3280_v18 = vshll.u32 %v3279_v45, 23 }
 0x33d   :  { %v3428_v5 = vshrl.u32 %v12183_v0, %v3425_v25  ;;  %v3430_v13 = vshll.u32 %v12183_v0, %v3424_v22  ;;  %vm3443_vm6 = vcmp.lt.s32.totalorder %v10872_v28, 2  ;;  %vm3155_vm10 = vc.u32 %v10882_v48, %v10865_v10 }
 0x33e   :  { %v3431_v2 = vshrl.u32 %v12184_v11, %v3425_v25  ;;  %v3433_v33 = vshll.u32 %v12184_v11, %v3424_v22  ;;  %v3434_v1 = vshrl.u32 %v12185_v50, %v3425_v25  ;;  %v3281_v54 = vor.u32 4788187, %v3280_v18 }
 0x33f   :  { %vm3100_vm7 = vcmp.lt.s32.totalorder %v10649_v8, 0  ;;  %v3157_v58 = vsel %vm3155_vm10, %v3156_v47, %v10866_v40  ;;  %v3429_v17 = vor.u32 %v3428_v5, %v3427_v63  ;;  %v3436_v51 = vshll.u32 %v12185_v50, %v3424_v22 }
 0x340   :  { %v3158_v27 = vadd.s32 %v3157_v58, %v3153_v61  ;;  %v3432_v16 = vor.u32 %v3431_v2, %v3430_v13  ;;  %v3435_v59 = vor.u32 %v3434_v1, %v3433_v33  ;;  %v3437_v20 = vshrl.u32 %v12203_v19, %v3425_v25 }
 0x341   :  { %v3282_v21 = vand.u32 2147483647, %v3281_v54  ;;  %v3284_v34 = vcvt.s32.f32 %v3277_v3  ;;  %v3439_v45 = vshll.u32 %v12203_v19, %v3424_v22  ;;  %v3440_v56 = vshrl.u32 %v12204_v31, %v3425_v25 }
 0x342   :  { %v12369_v18 = vand.u32 2147483647, %v10649_v8  ;;  %v3159_v40 = vadd.s32 536870912, %v3158_v27  ;;  %v3426_v47 = vshrl.u32 %v12195_v12, %v3425_v25  ;;  %v3438_v61 = vor.u32 %v3437_v20, %v3436_v51 }
 0x343   :  { %vm3444_vm3 = vcmp.lt.s32.totalorder %v10872_v28, 3  ;;  %v3285_v63 = vmul.f32 %v3284_v34, %v3282_v21  ;;  %v3441_v5 = vor.u32 %v3440_v56, %v3439_v45  ;;  %vm3445_vm13 = vcmp.lt.s32.totalorder %v10872_v28, 4 }
 0x344   :  { %vm10910_vm11 = vcmp.le.f32.partialorder %v12369_v18, 0.7853982  ;;  %v3450_v22 = vsel %vm3442_vm12, %v3429_v17, %v3432_v16  ;;  %v3160_v3 = vshrl.u32 %v3159_v40, 30  ;;  %v3447_v13 = vsel %vm3445_vm13, %v3435_v59, 2102212464 }
 0x345   :  { %v3451_v2 = vsel %vm3445_vm13, %v3438_v61, 920167782  ;;  %v3454_v33 = vsel %vm3442_vm12, %v3432_v16, %v3435_v59  ;;  %v3286_v1 = vxor.u32 2147483648, %v3285_v63  ;;  %v3446_v25 = vsel %vm3442_vm12, %v3426_v47, %v3429_v17 }
 0x346   :  { %v3452_v54 = vsel %vm3444_vm3, %v3435_v59, %v3451_v2  ;;  %v3455_v58 = vsel %vm3445_vm13, %v3441_v5, 1326507024  ;;  %v3161_v56 = vshll.u32 %v3160_v3, 30  ;;  %v3184_v51 = vsub.s32 4, %v3160_v3 }
 0x347   :  { %v3453_v20 = vsel %vm3443_vm6, %v3450_v22, %v3452_v54  ;;  %v3456_v21 = vsel %vm3444_vm3, %v3438_v61, %v3455_v58  ;;  %v3448_v34 = vsel %vm3444_vm3, %v3432_v16, %v3447_v13  ;;  %8158 = vsinq.f32 %v10812_v35  ;;  %v10950_v13 = vpop.f32.mrf.mxu0 }
 0x348   :  { %v3457_v45 = vsel %vm3443_vm6, %v3454_v33, %v3456_v21  ;;  %v10934_v17 = vmul.u32.u64.low %v10852_v32, %v3453_v20  ;;  %v10935_v18 = vmul.u32.u64.high %v10852_v32, %v3453_v20, %v10934_v17  ;;  %v10938_v59 = vsub.s32 %v3158_v27, %v3161_v56 }
 0x349   :  { %v3185_v40 = vsel %vm3100_vm7, %v3184_v51, %v3160_v3  ;;  %v12149_v47 = vand.u32 2147483647, %v10839_v55  ;;  %v3287_v61 = vsel %vm3204_vm4, %v3286_v1, %v3285_v63  ;;  %v3295_v16 = vadd.s32 3, %v10878_v23 }
 0x34a   :  { %v10947_v5 = vmul.u32.u64.low %v10852_v32, %v3457_v45  ;;  %v10948_v22 = vmul.u32.u64.high %v10852_v32, %v3457_v45, %v10947_v5  ;;  %8160 = vcosq.f32 %v10889_v44  ;;  %v10954_v35 = vand.u32 3, %v10878_v23 }
 0x34b   :  { %v3164_v27 = vsub.s32 0, %v10938_v59  ;;  %v3449_v3 = vsel %vm3443_vm6, %v3446_v25, %v3448_v34  ;;  %8162 = vsinq.f32 %v10889_v44  ;;  %v3187_v63 = vsel %vm10910_vm11, 0, %v3185_v40 }
 0x34c   :  { %12372 = vst [vmem:[#allocation110_spill] sm:$0xff] %v10954_v35  ;;  %v3468_v2 = vadd.s32 1, %v10935_v18  ;;  %v12373_v33 = vand.u32 2139095040, %v10839_v55  ;;  %v3290_v23 = vsel %vm10847_vm14, %v10507_v52, %v3287_v61  ;;  %v3313_v28 = vand.u32 8388607, %v12149_v47 }
 0x34d   :  { %v7531_v54 = vmin.u32 %v3164_v27, %v10938_v59  ;;  %v3621_v25 = vand.u32 2139095040, %v10950_v13  ;;  %v3465_v44 = vmul.u32 %v10852_v32, %v3449_v3  ;;  %vm3467_vm5 = vc.u32 %v10948_v22, %v10934_v17 }
 0x34e   :  { %v3310_v1 = vshrl.u32 %v12373_v33, 23  ;;  %v12148_v56 = vand.u32 2147483647, %v10950_v13  ;;  %v3191_v20 = vadd.s32 3, %v3187_v63  ;;  %vm3412_vm4 = vcmp.lt.s32.totalorder %v10777_v6, 0 }
 0x34f   :  { %v3166_v51 = vclz %v7531_v54  ;;  %v3469_v14 = vsel %vm3467_vm5, %v3468_v2, %v10935_v18  ;;  %v3622_v21 = vshrl.u32 %v3621_v25, 23  ;;  %8164 = vcosq.f32 %v3290_v23  ;;  %v10993_v2 = vpop.f32.mrf.mxu0 }
 0x350   :  { %v7538_v58 = vadd.s32 4294967169, %v3310_v1  ;;  %v10977_v34 = vand.u32 3, %v3295_v16  ;;  %v3470_v45 = vadd.s32 %v3469_v14, %v3465_v44  ;;  %8166 = vsinq.f32 %v3290_v23 }
 0x351   :  { %v3154_v32 = vadd.s32 %v10865_v10, %v10882_v48  ;;  %v7532_v61 = vadd.s32 4294967294, %v3166_v51  ;;  %v12375_v5 = vand.u32 2147483647, %v10777_v6  ;;  %v3314_v3 = vor.u32 8388608, %v3313_v28 }
 0x352   :  { %12374 = vst [vmem:[#allocation111_spill] sm:$0xff] %v10977_v34  ;;  %v3316_v40 = vadd.s32 1, %v7538_v58  ;;  %v10987_v33 = vand.u32 3, %v3187_v63  ;;  %v3471_v18 = vadd.s32 536870912, %v3470_v45  ;;  %v10991_v16 = vand.u32 8388607, %v12148_v56 }
 0x353   :  { %vm10983_vm15 = vcmp.le.f32.partialorder %v12375_v5, 0.7853982  ;;  %vm7533_vm2 = vcmp.lt.s32.totalorder %v7532_v61, 0  ;;  %v10995_v10 = vand.u32 3, %v3191_v20  ;;  %v7550_v1 = vadd.s32 4294967169, %v3622_v21 }
 0x354   :  { %12378 = vst [vmem:[#allocation112_spill] sm:$0xff] %v10987_v33  ;;  %vm3317_vm14 = vcmp.gt.s32.totalorder %v3316_v40, 0  ;;  %v3169_v23 = vsel %vm7533_vm2, 0, %v7532_v61  ;;  %v10998_v54 = vadd.s32 %v10934_v17, %v10948_v22  ;;  %v3472_v28 = vshrl.u32 %v3471_v18, 30  ;;  %v11003_v14 = vpop.eup %8158 }
 0x355   :  { %12379 = vst [vmem:[#allocation113_spill] sm:$0xff] %v10995_v10  ;;  %v3318_v48 = vsel %vm3317_vm14, %v3316_v40, 0  ;;  %v3170_v25 = vsub.s32 32, %v3169_v23  ;;  %v3174_v44 = vsub.s32 4294967266, %v3169_v23  ;;  %v11000_v58 = vshll.u32 %v3314_v3, 8  ;;  %12380 = vst [vmem:[#allocation114_spill] sm:$0xff] %v11003_v14 }
 0x356   :  { %v3320_v63 = vand.u32 31, %v3318_v48  ;;  %v3473_v5 = vshll.u32 %v3472_v28, 30  ;;  %v3496_v56 = vsub.s32 4, %v3472_v28  ;;  %v3171_v21 = vshll.u32 %v10938_v59, %v3169_v23 }
 0x357   :  { %v3172_v61 = vshrl.u32 %v3154_v32, %v3170_v25  ;;  %v3175_v17 = vadd.s32 127, %v3174_v44  ;;  %v11007_v22 = vadd.s32 1, %v7550_v1  ;;  %v11009_v18 = vpop.eup %8160  ;;  %v3319_v51 = vshrl.u32 %v3318_v48, 5 }
 0x358   :  { %v3321_v20 = vsub.s32 32, %v3320_v63  ;;  %12381 = vst [vmem:[#allocation115_spill] sm:$0xff] %v11009_v18  ;;  %v11011_v47 = vsub.s32 %v3470_v45, %v3473_v5  ;;  %v3497_v3 = vsel %vm3412_vm4, %v3496_v56, %v3472_v28  ;;  %v11016_v35 = vpop.eup %8162  ;;  %v3323_v59 = vshll.u32 %v12195_v12, %v3320_v63 }
 0x359   :  { %12382 = vst [vmem:[#allocation116_spill] sm:$0xff] %v11016_v35  ;;  %v3173_v34 = vor.u32 %v3172_v61, %v3171_v21  ;;  %v3176_v40 = vshll.u32 %v3175_v17, 23  ;;  %v3499_v45 = vsel %vm10983_vm15, 0, %v3497_v3  ;;  %v3326_v23 = vshll.u32 %v12183_v0, %v3320_v63 }
 0x35a   :  { %v3324_v52 = vshrl.u32 %v12183_v0, %v3321_v20  ;;  %v3327_v32 = vshrl.u32 %v12184_v11, %v3321_v20  ;;  %v3476_v1 = vsub.s32 0, %v11011_v47  ;;  %v3329_v56 = vshll.u32 %v12184_v11, %v3320_v63 }
 0x35b   :  { %v3177_v48 = vor.u32 4788187, %v3176_v40  ;;  %v3180_v28 = vcvt.s32.f32 %v3173_v34  ;;  %v3330_v44 = vshrl.u32 %v12185_v50, %v3321_v20  ;;  %v3332_v61 = vshll.u32 %v12185_v50, %v3320_v63 }
 0x35c   :  { %v3325_v25 = vor.u32 %v3324_v52, %v3323_v59  ;;  %v7543_v5 = vmin.u32 %v3476_v1, %v11011_v47  ;;  %v3328_v21 = vor.u32 %v3327_v32, %v3326_v23  ;;  %v3333_v17 = vshrl.u32 %v12203_v19, %v3321_v20  ;;  %v11029_v33 = vpop.eup %8164 }
 0x35d   :  { %12383 = vst [vmem:[#allocation117_spill] sm:$0xff] %v11029_v33  ;;  %v3178_v10 = vand.u32 2147483647, %v3177_v48  ;;  %v3331_v3 = vor.u32 %v3330_v44, %v3329_v56  ;;  %v3335_v14 = vshll.u32 %v12203_v19, %v3320_v63  ;;  %v3336_v26 = vshrl.u32 %v12204_v31, %v3321_v20  ;;  %v11033_v40 = vpop.eup %8166 }
 0x35e   :  { %12384 = vst [vmem:[#allocation118_spill] sm:$0xff] %v11033_v40  ;;  %v3478_v52 = vclz %v7543_v5  ;;  %v3322_v34 = vshrl.u32 %v12195_v12, %v3321_v20  ;;  %v3334_v59 = vor.u32 %v3333_v17, %v3332_v61  ;;  %vm3629_vm8 = vcmp.gt.s32.totalorder %v11007_v22, 0 }
 0x35f   :  { %v3181_v32 = vmul.f32 %v3180_v28, %v3178_v10  ;;  %v3503_v1 = vadd.s32 3, %v3499_v45  ;;  %v3337_v23 = vor.u32 %v3336_v26, %v3335_v14  ;;  %vm3338_vm9 = vcmp.lt.s32.totalorder %v3319_v51, 1 }
 0x360   :  { %v7544_v18 = vadd.s32 4294967294, %v3478_v52  ;;  %vm3339_vm0 = vcmp.lt.s32.totalorder %v3319_v51, 2  ;;  %vm3341_vm1 = vcmp.lt.s32.totalorder %v3319_v51, 4  ;;  %v3346_v56 = vsel %vm3338_vm9, %v3325_v25, %v3328_v21 }
 0x361   :  { %v3182_v63 = vxor.u32 2147483648, %v3181_v32  ;;  %vm3340_vm12 = vcmp.lt.s32.totalorder %v3319_v51, 3  ;;  %v3343_v48 = vsel %vm3341_vm1, %v3331_v3, 2102212464  ;;  %v3347_v44 = vsel %vm3341_vm1, %v3334_v59, 920167782 }
 0x362   :  { %vm7545_vm6 = vcmp.lt.s32.totalorder %v7544_v18, 0  ;;  %v3348_v5 = vsel %vm3340_vm12, %v3331_v3, %v3347_v44  ;;  %v3350_v20 = vsel %vm3338_vm9, %v3328_v21, %v3331_v3  ;;  %v3351_v61 = vsel %vm3341_vm1, %v3337_v23, 1326507024 }
 0x363   :  { %v3183_v10 = vsel %vm3100_vm7, %v3182_v63, %v3181_v32  ;;  %v3481_v28 = vsel %vm7545_vm6, 0, %v7544_v18  ;;  %v3349_v26 = vsel %vm3339_vm0, %v3346_v56, %v3348_v5  ;;  %v3352_v14 = vsel %vm3340_vm12, %v3334_v59, %v3351_v61 }
 0x364   :  { %v3482_v17 = vsub.s32 32, %v3481_v28  ;;  %v3486_v52 = vsub.s32 4294967266, %v3481_v28  ;;  %v3342_v33 = vsel %vm3338_vm9, %v3322_v34, %v3325_v25  ;;  %v3344_v40 = vsel %vm3340_vm12, %v3328_v21, %v3343_v48 }
 0x365   :  { %v3186_v35 = vsel %vm10910_vm11, %v10649_v8, %v3183_v10  ;;  %v3353_v44 = vsel %vm3339_vm0, %v3350_v20, %v3352_v14  ;;  %v11048_v3 = vmul.u32.u64.low %v11000_v58, %v3349_v26  ;;  %v11049_v23 = vmul.u32.u64.high %v11000_v58, %v3349_v26, %v11048_v3 }
 0x366   :  { %v3483_v18 = vshll.u32 %v11011_v47, %v3481_v28  ;;  %v3484_v59 = vshrl.u32 %v10998_v54, %v3482_v17  ;;  %v3487_v32 = vadd.s32 127, %v3486_v52  ;;  %v3517_v56 = vand.u32 2139095040, %v10993_v2 }
 0x367   :  { %v3345_v25 = vsel %vm3339_vm0, %v3342_v33, %v3344_v40  ;;  %v11057_v21 = vmul.u32.u64.low %v11000_v58, %v3353_v44  ;;  %v11058_v9 = vmul.u32.u64.high %v11000_v58, %v3353_v44, %v11057_v21  ;;  %v3630_v34 = vsel %vm3629_vm8, %v11007_v22, 0 }
 0x368   :  { %8168 = vcosq.f32 %v3186_v35  ;;  %v3485_v63 = vor.u32 %v3484_v59, %v3483_v18  ;;  %v3488_v48 = vshll.u32 %v3487_v32, 23  ;;  %v3632_v5 = vand.u32 31, %v3630_v34 }
 0x369   :  { %8170 = vsinq.f32 %v3186_v35  ;;  %v11063_v47 = vand.u32 3, %v3503_v1  ;;  %v11065_v54 = vand.u32 3, %v3499_v45  ;;  %v3364_v51 = vadd.s32 1, %v11049_v23 }
 0x36a   :  { %v3489_v33 = vor.u32 4788187, %v3488_v48  ;;  %v3361_v40 = vmul.u32 %v11000_v58, %v3345_v25  ;;  %v3633_v20 = vsub.s32 32, %v3632_v5  ;;  %v12387_v61 = vor.u32 8388608, %v10991_v16 }
 0x36b   :  { %12385 = vst [vmem:[#allocation119_spill] sm:$0xff] %v11063_v47  ;;  %12386 = vst [vmem:[#allocation120_spill] sm:$0xff] %v11065_v54  ;;  %v3492_v22 = vcvt.s32.f32 %v3485_v63  ;;  %vm3363_vm10 = vc.u32 %v11058_v9, %v11048_v3  ;;  %v3631_v28 = vshrl.u32 %v3630_v34, 5  ;;  %v3635_v35 = vshll.u32 %v12195_v12, %v3632_v5 }
 0x36c   :  { %v11071_v10 = vshll.u32 %v12387_v61, 8  ;;  %v3490_v1 = vand.u32 2147483647, %v3489_v33  ;;  %vm3308_vm7 = vcmp.lt.s32.totalorder %v10839_v55, 0  ;;  %v3365_v45 = vsel %vm3363_vm10, %v3364_v51, %v11049_v23 }
 0x36d   :  { %v3636_v26 = vshrl.u32 %v12183_v0, %v3633_v20  ;;  %v3638_v58 = vshll.u32 %v12183_v0, %v3632_v5  ;;  %v12388_v16 = vand.u32 2147483647, %v10839_v55  ;;  %v3366_v17 = vadd.s32 %v3365_v45, %v3361_v40 }
 0x36e   :  { %v3639_v52 = vshrl.u32 %v12184_v11, %v3633_v20  ;;  %v3641_v44 = vshll.u32 %v12184_v11, %v3632_v5  ;;  %v3642_v18 = vshrl.u32 %v12185_v50, %v3633_v20  ;;  %v3493_v59 = vmul.f32 %v3492_v22, %v3490_v1 }
 0x36f   :  { %vm11082_vm11 = vcmp.le.f32.partialorder %v12388_v16, 0.7853982  ;;  %v3637_v32 = vor.u32 %v3636_v26, %v3635_v35  ;;  %v3644_v23 = vshll.u32 %v12185_v50, %v3632_v5  ;;  %v3645_v25 = vshrl.u32 %v12203_v19, %v3633_v20 }
 0x370   :  { %v3367_v21 = vadd.s32 536870912, %v3366_v17  ;;  %v3640_v34 = vor.u32 %v3639_v52, %v3638_v58  ;;  %v3643_v63 = vor.u32 %v3642_v18, %v3641_v44  ;;  %v3648_v48 = vshrl.u32 %v12204_v31, %v3633_v20 }
 0x371   :  { %v3494_v51 = vxor.u32 2147483648, %v3493_v59  ;;  %v3646_v33 = vor.u32 %v3645_v25, %v3644_v23  ;;  %v3647_v40 = vshll.u32 %v12203_v19, %v3632_v5  ;;  %v3518_v61 = vshrl.u32 %v3517_v56, 23 }
 0x372   :  { %v3368_v45 = vshrl.u32 %v3367_v21, 30  ;;  %v3634_v16 = vshrl.u32 %v12195_v12, %v3633_v20  ;;  %vm3653_vm3 = vcmp.lt.s32.totalorder %v3631_v28, 4  ;;  %v12391_v22 = vand.u32 2147483647, %v10993_v2 }
 0x373   :  { %v3649_v1 = vor.u32 %v3648_v48, %v3647_v40  ;;  %vm3650_vm13 = vcmp.lt.s32.totalorder %v3631_v28, 1  ;;  %vm3652_vm5 = vcmp.lt.s32.totalorder %v3631_v28, 3  ;;  %v3655_v26 = vsel %vm3653_vm3, %v3643_v63, 2102212464 }
 0x374   :  { %v3521_v35 = vand.u32 8388607, %v12391_v22  ;;  %v3495_v58 = vsel %vm3412_vm4, %v3494_v51, %v3493_v59  ;;  %v3369_v52 = vshll.u32 %v3368_v45, 30  ;;  %v3392_v44 = vsub.s32 4, %v3368_v45 }
 0x375   :  { %v3658_v18 = vsel %vm3650_vm13, %v3637_v32, %v3640_v34  ;;  %vm3651_vm14 = vcmp.lt.s32.totalorder %v3631_v28, 2  ;;  %v3654_v56 = vsel %vm3650_vm13, %v3634_v16, %v3637_v32  ;;  %v3656_v5 = vsel %vm3652_vm5, %v3640_v34, %v3655_v26  ;;  %v11101_v23 = vpop.eup %8168 }
 0x376   :  { %v3659_v20 = vsel %vm3653_vm3, %v3646_v33, 920167782  ;;  %v11103_v25 = vsub.s32 %v3366_v17, %v3369_v52  ;;  %v3393_v21 = vsel %vm3308_vm7, %v3392_v44, %v3368_v45  ;;  %v3662_v40 = vsel %vm3650_vm13, %v3640_v34, %v3643_v63  ;;  %v11108_v59 = vpop.eup %8170 }
 0x377   :  { %v3660_v48 = vsel %vm3652_vm5, %v3643_v63, %v3659_v20  ;;  %v3498_v32 = vsel %vm10983_vm15, %v10777_v6, %v3495_v58  ;;  %v3395_v51 = vsel %vm11082_vm11, 0, %v3393_v21  ;;  %v3663_v17 = vsel %vm3653_vm3, %v3649_v1, 1326507024 }
 0x378   :  { %v3661_v16 = vsel %vm3651_vm14, %v3658_v18, %v3660_v48  ;;  %v3372_v22 = vsub.s32 0, %v11103_v25  ;;  %v3399_v26 = vadd.s32 3, %v3395_v51  ;;  %v3657_v45 = vsel %vm3651_vm14, %v3654_v56, %v3656_v5 }
 0x379   :  { %v3664_v34 = vsel %vm3652_vm5, %v3646_v33, %v3663_v17  ;;  %v11122_v52 = vmul.u32.u64.low %v11071_v10, %v3661_v16  ;;  %v11123_v27 = vmul.u32.u64.high %v11071_v10, %v3661_v16, %v11122_v52  ;;  %v7546_v58 = vadd.s32 4294967169, %v3518_v61 }
 0x37a   :  { %v3665_v63 = vsel %vm3651_vm14, %v3662_v40, %v3664_v34  ;;  %8172 = vcosq.f32 %v3498_v32  ;;  %v7539_v44 = vmin.u32 %v3372_v22, %v11103_v25  ;;  %v3362_v56 = vadd.s32 %v11048_v3, %v11058_v9 }
 0x37b   :  { %v11127_v18 = vmul.u32.u64.low %v11071_v10, %v3665_v63  ;;  %v11128_v1 = vmul.u32.u64.high %v11071_v10, %v3665_v63, %v11127_v18  ;;  %8174 = vsinq.f32 %v3498_v32  ;;  %v3522_v5 = vor.u32 8388608, %v3521_v35 }
 0x37c   :  { %v3524_v33 = vadd.s32 1, %v7546_v58  ;;  %v3374_v28 = vclz %v7539_v44  ;;  %v11132_v20 = vand.u32 3, %v3399_v26  ;;  %v11134_v21 = vand.u32 3, %v3395_v51 }
 0x37d   :  { %v3673_v61 = vmul.u32 %v11071_v10, %v3657_v45  ;;  %v3676_v48 = vadd.s32 1, %v11123_v27  ;;  %v12162_v40 = vxor.u32 2147483648, %v8785_v15  ;;  %v12161_v16 = vxor.u32 2147483648, %v8702_v46 }
 0x37e   :  { %vm3525_vm4 = vcmp.gt.s32.totalorder %v3524_v33, 0  ;;  %v7540_v32 = vadd.s32 4294967294, %v3374_v28  ;;  %vm3675_vm15 = vc.u32 %v11128_v1, %v11122_v52  ;;  %vm490_vm2 = vcmp.eq.s32.totalorder %v8638_v53, 0 }
 0x37f   :  { %v3526_v3 = vsel %vm3525_vm4, %v3524_v33, 0  ;;  %vm3620_vm8 = vcmp.lt.s32.totalorder %v10950_v13, 0  ;;  %v3677_v9 = vsel %vm3675_vm15, %v3676_v48, %v11123_v27  ;;  %v11144_v51 = vshll.u32 %v3522_v5, 8 }
 0x380   :  { %v3528_v35 = vand.u32 31, %v3526_v3  ;;  %vm493_vm9 = vcmp.eq.s32.totalorder %v8638_v53, 2  ;;  %vm7541_vm0 = vcmp.lt.s32.totalorder %v7540_v32, 0  ;;  %v12392_v10 = vand.u32 2147483647, %v10950_v13 }
 0x381   :  { %v11154_v22 = vadd.s32 %v11122_v52, %v11128_v1  ;;  %v3678_v26 = vadd.s32 %v3677_v9, %v3673_v61  ;;  %v11156_v45 = vshrl.u32 %v3526_v3, 5  ;;  %v3377_v34 = vsel %vm7541_vm0, 0, %v7540_v32 }
 0x382   :  { %vm11149_vm1 = vcmp.le.f32.partialorder %v12392_v10, 0.7853982  ;;  %v3529_v63 = vsub.s32 32, %v3528_v35  ;;  %v11161_v27 = vsel %vm490_vm2, %v8702_v46, %v12162_v40  ;;  %v11166_v58 = vsel %vm493_vm9, %v12161_v16, %v8785_v15 }
 0x383   :  { %v3378_v44 = vsub.s32 32, %v3377_v34  ;;  %v3382_v18 = vsub.s32 4294967266, %v3377_v34  ;;  %v3679_v5 = vadd.s32 536870912, %v3678_v26  ;;  %v3531_v52 = vshll.u32 %v12195_v12, %v3528_v35 }
 0x384   :  { %v3379_v1 = vshll.u32 %v11103_v25, %v3377_v34  ;;  %v3532_v33 = vshrl.u32 %v12183_v0, %v3529_v63  ;;  %v3534_v28 = vshll.u32 %v12183_v0, %v3528_v35  ;;  %v3535_v61 = vshrl.u32 %v12184_v11, %v3529_v63 }
 0x385   :  { %v3380_v48 = vshrl.u32 %v3362_v56, %v3378_v44  ;;  %v3383_v32 = vadd.s32 127, %v3382_v18  ;;  %v3680_v3 = vshrl.u32 %v3679_v5, 30  ;;  %v3538_v9 = vshrl.u32 %v12185_v50, %v3529_v63 }
 0x386   :  { %v3530_v10 = vshrl.u32 %v12195_v12, %v3529_v63  ;;  %v3533_v16 = vor.u32 %v3532_v33, %v3531_v52  ;;  %v3537_v40 = vshll.u32 %v12184_v11, %v3528_v35  ;;  %v3541_v6 = vshrl.u32 %v12203_v19, %v3529_v63 }
 0x387   :  { %v3381_v54 = vor.u32 %v3380_v48, %v3379_v1  ;;  %v3384_v25 = vshll.u32 %v3383_v32, 23  ;;  %v3681_v34 = vshll.u32 %v3680_v3, 30  ;;  %v3704_v47 = vsub.s32 4, %v3680_v3  ;;  %v11178_v0 = vpop.eup %8172 }
 0x388   :  { %vm489_vm12 = vcmp.lt.s32.totalorder %v8638_v53, 2  ;;  %v3536_v56 = vor.u32 %v3535_v61, %v3534_v28  ;;  %v3540_v44 = vshll.u32 %v12185_v50, %v3528_v35  ;;  %v3543_v18 = vshll.u32 %v12203_v19, %v3528_v35  ;;  %v11184_v11 = vpop.eup %8174  ;;  %v12395_v35 = vld [vmem:[#allocation8_spill] sm:$0xff] }
 0x389   :  { %v3544_v12 = vshrl.u32 %v12204_v31, %v3529_v63  ;;  %vm486_vm6 = vweird.f32 %v8359_v36  ;;  %v3385_v5 = vor.u32 4788187, %v3384_v25  ;;  %v11186_v52 = vsub.s32 %v3678_v26, %v3681_v34 }
 0x38a   :  { %v3705_v1 = vsel %vm3620_vm8, %v3704_v47, %v3680_v3  ;;  %v3539_v33 = vor.u32 %v3538_v9, %v3537_v40  ;;  %v3388_v48 = vcvt.s32.f32 %v3381_v54  ;;  %v3542_v50 = vor.u32 %v3541_v6, %v3540_v44 }
 0x38b   :  { %v3707_v28 = vsel %vm11149_vm1, 0, %v3705_v1  ;;  %v3545_v61 = vor.u32 %v3544_v12, %v3543_v18  ;;  %v3386_v19 = vand.u32 2147483647, %v3385_v5  ;;  %v3684_v31 = vsub.s32 0, %v11186_v52 }
 0x38c   :  { %vm3546_vm10 = vcmp.lt.s32.totalorder %v11156_v45, 1  ;;  %vm3547_vm3 = vcmp.lt.s32.totalorder %v11156_v45, 2  ;;  %vm3855_vm13 = vcmp.eq.s32.totalorder %v12395_v35, 0  ;;  %v3711_v26 = vadd.s32 3, %v3707_v28 }
 0x38d   :  { %vm3548_vm5 = vcmp.lt.s32.totalorder %v11156_v45, 3  ;;  %vm3549_vm14 = vcmp.lt.s32.totalorder %v11156_v45, 4  ;;  %v3550_v47 = vsel %vm3546_vm10, %v3530_v10, %v3533_v16  ;;  %v3389_v54 = vmul.f32 %v3388_v48, %v3386_v19 }
 0x38e   :  { %v7551_v40 = vmin.u32 %v3684_v31, %v11186_v52  ;;  %v3551_v6 = vsel %vm3549_vm14, %v3539_v33, 2102212464  ;;  %v3554_v63 = vsel %vm3546_vm10, %v3533_v16, %v3536_v56  ;;  %vm3854_vm4 = vcmp.lt.s32.totalorder %v12395_v35, 2 }
 0x38f   :  { %v3552_v32 = vsel %vm3548_vm5, %v3536_v56, %v3551_v6  ;;  %v3555_v3 = vsel %vm3549_vm14, %v3542_v50, 920167782  ;;  %v3558_v9 = vsel %vm3546_vm10, %v3536_v56, %v3539_v33  ;;  %v3559_v25 = vsel %vm3549_vm14, %v3545_v61, 1326507024 }
 0x390   :  { %v3390_v34 = vxor.u32 2147483648, %v3389_v54  ;;  %v3686_v44 = vclz %v7551_v40  ;;  %v11202_v18 = vand.u32 3, %v3707_v28  ;;  %v3556_v10 = vsel %vm3548_vm5, %v3539_v33, %v3555_v3 }
 0x391   :  { %v3553_v12 = vsel %vm3547_vm3, %v3550_v47, %v3552_v32  ;;  %v3557_v16 = vsel %vm3547_vm3, %v3554_v63, %v3556_v10  ;;  %v3560_v5 = vsel %vm3548_vm5, %v3542_v50, %v3559_v25  ;;  %v496_v56 = vsel %vm489_vm12, %v11161_v27, %v11166_v58  ;;  %v12396_v47 = vld [vmem:[#allocation5_spill] sm:$0xff]  ;;  %v12400_v25 = vld [vmem:[#allocation14_spill] sm:$0xff] }
 0x392   :  { %v3391_v1 = vsel %vm3308_vm7, %v3390_v34, %v3389_v54  ;;  %v7552_v48 = vadd.s32 4294967294, %v3686_v44  ;;  %v3561_v33 = vsel %vm3547_vm3, %v3558_v9, %v3560_v5  ;;  %v497_v28 = vsel %vm486_vm6, nan, %v496_v56  ;;  %v12399_v9 = vld [vmem:[#allocation13_spill] sm:$0xff]  ;;  %v12402_v5 = vld [vmem:[#allocation3_spill] sm:$0xff] }
 0x393   :  { %v3394_v61 = vsel %vm11082_vm11, %v10839_v55, %v3391_v1  ;;  %v11225_v50 = vand.u32 3, %v3711_v26  ;;  %v11228_v19 = vmul.u32.u64.low %v11144_v51, %v3561_v33  ;;  %v11229_v53 = vmul.u32.u64.high %v11144_v51, %v3561_v33, %v11228_v19  ;;  %v12404_v1 = vld [vmem:[#allocation26_spill] sm:$0xff] }
 0x394   :  { %vm7553_vm15 = vcmp.lt.s32.totalorder %v7552_v48, 0  ;;  %v11232_v27 = vmul.u32.u64.low %v11144_v51, %v3557_v16  ;;  %v11233_v58 = vmul.u32.u64.high %v11144_v51, %v3557_v16, %v11232_v27  ;;  %v3569_v45 = vmul.u32 %v11144_v51, %v3553_v12 }
 0x395   :  { %v3689_v31 = vsel %vm7553_vm15, 0, %v7552_v48  ;;  %v3728_v54 = vmul.f32 %v12396_v47, %v497_v28  ;;  %v12397_v40 = vxor.u32 2147483648, %v8785_v15  ;;  %vm3858_vm7 = vcmp.eq.s32.totalorder %v12395_v35, 2 }
 0x396   :  { %8176 = vcosq.f32 %v3394_v61  ;;  %v3690_v26 = vsub.s32 32, %v3689_v31  ;;  %v3694_v6 = vsub.s32 4294967266, %v3689_v31  ;;  %v12398_v63 = vxor.u32 2147483648, %v8702_v46 }
 0x397   :  { %v3857_v14 = vsel %vm3855_vm13, %v8702_v46, %v12397_v40  ;;  %v3691_v51 = vshll.u32 %v11186_v52, %v3689_v31  ;;  %vm3571_vm11 = vc.u32 %v11229_v53, %v11232_v27  ;;  %v7095_v34 = vadd.f32 %v12400_v25, %v12399_v9  ;;  %v12401_v46 = vld [vmem:[#allocation6_spill] sm:$0xff]  ;;  %v12403_v52 = vld [vmem:[#allocation17_spill] sm:$0xff]  ;;  %v12408_v31 = vld [vmem:[#allocation23_spill] sm:$0xff] }
 0x398   :  { %v3860_v32 = vsel %vm3858_vm7, %v12398_v63, %v8785_v15  ;;  %v3692_v44 = vshrl.u32 %v11154_v22, %v3690_v26  ;;  %v3695_v10 = vadd.s32 127, %v3694_v6  ;;  %v3572_v12 = vadd.s32 1, %v11233_v58  ;;  %v12409_v63 = vld [vmem:[#allocation15_spill] sm:$0xff] }
 0x399   :  { %v3861_v3 = vsel %vm3854_vm4, %v3857_v14, %v3860_v32  ;;  %vm694_vm2 = vweird.f32 %v12402_v5  ;;  %vm697_vm9 = vcmp.lt.s32.totalorder %v12403_v52, 2  ;;  %vm698_vm0 = vcmp.eq.s32.totalorder %v12403_v52, 0 }
 0x39a   :  { %v3862_v16 = vsel %vm486_vm6, nan, %v3861_v3  ;;  %v3693_v35 = vor.u32 %v3692_v44, %v3691_v51  ;;  %v3696_v56 = vshll.u32 %v3695_v10, 23  ;;  %vm3516_vm12 = vcmp.lt.s32.totalorder %v10993_v2, 0 }
 0x39b   :  { %v7062_v15 = vmul.f32 %v12401_v46, %v3862_v16  ;;  %v3573_v22 = vsel %vm3571_vm11, %v3572_v12, %v11233_v58  ;;  %v699_v48 = vxor.u32 2147483648, %v12404_v1  ;;  %v12405_v33 = vand.u32 2147483647, %v10993_v2 }
 0x39c   :  { %v3574_v28 = vadd.s32 %v3573_v22, %v3569_v45  ;;  %vm701_vm6 = vcmp.eq.s32.totalorder %v12403_v52, 2  ;;  %v702_v40 = vxor.u32 2147483648, %v12408_v31  ;;  %v3697_v14 = vor.u32 4788187, %v3696_v56  ;;  %v12410_v56 = vld [vmem:[#allocation2_spill] sm:$0xff]  ;;  %v12411_v22 = vld [vmem:[#allocation11_spill] sm:$0xff] }
 0x39d   :  { %vm11265_vm10 = vcmp.le.f32.partialorder %v12405_v33, 0.7853982  ;;  %v7094_v19 = vadd.f32 %v7062_v15, %v3728_v54  ;;  %v3700_v26 = vcvt.s32.f32 %v3693_v35  ;;  %v700_v6 = vsel %vm698_vm0, %v12408_v31, %v699_v48  ;;  %v12413_v33 = vld [vmem:[#allocation19_spill] sm:$0xff] }
 0x39e   :  { %vm4060_vm3 = vcmp.lt.s32.totalorder %v12409_v63, 2  ;;  %v3575_v58 = vadd.s32 536870912, %v3574_v28  ;;  %v703_v32 = vsel %vm701_vm6, %v702_v40, %v12404_v1  ;;  %vm4061_vm13 = vcmp.eq.s32.totalorder %v12409_v63, 0 }
 0x39f   :  { %7846 = vmatprep.mubr.f32.mxu0 %v7094_v19  ;;  %vm4064_vm5 = vcmp.eq.s32.totalorder %v12409_v63, 2  ;;  %v3698_v45 = vand.u32 2147483647, %v3697_v14  ;;  %v704_v54 = vsel %vm697_vm9, %v700_v6, %v703_v32  ;;  %v4063_v51 = vsel %vm4061_vm13, %v12408_v31, %v699_v48 }
 0x3a0   :  { %7847 = vmatmul.mubr.f32.vlgmr.msra.gmra.mxu0 %v7095_v34  ;;  %v4066_v3 = vsel %vm4064_vm5, %v702_v40, %v12404_v1  ;;  %8178 = vsinq.f32 %v3394_v61  ;;  %v3576_v9 = vshrl.u32 %v3575_v58, 30  ;;  %v705_v25 = vsel %vm694_vm2, nan, %v704_v54  ;;  %v12412_v1 = vld [vmem:[#allocation22_spill] sm:$0xff] }
 0x3a1   :  { %v4067_v44 = vsel %vm4060_vm3, %v4063_v51, %v4066_v3  ;;  %v3701_v10 = vmul.f32 %v3700_v26, %v3698_v45  ;;  %v11283_v12 = vadd.s32 %v11232_v27, %v11229_v53  ;;  %v3730_v16 = vmul.f32 %v12396_v47, %v705_v25  ;;  %v12414_v58 = vld [vmem:[#allocation10_spill] sm:$0xff] }
 0x3a2   :  { %v4068_v34 = vsel %vm694_vm2, nan, %v4067_v44  ;;  %v3577_v15 = vshll.u32 %v3576_v9, 30  ;;  %v3600_v52 = vsub.s32 4, %v3576_v9  ;;  %vm798_vm14 = vweird.f32 %v12410_v56  ;;  %v12415_v44 = vld [vmem:[#allocation7_spill] sm:$0xff] }
 0x3a3   :  { %v7064_v35 = vmul.f32 %v12401_v46, %v4068_v34  ;;  %v3702_v61 = vxor.u32 2147483648, %v3701_v10  ;;  %vm802_vm4 = vcmp.eq.s32.totalorder %v12411_v22, 0  ;;  %v803_v48 = vxor.u32 2147483648, %v12412_v1  ;;  %v11293_v53 = vpop.eup %8176  ;;  %v12416_v34 = vld [vmem:[#allocation27_spill] sm:$0xff] }
 0x3a4   :  { %v806_v19 = vxor.u32 2147483648, %v12413_v33  ;;  %v11295_v27 = vsub.s32 %v3574_v28, %v3577_v15  ;;  %v3601_v5 = vsel %vm3516_vm12, %v3600_v52, %v3576_v9  ;;  %vm805_vm15 = vcmp.eq.s32.totalorder %v12411_v22, 2 }
 0x3a5   :  { %v7096_v31 = vadd.f32 %v7064_v35, %v3730_v16  ;;  %v3703_v40 = vsel %vm3620_vm8, %v3702_v61, %v3701_v10  ;;  %v3603_v14 = vsel %vm11265_vm10, 0, %v3601_v5  ;;  %v804_v26 = vsel %vm802_vm4, %v12413_v33, %v803_v48 }
 0x3a6   :  { %v807_v6 = vsel %vm805_vm15, %v806_v19, %v12412_v1  ;;  %v3706_v28 = vsel %vm11149_vm1, %v10950_v13, %v3703_v40  ;;  %v3580_v63 = vsub.s32 0, %v11295_v27  ;;  %vm801_vm7 = vcmp.lt.s32.totalorder %v12411_v22, 2 }
 0x3a7   :  { %7849 = vmatprep.mubr.f32.mxu0 %v7096_v31  ;;  %vm4163_vm11 = vcmp.lt.s32.totalorder %v12414_v58, 2  ;;  %8180 = vcosq.f32 %v3706_v28  ;;  %v11312_v32 = vadd.s32 3, %v3603_v14  ;;  %v11314_v45 = vand.u32 3, %v3603_v14 }
 0x3a8   :  { %v808_v54 = vsel %vm801_vm7, %v804_v26, %v807_v6  ;;  %v7547_v51 = vmin.u32 %v3580_v63, %v11295_v27  ;;  %vm4164_vm8 = vcmp.eq.s32.totalorder %v12414_v58, 0  ;;  %vm4167_vm1 = vcmp.eq.s32.totalorder %v12414_v58, 2 }
 0x3a9   :  { %v809_v3 = vsel %vm798_vm14, nan, %v808_v54  ;;  %v4166_v9 = vsel %vm4164_vm8, %v12413_v33, %v803_v48  ;;  %v4169_v25 = vsel %vm4167_vm1, %v806_v19, %v12412_v1  ;;  %vm902_vm2 = vweird.f32 %v12415_v44  ;;  %v12417_v1 = vld [vmem:[#allocation24_spill] sm:$0xff] }
 0x3aa   :  { %v3731_v17 = vmul.f32 %v12396_v47, %v809_v3  ;;  %v3582_v10 = vclz %v7547_v51  ;;  %v4170_v16 = vsel %vm4163_vm11, %v4166_v9, %v4169_v25  ;;  %vm905_vm9 = vcmp.lt.s32.totalorder %v12416_v34, 2  ;;  %v12418_v54 = vld [vmem:[#allocation4_spill] sm:$0xff] }
 0x3ab   :  { %vm906_vm0 = vcmp.eq.s32.totalorder %v12416_v34, 0  ;;  %v4171_v15 = vsel %vm798_vm14, nan, %v4170_v16  ;;  %v907_v52 = vxor.u32 2147483648, %v9285_v62  ;;  %vm909_vm6 = vcmp.eq.s32.totalorder %v12416_v34, 2  ;;  %v12421_v16 = vld [vmem:[#allocation30_spill] sm:$0xff] }
 0x3ac   :  { %v910_v35 = vxor.u32 2147483648, %v9265_v24  ;;  %v7548_v61 = vadd.s32 4294967294, %v3582_v10  ;;  %v7065_v22 = vmul.f32 %v12401_v46, %v4171_v15  ;;  %vm4266_vm3 = vcmp.lt.s32.totalorder %v12417_v1, 2  ;;  %v12422_v15 = vld [vmem:[#allocation18_spill] sm:$0xff] }
 0x3ad   :  { %vm4267_vm13 = vcmp.eq.s32.totalorder %v12417_v1, 0  ;;  %v11335_v48 = vpop.eup %8178  ;;  %v908_v33 = vsel %vm906_vm0, %v9265_v24, %v907_v52  ;;  %vm4270_vm5 = vcmp.eq.s32.totalorder %v12417_v1, 2  ;;  %8182 = vsinq.f32 %v3706_v28 }
 0x3ae   :  { %v911_v56 = vsel %vm909_vm6, %v910_v35, %v9285_v62  ;;  %v4269_v19 = vsel %vm4267_vm13, %v9265_v24, %v907_v52  ;;  %vm7549_vm14 = vcmp.lt.s32.totalorder %v7548_v61, 0  ;;  %v7097_v5 = vadd.f32 %v7065_v22, %v3731_v17  ;;  %v12419_v17 = vld [vmem:[#allocation21_spill] sm:$0xff] }
 0x3af   :  { %v912_v31 = vsel %vm905_vm9, %v908_v33, %v911_v56  ;;  %v4272_v40 = vsel %vm4270_vm5, %v910_v35, %v9285_v62  ;;  %v3585_v14 = vsel %vm7549_vm14, 0, %v7548_v61  ;;  %vm1006_vm4 = vweird.f32 %v12418_v54  ;;  %v12420_v62 = vld [vmem:[#allocation31_spill] sm:$0xff]  ;;  %v12423_v54 = vld [vmem:[#allocation12_spill] sm:$0xff] }
 0x3b0   :  { %v913_v26 = vsel %vm902_vm2, nan, %v912_v31  ;;  %v4273_v6 = vsel %vm4266_vm3, %v4269_v19, %v4272_v40  ;;  %v3586_v63 = vsub.s32 32, %v3585_v14  ;;  %v3590_v58 = vsub.s32 4294967266, %v3585_v14  ;;  %7850 = vmatmul.mubr.f32.gmra.mxu0 %v7097_v5 }
 0x3b1   :  { %v3732_v24 = vmul.f32 %v12396_v47, %v913_v26  ;;  %v3587_v51 = vshll.u32 %v11295_v27, %v3585_v14  ;;  %v4274_v3 = vsel %vm902_vm2, nan, %v4273_v6  ;;  %vm1009_vm15 = vcmp.lt.s32.totalorder %v12419_v17, 2 }
 0x3b2   :  { %v1011_v28 = vxor.u32 2147483648, %v12420_v62  ;;  %v3588_v9 = vshrl.u32 %v11283_v12, %v3586_v63  ;;  %v3591_v25 = vadd.s32 127, %v3590_v58  ;;  %v7066_v10 = vmul.f32 %v12401_v46, %v4274_v3 }
 0x3b3   :  { %vm1010_vm7 = vcmp.eq.s32.totalorder %v12419_v17, 0  ;;  %vm1013_vm11 = vcmp.eq.s32.totalorder %v12419_v17, 2  ;;  %v1014_v27 = vxor.u32 2147483648, %v12421_v16  ;;  %vm4370_vm8 = vcmp.eq.s32.totalorder %v12422_v15, 0 }
 0x3b4   :  { %v1012_v34 = vsel %vm1010_vm7, %v12421_v16, %v1011_v28  ;;  %v11360_v44 = vpop.eup %8180  ;;  %v3589_v52 = vor.u32 %v3588_v9, %v3587_v51  ;;  %v3592_v35 = vshll.u32 %v3591_v25, 23  ;;  %v7098_v61 = vadd.f32 %v7066_v10, %v3732_v24 }
 0x3b5   :  { %v4372_v12 = vsel %vm4370_vm8, %v12421_v16, %v1011_v28  ;;  %v1015_v22 = vsel %vm1013_vm11, %v1014_v27, %v12420_v62  ;;  %vm4369_vm1 = vcmp.lt.s32.totalorder %v12422_v15, 2  ;;  %vm4373_vm2 = vcmp.eq.s32.totalorder %v12422_v15, 2  ;;  %v12424_v15 = vld [vmem:[#allocation9_spill] sm:$0xff] }
 0x3b6   :  { %v1111_v1 = vadd.s32 3, %v9332_v42  ;;  %v3593_v33 = vor.u32 4788187, %v3592_v35  ;;  %v3596_v56 = vcvt.s32.f32 %v3589_v52  ;;  %7852 = vmatprep.mubr.f32.mxu0 %v7098_v61  ;;  %v1016_v19 = vsel %vm1009_vm15, %v1012_v34, %v1015_v22 }
 0x3b7   :  { %v4375_v5 = vsel %vm4373_vm2, %v1014_v27, %v12420_v62  ;;  %v1017_v31 = vsel %vm1006_vm4, nan, %v1016_v19  ;;  %v1115_v26 = vxor.u32 2147483648, %v9411_v43  ;;  %v1118_v24 = vxor.u32 2147483648, %v9408_v49 }
 0x3b8   :  { %v4376_v40 = vsel %vm4369_vm1, %v4372_v12, %v4375_v5  ;;  %v1112_v14 = vand.u32 3, %v1111_v1  ;;  %v3594_v6 = vand.u32 2147483647, %v3593_v33  ;;  %v3733_v63 = vmul.f32 %v12396_v47, %v1017_v31  ;;  %v12426_v12 = vld [vmem:[#allocation39_spill] sm:$0xff]  ;;  %v12428_v31 = vld [vmem:[#allocation29_spill] sm:$0xff] }
 0x3b9   :  { %v4377_v58 = vsel %vm1006_vm4, nan, %v4376_v40  ;;  %v4471_v28 = vand.u32 3, %v9332_v42  ;;  %v11382_v9 = vand.u32 3, %v11312_v32  ;;  %vm1110_vm3 = vweird.f32 %v12423_v54  ;;  %v12425_v32 = vld [vmem:[#allocation32_spill] sm:$0xff]  ;;  %v12432_v54 = vld [vmem:[#allocation38_spill] sm:$0xff] }
 0x3ba   :  { %v7067_v51 = vmul.f32 %v12401_v46, %v4377_v58  ;;  %vm1113_vm9 = vcmp.lt.s32.totalorder %v1112_v14, 2  ;;  %vm1114_vm0 = vcmp.eq.s32.totalorder %v1112_v14, 0  ;;  %vm1117_vm6 = vcmp.eq.s32.totalorder %v1112_v14, 2  ;;  %v11385_v16 = vpop.eup %8182  ;;  %v12429_v58 = vld [vmem:[#allocation20_spill] sm:$0xff] }
 0x3bb   :  { %v3597_v3 = vmul.f32 %v3596_v56, %v3594_v6  ;;  %v1116_v17 = vsel %vm1114_vm0, %v9408_v49, %v1115_v26  ;;  %v1119_v62 = vsel %vm1117_vm6, %v1118_v24, %v9411_v43  ;;  %vm4473_vm13 = vcmp.eq.s32.totalorder %v4471_v28, 0 }
 0x3bc   :  { %v7099_v25 = vadd.f32 %v7067_v51, %v3733_v63  ;;  %v1120_v10 = vsel %vm1113_vm9, %v1116_v17, %v1119_v62  ;;  %vm1214_vm5 = vweird.f32 %v12424_v15  ;;  %vm4472_vm14 = vcmp.lt.s32.totalorder %v4471_v28, 2 }
 0x3bd   :  { %v3598_v34 = vxor.u32 2147483648, %v3597_v3  ;;  %v1121_v27 = vsel %vm1110_vm3, nan, %v1120_v10  ;;  %v4475_v42 = vsel %vm4473_vm13, %v9408_v49, %v1115_v26  ;;  %vm4476_vm4 = vcmp.eq.s32.totalorder %v4471_v28, 2  ;;  %v12427_v49 = vld [vmem:[#allocation34_spill] sm:$0xff] }
 0x3be   :  { %7853 = vmatmul.mubr.f32.gmra.mxu0 %v7099_v25  ;;  %vm1217_vm15 = vcmp.lt.s32.totalorder %v12425_v32, 2  ;;  %v3734_v35 = vmul.f32 %v12396_v47, %v1121_v27  ;;  %v4478_v61 = vsel %vm4476_vm4, %v1118_v24, %v9411_v43  ;;  %v1219_v22 = vxor.u32 2147483648, %v12426_v12  ;;  %v12431_v28 = vld [vmem:[#allocation46_spill] sm:$0xff] }
 0x3bf   :  { %v3599_v52 = vsel %vm3516_vm12, %v3598_v34, %v3597_v3  ;;  %v4479_v33 = vsel %vm4472_vm14, %v4475_v42, %v4478_v61  ;;  %vm1218_vm7 = vcmp.eq.s32.totalorder %v12425_v32, 0  ;;  %v1222_v56 = vxor.u32 2147483648, %v12427_v49  ;;  %v12430_v3 = vld [vmem:[#allocation42_spill] sm:$0xff]  ;;  %v12433_v61 = vld [vmem:[#allocation37_spill] sm:$0xff] }
 0x3c0   :  { %v3602_v1 = vsel %vm11265_vm10, %v10993_v2, %v3599_v52  ;;  %v4480_v19 = vsel %vm1110_vm3, nan, %v4479_v33  ;;  %v1220_v5 = vsel %vm1218_vm7, %v12427_v49, %v1219_v22  ;;  %vm1221_vm12 = vcmp.eq.s32.totalorder %v12425_v32, 2 }
 0x3c1   :  { %vm4576_vm11 = vcmp.eq.s32.totalorder %v12428_v31, 0  ;;  %8184 = vcosq.f32 %v3602_v1  ;;  %v7068_v43 = vmul.f32 %v12401_v46, %v4480_v19  ;;  %v1223_v36 = vsel %vm1221_vm12, %v1222_v56, %v12426_v12 }
 0x3c2   :  { %v4578_v40 = vsel %vm4576_vm11, %v12427_v49, %v1219_v22  ;;  %8186 = vsinq.f32 %v3602_v1  ;;  %v1224_v14 = vsel %vm1217_vm15, %v1220_v5, %v1223_v36  ;;  %vm4575_vm10 = vcmp.lt.s32.totalorder %v12428_v31, 2  ;;  %v12434_v1 = vld [vmem:[#allocation45_spill] sm:$0xff] }
 0x3c3   :  { %vm4579_vm8 = vcmp.eq.s32.totalorder %v12428_v31, 2  ;;  %v7100_v26 = vadd.f32 %v7068_v43, %v3734_v35  ;;  %v1225_v6 = vsel %vm1214_vm5, nan, %v1224_v14  ;;  %vm1318_vm1 = vweird.f32 %v12429_v58  ;;  %v12436_v31 = vld [vmem:[#allocation36_spill] sm:$0xff]  ;;  %v12438_v58 = vld [vmem:[#allocation50_spill] sm:$0xff] }
 0x3c4   :  { %v4581_v63 = vsel %vm4579_vm8, %v1222_v56, %v12426_v12  ;;  %v3735_v24 = vmul.f32 %v12396_v47, %v1225_v6  ;;  %vm1322_vm2 = vcmp.eq.s32.totalorder %v12430_v3, 0  ;;  %v1323_v17 = vxor.u32 2147483648, %v9668_v7  ;;  %v12435_v56 = vld [vmem:[#allocation41_spill] sm:$0xff] }
 0x3c5   :  { %v4582_v51 = vsel %vm4575_vm10, %v4578_v40, %v4581_v63  ;;  %7855 = vmatprep.mubr.f32.mxu1 %v7100_v26  ;;  %vm1325_vm9 = vcmp.eq.s32.totalorder %v12430_v3, 2  ;;  %v1326_v25 = vxor.u32 2147483648, %v12431_v28  ;;  %vm4679_vm0 = vcmp.eq.s32.totalorder %v12432_v54, 0  ;;  %v12437_v26 = vld [vmem:[#allocation16_spill] sm:$0xff] }
 0x3c6   :  { %v4583_v62 = vsel %vm1214_vm5, nan, %v4582_v51  ;;  %v1324_v34 = vsel %vm1322_vm2, %v12431_v28, %v1323_v17  ;;  %v4681_v27 = vsel %vm4679_vm0, %v12431_v28, %v1323_v17  ;;  %vm4682_vm6 = vcmp.eq.s32.totalorder %v12432_v54, 2 }
 0x3c7   :  { %v7069_v10 = vmul.f32 %v12401_v46, %v4583_v62  ;;  %vm1321_vm3 = vcmp.lt.s32.totalorder %v12430_v3, 2  ;;  %v1327_v42 = vsel %vm1325_vm9, %v1326_v25, %v9668_v7  ;;  %vm4678_vm13 = vcmp.lt.s32.totalorder %v12432_v54, 2  ;;  %v12439_v54 = vld [vmem:[#allocation53_spill] sm:$0xff] }
 0x3c8   :  { %v4684_v15 = vsel %vm4682_vm6, %v1326_v25, %v9668_v7  ;;  %v1328_v52 = vsel %vm1321_vm3, %v1324_v34, %v1327_v42  ;;  %vm1425_vm5 = vcmp.lt.s32.totalorder %v12433_v61, 2  ;;  %vm1426_vm14 = vcmp.eq.s32.totalorder %v12433_v61, 0 }
 0x3c9   :  { %v7101_v32 = vadd.f32 %v7069_v10, %v3735_v24  ;;  %v4685_v35 = vsel %vm4678_vm13, %v4681_v27, %v4684_v15  ;;  %v1329_v12 = vsel %vm1318_vm1, nan, %v1328_v52  ;;  %v1427_v33 = vxor.u32 2147483648, %v12434_v1  ;;  %v12440_v27 = vld [vmem:[#allocation49_spill] sm:$0xff] }
 0x3ca   :  { %v4686_v22 = vsel %vm1318_vm1, nan, %v4685_v35  ;;  %v3736_v49 = vmul.f32 %v12396_v47, %v1329_v12  ;;  %vm1429_vm4 = vcmp.eq.s32.totalorder %v12433_v61, 2  ;;  %v1430_v19 = vxor.u32 2147483648, %v12435_v56  ;;  %v12441_v35 = vld [vmem:[#allocation28_spill] sm:$0xff] }
 0x3cb   :  { %7856 = vmatmul.mubr.f32.vlgmr.msra.gmra.mxu1 %v7101_v32  ;;  %v7070_v7 = vmul.f32 %v12401_v46, %v4686_v22  ;;  %v1428_v5 = vsel %vm1426_vm14, %v12435_v56, %v1427_v33  ;;  %vm4781_vm15 = vcmp.lt.s32.totalorder %v12436_v31, 2  ;;  %vm4782_vm7 = vcmp.eq.s32.totalorder %v12436_v31, 0  ;;  %v12442_v22 = vld [vmem:[#allocation47_spill] sm:$0xff] }
 0x3cc   :  { %vm4785_vm12 = vcmp.eq.s32.totalorder %v12436_v31, 2  ;;  %v1431_v36 = vsel %vm1429_vm4, %v1430_v19, %v12434_v1  ;;  %v4784_v40 = vsel %vm4782_vm7, %v12435_v56, %v1427_v33  ;;  %vm1422_vm11 = vweird.f32 %v12437_v26 }
 0x3cd   :  { %v7102_v43 = vadd.f32 %v7070_v7, %v3736_v49  ;;  %v4787_v14 = vsel %vm4785_vm12, %v1430_v19, %v12434_v1  ;;  %v1432_v6 = vsel %vm1425_vm5, %v1428_v5, %v1431_v36  ;;  %vm1529_vm10 = vcmp.lt.s32.totalorder %v12438_v58, 2  ;;  %v12443_v49 = vld [vmem:[#allocation52_spill] sm:$0xff] }
 0x3ce   :  { %v4788_v63 = vsel %vm4781_vm15, %v4784_v40, %v4787_v14  ;;  %v11456_v24 = vpop.eup %8184  ;;  %v1433_v51 = vsel %vm1422_vm11, nan, %v1432_v6  ;;  %vm1530_vm8 = vcmp.eq.s32.totalorder %v12438_v58, 0  ;;  %v1531_v17 = vxor.u32 2147483648, %v9763_v39  ;;  %v12446_v6 = vld [vmem:[#allocation25_spill] sm:$0xff] }
 0x3cf   :  { %7858 = vmatprep.mubr.f32.mxu1 %v7102_v43  ;;  %v4789_v3 = vsel %vm1422_vm11, nan, %v4788_v63  ;;  %v11460_v62 = vpop.eup %8186  ;;  %v3737_v28 = vmul.f32 %v12396_v47, %v1433_v51  ;;  %vm1533_vm1 = vcmp.eq.s32.totalorder %v12438_v58, 2  ;;  %v1534_v10 = vxor.u32 2147483648, %v12439_v54  ;;  %v12445_v43 = vld [vmem:[#allocation43_spill] sm:$0xff] }
 0x3d0   :  { %v7071_v25 = vmul.f32 %v12401_v46, %v4789_v3  ;;  %v1532_v34 = vsel %vm1530_vm8, %v12439_v54, %v1531_v17  ;;  %vm4884_vm2 = vcmp.lt.s32.totalorder %v12440_v27, 2  ;;  %vm4885_vm9 = vcmp.eq.s32.totalorder %v12440_v27, 0  ;;  %v12447_v51 = vld [vmem:[#allocation59_spill] sm:$0xff] }
 0x3d1   :  { %vm4888_vm0 = vcmp.eq.s32.totalorder %v12440_v27, 2  ;;  %v1535_v15 = vsel %vm1533_vm1, %v1534_v10, %v9763_v39  ;;  %v4887_v32 = vsel %vm4885_vm9, %v12439_v54, %v1531_v17  ;;  %vm1526_vm6 = vweird.f32 %v12441_v35 }
 0x3d2   :  { %v7103_v42 = vadd.f32 %v7071_v25, %v3737_v28  ;;  %v4890_v52 = vsel %vm4888_vm0, %v1534_v10, %v9763_v39  ;;  %v1536_v61 = vsel %vm1529_vm10, %v1532_v34, %v1535_v15  ;;  %vm1633_vm3 = vcmp.lt.s32.totalorder %v12442_v22, 2  ;;  %v12444_v39 = vld [vmem:[#allocation51_spill] sm:$0xff]  ;;  %v12448_v10 = vld [vmem:[#allocation64_spill] sm:$0xff] }
 0x3d3   :  { %v4891_v12 = vsel %vm4884_vm2, %v4887_v32, %v4890_v52  ;;  %v1537_v1 = vsel %vm1526_vm6, nan, %v1536_v61  ;;  %vm1634_vm13 = vcmp.eq.s32.totalorder %v12442_v22, 0  ;;  %v1635_v7 = vxor.u32 2147483648, %v12443_v49  ;;  %v12450_v61 = vld [vmem:[#allocation35_spill] sm:$0xff] }
 0x3d4   :  { %7859 = vmatmul.mubr.f32.gmra.mxu1 %v7103_v42  ;;  %v4892_v33 = vsel %vm1526_vm6, nan, %v4891_v12  ;;  %v3738_v56 = vmul.f32 %v12396_v47, %v1537_v1  ;;  %vm1637_vm5 = vcmp.eq.s32.totalorder %v12442_v22, 2  ;;  %v1638_v5 = vxor.u32 2147483648, %v12444_v39  ;;  %v12449_v42 = vld [vmem:[#allocation57_spill] sm:$0xff]  ;;  %v12451_v1 = vld [vmem:[#allocation56_spill] sm:$0xff] }
 0x3d5   :  { %v7072_v19 = vmul.f32 %v12401_v46, %v4892_v33  ;;  %v1636_v31 = vsel %vm1634_vm13, %v12444_v39, %v1635_v7  ;;  %vm4987_vm14 = vcmp.lt.s32.totalorder %v12445_v43, 2  ;;  %vm4988_vm4 = vcmp.eq.s32.totalorder %v12445_v43, 0 }
 0x3d6   :  { %vm4991_vm15 = vcmp.eq.s32.totalorder %v12445_v43, 2  ;;  %v1639_v40 = vsel %vm1637_vm5, %v1638_v5, %v12443_v49  ;;  %v4990_v14 = vsel %vm4988_vm4, %v12444_v39, %v1635_v7  ;;  %vm1630_vm7 = vweird.f32 %v12446_v6  ;;  %v12452_v7 = vld [vmem:[#allocation63_spill] sm:$0xff]  ;;  %v12454_v43 = vld [vmem:[#allocation54_spill] sm:$0xff]  ;;  %v12455_v6 = vld [vmem:[#allocation33_spill] sm:$0xff] }
 0x3d7   :  { %v7104_v36 = vadd.f32 %v7072_v19, %v3738_v56  ;;  %v4993_v26 = vsel %vm4991_vm15, %v1638_v5, %v12443_v49  ;;  %v1640_v63 = vsel %vm1633_vm3, %v1636_v31, %v1639_v40  ;;  %vm1737_vm12 = vcmp.lt.s32.totalorder %v12447_v51, 2 }
 0x3d8   :  { %v4994_v58 = vsel %vm4987_vm14, %v4990_v14, %v4993_v26  ;;  %v1641_v3 = vsel %vm1630_vm7, nan, %v1640_v63  ;;  %vm1738_vm11 = vcmp.eq.s32.totalorder %v12447_v51, 0  ;;  %v1739_v28 = vxor.u32 2147483648, %v9958_v37 }
 0x3d9   :  { %7861 = vmatprep.mubr.f32.mxu1 %v7104_v36  ;;  %v4995_v17 = vsel %vm1630_vm7, nan, %v4994_v58  ;;  %v3739_v25 = vmul.f32 %v12396_v47, %v1641_v3  ;;  %vm1741_vm10 = vcmp.eq.s32.totalorder %v12447_v51, 2  ;;  %v1742_v34 = vxor.u32 2147483648, %v12448_v10  ;;  %v12456_v51 = vld [vmem:[#allocation67_spill] sm:$0xff] }
 0x3da   :  { %v7073_v54 = vmul.f32 %v12401_v46, %v4995_v17  ;;  %v1740_v27 = vsel %vm1738_vm11, %v12448_v10, %v1739_v28  ;;  %vm5090_vm8 = vcmp.lt.s32.totalorder %v12449_v42, 2  ;;  %vm5091_vm1 = vcmp.eq.s32.totalorder %v12449_v42, 0 }
 0x3db   :  { %vm5094_vm2 = vcmp.eq.s32.totalorder %v12449_v42, 2  ;;  %v1743_v32 = vsel %vm1741_vm10, %v1742_v34, %v9958_v37  ;;  %v5093_v52 = vsel %vm5091_vm1, %v12448_v10, %v1739_v28  ;;  %vm1734_vm9 = vweird.f32 %v12450_v61  ;;  %v12457_v10 = vld [vmem:[#allocation75_spill] sm:$0xff]  ;;  %v12458_v42 = vld [vmem:[#allocation66_spill] sm:$0xff]  ;;  %v12459_v61 = vld [vmem:[#allocation44_spill] sm:$0xff] }
 0x3dc   :  { %v7105_v15 = vadd.f32 %v7073_v54, %v3739_v25  ;;  %v5096_v35 = vsel %vm5094_vm2, %v1742_v34, %v9958_v37  ;;  %v1744_v12 = vsel %vm1737_vm12, %v1740_v27, %v1743_v32  ;;  %vm1841_vm0 = vcmp.lt.s32.totalorder %v12451_v1, 2  ;;  %v12453_v37 = vld [vmem:[#allocation62_spill] sm:$0xff] }
 0x3dd   :  { %v5097_v22 = vsel %vm5090_vm8, %v5093_v52, %v5096_v35  ;;  %v1745_v33 = vsel %vm1734_vm9, nan, %v1744_v12  ;;  %vm1842_vm6 = vcmp.eq.s32.totalorder %v12451_v1, 0  ;;  %v1843_v56 = vxor.u32 2147483648, %v12452_v7 }
 0x3de   :  { %7862 = vmatmul.mubr.f32.gmra.mxu1 %v7105_v15  ;;  %v5098_v49 = vsel %vm1734_vm9, nan, %v5097_v22  ;;  %v3740_v19 = vmul.f32 %v12396_v47, %v1745_v33  ;;  %vm1845_vm3 = vcmp.eq.s32.totalorder %v12451_v1, 2  ;;  %v1846_v5 = vxor.u32 2147483648, %v12453_v37  ;;  %v12460_v1 = vld [vmem:[#allocation60_spill] sm:$0xff] }
 0x3df   :  { %v7074_v39 = vmul.f32 %v12401_v46, %v5098_v49  ;;  %v1844_v31 = vsel %vm1842_vm6, %v12453_v37, %v1843_v56  ;;  %vm5193_vm13 = vcmp.lt.s32.totalorder %v12454_v43, 2  ;;  %vm5194_vm5 = vcmp.eq.s32.totalorder %v12454_v43, 0 }
 0x3e0   :  { %vm5197_vm14 = vcmp.eq.s32.totalorder %v12454_v43, 2  ;;  %v1847_v40 = vsel %vm1845_vm3, %v1846_v5, %v12452_v7  ;;  %v5196_v14 = vsel %vm5194_vm5, %v12453_v37, %v1843_v56  ;;  %vm1838_vm4 = vweird.f32 %v12455_v6 }
 0x3e1   :  { %v7106_v36 = vadd.f32 %v7074_v39, %v3740_v19  ;;  %v5199_v26 = vsel %vm5197_vm14, %v1846_v5, %v12452_v7  ;;  %v1848_v63 = vsel %vm1841_vm0, %v1844_v31, %v1847_v40  ;;  %vm1945_vm15 = vcmp.lt.s32.totalorder %v12456_v51, 2  ;;  %v12461_v7 = vld [vmem:[#allocation71_spill] sm:$0xff]  ;;  %v12463_v31 = vld [vmem:[#allocation61_spill] sm:$0xff] }
 0x3e2   :  { %v5200_v58 = vsel %vm5193_vm13, %v5196_v14, %v5199_v26  ;;  %v1849_v3 = vsel %vm1838_vm4, nan, %v1848_v63  ;;  %vm1946_vm7 = vcmp.eq.s32.totalorder %v12456_v51, 0  ;;  %v1947_v28 = vxor.u32 2147483648, %v10138_v30  ;;  %v12464_v26 = vld [vmem:[#allocation40_spill] sm:$0xff] }
 0x3e3   :  { %7864 = vmatprep.mubr.f32.mxu1 %v7106_v36  ;;  %v5201_v17 = vsel %vm1838_vm4, nan, %v5200_v58  ;;  %v3741_v25 = vmul.f32 %v12396_v47, %v1849_v3  ;;  %vm1949_vm12 = vcmp.eq.s32.totalorder %v12456_v51, 2  ;;  %v1950_v34 = vxor.u32 2147483648, %v12457_v10  ;;  %v12465_v58 = vld [vmem:[#allocation78_spill] sm:$0xff] }
 0x3e4   :  { %v7075_v54 = vmul.f32 %v12401_v46, %v5201_v17  ;;  %v1948_v27 = vsel %vm1946_vm7, %v12457_v10, %v1947_v28  ;;  %vm5296_vm11 = vcmp.lt.s32.totalorder %v12458_v42, 2  ;;  %vm5297_vm10 = vcmp.eq.s32.totalorder %v12458_v42, 0 }
 0x3e5   :  { %vm5300_vm8 = vcmp.eq.s32.totalorder %v12458_v42, 2  ;;  %v1951_v32 = vsel %vm1949_vm12, %v1950_v34, %v10138_v30  ;;  %v5299_v52 = vsel %vm5297_vm10, %v12457_v10, %v1947_v28  ;;  %vm1942_vm1 = vweird.f32 %v12459_v61 }
 0x3e6   :  { %v7107_v15 = vadd.f32 %v7075_v54, %v3741_v25  ;;  %v5302_v35 = vsel %vm5300_vm8, %v1950_v34, %v10138_v30  ;;  %v1952_v12 = vsel %vm1945_vm15, %v1948_v27, %v1951_v32  ;;  %vm2049_vm2 = vcmp.lt.s32.totalorder %v12460_v1, 2  ;;  %v12462_v30 = vld [vmem:[#allocation70_spill] sm:$0xff] }
 0x3e7   :  { %v5303_v22 = vsel %vm5296_vm11, %v5299_v52, %v5302_v35  ;;  %v1953_v33 = vsel %vm1942_vm1, nan, %v1952_v12  ;;  %vm2050_vm9 = vcmp.eq.s32.totalorder %v12460_v1, 0  ;;  %v2051_v56 = vxor.u32 2147483648, %v12461_v7  ;;  %v12466_v34 = vld [vmem:[#allocation74_spill] sm:$0xff]  ;;  %v12467_v52 = vld [vmem:[#allocation55_spill] sm:$0xff]  ;;  %v12468_v12 = vld [vmem:[#allocation72_spill] sm:$0xff] }
 0x3e8   :  { %7865 = vmatmul.mubr.f32.gmra.mxu1 %v7107_v15  ;;  %v5304_v49 = vsel %vm1942_vm1, nan, %v5303_v22  ;;  %v3742_v19 = vmul.f32 %v12396_v47, %v1953_v33  ;;  %vm2053_vm0 = vcmp.eq.s32.totalorder %v12460_v1, 2  ;;  %v2054_v37 = vxor.u32 2147483648, %v12462_v30  ;;  %v12469_v33 = vld [vmem:[#allocation77_spill] sm:$0xff] }
 0x3e9   :  { %v7076_v39 = vmul.f32 %v12401_v46, %v5304_v49  ;;  %v2052_v5 = vsel %vm2050_vm9, %v12462_v30, %v2051_v56  ;;  %vm5399_vm6 = vcmp.lt.s32.totalorder %v12463_v31, 2  ;;  %vm5400_vm3 = vcmp.eq.s32.totalorder %v12463_v31, 0 }
 0x3ea   :  { %vm5403_vm13 = vcmp.eq.s32.totalorder %v12463_v31, 2  ;;  %v2055_v36 = vsel %vm2053_vm0, %v2054_v37, %v12461_v7  ;;  %v5402_v40 = vsel %vm5400_vm3, %v12462_v30, %v2051_v56  ;;  %vm2046_vm5 = vweird.f32 %v12464_v26 }
 0x3eb   :  { %v7108_v43 = vadd.f32 %v7076_v39, %v3742_v19  ;;  %v5405_v14 = vsel %vm5403_vm13, %v2054_v37, %v12461_v7  ;;  %v2056_v6 = vsel %vm2049_vm2, %v2052_v5, %v2055_v36  ;;  %vm2153_vm14 = vcmp.lt.s32.totalorder %v12465_v58, 2  ;;  %v12471_v39 = vld [vmem:[#allocation69_spill] sm:$0xff] }
 0x3ec   :  { %v5406_v63 = vsel %vm5399_vm6, %v5402_v40, %v5405_v14  ;;  %v2057_v51 = vsel %vm2046_vm5, nan, %v2056_v6  ;;  %vm2154_vm4 = vcmp.eq.s32.totalorder %v12465_v58, 0  ;;  %v2155_v17 = vxor.u32 2147483648, %v10311_v60 }
 0x3ed   :  { %7867 = vmatprep.mubr.f32.mxu1 %v7108_v43  ;;  %v5407_v3 = vsel %vm2046_vm5, nan, %v5406_v63  ;;  %v3743_v28 = vmul.f32 %v12396_v47, %v2057_v51  ;;  %vm2157_vm15 = vcmp.eq.s32.totalorder %v12465_v58, 2  ;;  %v2158_v54 = vxor.u32 2147483648, %v10298_v57  ;;  %v12472_v43 = vld [vmem:[#allocation48_spill] sm:$0xff] }
 0x3ee   :  { %v7077_v25 = vmul.f32 %v12401_v46, %v5407_v3  ;;  %v2156_v10 = vsel %vm2154_vm4, %v10298_v57, %v2155_v17  ;;  %vm5502_vm7 = vcmp.lt.s32.totalorder %v12466_v34, 2  ;;  %vm5503_vm12 = vcmp.eq.s32.totalorder %v12466_v34, 0 }
 0x3ef   :  { %vm5506_vm11 = vcmp.eq.s32.totalorder %v12466_v34, 2  ;;  %v2159_v42 = vsel %vm2157_vm15, %v2158_v54, %v10311_v60  ;;  %v5505_v15 = vsel %vm5503_vm12, %v10298_v57, %v2155_v17  ;;  %vm2150_vm10 = vweird.f32 %v12467_v52 }
 0x3f0   :  { %v7109_v27 = vadd.f32 %v7077_v25, %v3743_v28  ;;  %v5508_v32 = vsel %vm5506_vm11, %v2158_v54, %v10311_v60  ;;  %v2160_v35 = vsel %vm2153_vm14, %v2156_v10, %v2159_v42  ;;  %vm2257_vm8 = vcmp.lt.s32.totalorder %v12468_v12, 2  ;;  %v12470_v60 = vld [vmem:[#allocation76_spill] sm:$0xff]  ;;  %v12473_v10 = vld [vmem:[#allocation65_spill] sm:$0xff]  ;;  %v12474_v42 = vld [vmem:[#allocation82_spill] sm:$0xff] }
 0x3f1   :  { %v5509_v61 = vsel %vm5502_vm7, %v5505_v15, %v5508_v32  ;;  %v2161_v22 = vsel %vm2150_vm10, nan, %v2160_v35  ;;  %vm2258_vm1 = vcmp.eq.s32.totalorder %v12468_v12, 0  ;;  %v2259_v49 = vxor.u32 2147483648, %v12469_v33 }
 0x3f2   :  { %7868 = vmatmul.mubr.f32.gmra.mxu1 %v7109_v27  ;;  %v5510_v1 = vsel %vm2150_vm10, nan, %v5509_v61  ;;  %v3744_v7 = vmul.f32 %v12396_v47, %v2161_v22  ;;  %vm2261_vm2 = vcmp.eq.s32.totalorder %v12468_v12, 2  ;;  %v2262_v56 = vxor.u32 2147483648, %v12470_v60  ;;  %v12477_v12 = vld [vmem:[#allocation80_spill] sm:$0xff] }
 0x3f3   :  { %v7078_v57 = vmul.f32 %v12401_v46, %v5510_v1  ;;  %v2260_v19 = vsel %vm2258_vm1, %v12470_v60, %v2259_v49  ;;  %vm5605_vm9 = vcmp.lt.s32.totalorder %v12471_v39, 2  ;;  %vm5606_vm0 = vcmp.eq.s32.totalorder %v12471_v39, 0 }
 0x3f4   :  { %vm5609_vm6 = vcmp.eq.s32.totalorder %v12471_v39, 2  ;;  %v2263_v37 = vsel %vm2261_vm2, %v2262_v56, %v12469_v33  ;;  %v5608_v5 = vsel %vm5606_vm0, %v12470_v60, %v2259_v49  ;;  %vm2254_vm3 = vweird.f32 %v12472_v43  ;;  %v12481_v43 = vld [vmem:[#allocation93_spill] sm:$0xff] }
 0x3f5   :  { %v7110_v30 = vadd.f32 %v7078_v57, %v3744_v7  ;;  %v5611_v31 = vsel %vm5609_vm6, %v2262_v56, %v12469_v33  ;;  %v2264_v36 = vsel %vm2257_vm8, %v2260_v19, %v2263_v37  ;;  %vm2361_vm13 = vcmp.lt.s32.totalorder %v10271_v29, 2  ;;  %v12478_v7 = vld [vmem:[#allocation58_spill] sm:$0xff] }
 0x3f6   :  { %v5612_v40 = vsel %vm5605_vm9, %v5608_v5, %v5611_v31  ;;  %v2265_v14 = vsel %vm2254_vm3, nan, %v2264_v36  ;;  %vm2362_vm5 = vcmp.eq.s32.totalorder %v10271_v29, 0  ;;  %v2363_v6 = vxor.u32 2147483648, %v10469_v41  ;;  %v12479_v56 = vld [vmem:[#allocation90_spill] sm:$0xff] }
 0x3f7   :  { %7870 = vmatprep.mubr.f32.mxu1 %v7110_v30  ;;  %v5613_v26 = vsel %vm2254_vm3, nan, %v5612_v40  ;;  %v3745_v63 = vmul.f32 %v12396_v47, %v2265_v14  ;;  %vm2365_vm14 = vcmp.eq.s32.totalorder %v10271_v29, 2  ;;  %v2366_v51 = vxor.u32 2147483648, %v10464_v38  ;;  %v12480_v30 = vld [vmem:[#allocation96_spill] sm:$0xff]  ;;  %v12482_v14 = vld [vmem:[#allocation89_spill] sm:$0xff] }
 0x3f8   :  { %v7079_v58 = vmul.f32 %v12401_v46, %v5613_v26  ;;  %v2364_v3 = vsel %vm2362_vm5, %v10464_v38, %v2363_v6  ;;  %vm5708_vm4 = vcmp.lt.s32.totalorder %v10273_v4, 2  ;;  %vm5709_vm15 = vcmp.eq.s32.totalorder %v10273_v4, 0 }
 0x3f9   :  { %vm5712_vm7 = vcmp.eq.s32.totalorder %v10273_v4, 2  ;;  %v2367_v28 = vsel %vm2365_vm14, %v2366_v51, %v10469_v41  ;;  %v5711_v25 = vsel %vm5709_vm15, %v10464_v38, %v2363_v6  ;;  %vm2358_vm12 = vweird.f32 %v12473_v10  ;;  %v12475_v4 = vld [vmem:[#allocation86_spill] sm:$0xff]  ;;  %v12485_v10 = vld [vmem:[#allocation92_spill] sm:$0xff] }
 0x3fa   :  { %v7111_v17 = vadd.f32 %v7079_v58, %v3745_v63  ;;  %v5714_v54 = vsel %vm5712_vm7, %v2366_v51, %v10469_v41  ;;  %v2368_v34 = vsel %vm2361_vm13, %v2364_v3, %v2367_v28  ;;  %vm2465_vm11 = vcmp.lt.s32.totalorder %v12474_v42, 2  ;;  %v12476_v41 = vld [vmem:[#allocation85_spill] sm:$0xff]  ;;  %v12484_v28 = vld [vmem:[#allocation84_spill] sm:$0xff] }
 0x3fb   :  { %v5715_v27 = vsel %vm5708_vm4, %v5711_v25, %v5714_v54  ;;  %v2369_v15 = vsel %vm2358_vm12, nan, %v2368_v34  ;;  %vm2466_vm10 = vcmp.eq.s32.totalorder %v12474_v42, 0  ;;  %v2467_v52 = vxor.u32 2147483648, %v12475_v4  ;;  %v12483_v51 = vld [vmem:[#allocation73_spill] sm:$0xff] }
 0x3fc   :  { %7871 = vmatmul.mubr.f32.gmra.mxu1 %v7111_v17  ;;  %v5716_v32 = vsel %vm2358_vm12, nan, %v5715_v27  ;;  %v3746_v35 = vmul.f32 %v12396_v47, %v2369_v15  ;;  %vm2469_vm8 = vcmp.eq.s32.totalorder %v12474_v42, 2  ;;  %v2470_v61 = vxor.u32 2147483648, %v12476_v41  ;;  %v12486_v15 = vld [vmem:[#allocation91_spill] sm:$0xff] }
 0x3fd   :  { %v7080_v38 = vmul.f32 %v12401_v46, %v5716_v32  ;;  %v2468_v29 = vsel %vm2466_vm10, %v12476_v41, %v2467_v52  ;;  %vm5811_vm1 = vcmp.lt.s32.totalorder %v12477_v12, 2  ;;  %vm5812_vm2 = vcmp.eq.s32.totalorder %v12477_v12, 0 }
 0x3fe   :  { %vm5815_vm9 = vcmp.eq.s32.totalorder %v12477_v12, 2  ;;  %v2471_v1 = vsel %vm2469_vm8, %v2470_v61, %v12475_v4  ;;  %v5814_v33 = vsel %vm5812_vm2, %v12476_v41, %v2467_v52  ;;  %vm2462_vm0 = vweird.f32 %v12478_v7  ;;  %v12487_v52 = vld [vmem:[#allocation83_spill] sm:$0xff]  ;;  %v12490_v7 = vld [vmem:[#allocation108_spill] sm:$0xff] }
 0x3ff   :  { %v7112_v22 = vadd.f32 %v7080_v38, %v3746_v35  ;;  %v5817_v49 = vsel %vm5815_vm9, %v2470_v61, %v12475_v4  ;;  %v2472_v57 = vsel %vm2465_vm11, %v2468_v29, %v2471_v1  ;;  %vm2569_vm6 = vcmp.lt.s32.totalorder %v12479_v56, 2  ;;  %v12488_v29 = vld [vmem:[#allocation68_spill] sm:$0xff]  ;;  %v12489_v1 = vld [vmem:[#allocation99_spill] sm:$0xff] }
 0x400   :  { %v5818_v60 = vsel %vm5811_vm1, %v5814_v33, %v5817_v49  ;;  %v2473_v19 = vsel %vm2462_vm0, nan, %v2472_v57  ;;  %vm2570_vm3 = vcmp.eq.s32.totalorder %v12479_v56, 0  ;;  %v2571_v37 = vxor.u32 2147483648, %v12480_v30 }
 0x401   :  { %7873 = vmatprep.mubr.f32.mxu1 %v7112_v22  ;;  %v5819_v39 = vsel %vm2462_vm0, nan, %v5818_v60  ;;  %v3747_v5 = vmul.f32 %v12396_v47, %v2473_v19  ;;  %vm2573_vm13 = vcmp.eq.s32.totalorder %v12479_v56, 2  ;;  %v2574_v36 = vxor.u32 2147483648, %v12481_v43  ;;  %v12491_v19 = vld [vmem:[#allocation105_spill] sm:$0xff] }
 0x402   :  { %v7081_v31 = vmul.f32 %v12401_v46, %v5819_v39  ;;  %v2572_v40 = vsel %vm2570_vm3, %v12481_v43, %v2571_v37  ;;  %vm5914_vm5 = vcmp.lt.s32.totalorder %v12482_v14, 2  ;;  %vm5915_vm14 = vcmp.eq.s32.totalorder %v12482_v14, 0 }
 0x403   :  { %vm5918_vm4 = vcmp.eq.s32.totalorder %v12482_v14, 2  ;;  %v2575_v6 = vsel %vm2573_vm13, %v2574_v36, %v12480_v30  ;;  %v5917_v63 = vsel %vm5915_vm14, %v12481_v43, %v2571_v37  ;;  %vm2566_vm15 = vweird.f32 %v12483_v51  ;;  %v12492_v37 = vld [vmem:[#allocation98_spill] sm:$0xff] }
 0x404   :  { %v7113_v26 = vadd.f32 %v7081_v31, %v3747_v5  ;;  %v5920_v58 = vsel %vm5918_vm4, %v2574_v36, %v12480_v30  ;;  %v2576_v3 = vsel %vm2569_vm6, %v2572_v40, %v2575_v6  ;;  %vm2673_vm7 = vcmp.lt.s32.totalorder %v12484_v28, 2  ;;  %v12493_v40 = vld [vmem:[#allocation81_spill] sm:$0xff]  ;;  %v12495_v51 = vld [vmem:[#allocation102_spill] sm:$0xff] }
 0x405   :  { %v5921_v17 = vsel %vm5914_vm5, %v5917_v63, %v5920_v58  ;;  %v2577_v25 = vsel %vm2566_vm15, nan, %v2576_v3  ;;  %vm2674_vm12 = vcmp.eq.s32.totalorder %v12484_v28, 0  ;;  %v2675_v34 = vxor.u32 2147483648, %v12485_v10  ;;  %v12494_v6 = vld [vmem:[#allocation97_spill] sm:$0xff] }
 0x406   :  { %7874 = vmatmul.mubr.f32.gmra.mxu1 %v7113_v26  ;;  %v5922_v54 = vsel %vm2566_vm15, nan, %v5921_v17  ;;  %v3748_v27 = vmul.f32 %v12396_v47, %v2577_v25  ;;  %vm2677_vm11 = vcmp.eq.s32.totalorder %v12484_v28, 2  ;;  %v2678_v32 = vxor.u32 2147483648, %v12486_v15  ;;  %v12496_v25 = vld [vmem:[#allocation100_spill] sm:$0xff] }
 0x407   :  { %v7082_v42 = vmul.f32 %v12401_v46, %v5922_v54  ;;  %v2676_v4 = vsel %vm2674_vm12, %v12486_v15, %v2675_v34  ;;  %vm6017_vm10 = vcmp.lt.s32.totalorder %v12487_v52, 2  ;;  %vm6018_vm8 = vcmp.eq.s32.totalorder %v12487_v52, 0 }
 0x408   :  { %vm6021_vm1 = vcmp.eq.s32.totalorder %v12487_v52, 2  ;;  %v2679_v38 = vsel %vm2677_vm11, %v2678_v32, %v12485_v10  ;;  %v6020_v41 = vsel %vm6018_vm8, %v12486_v15, %v2675_v34  ;;  %vm2670_vm2 = vweird.f32 %v12488_v29  ;;  %v12497_v34 = vld [vmem:[#allocation95_spill] sm:$0xff]  ;;  %v12500_v29 = vld [vmem:[#allocation116_spill] sm:$0xff] }
 0x409   :  { %v7114_v35 = vadd.f32 %v7082_v42, %v3748_v27  ;;  %v6023_v61 = vsel %vm6021_vm1, %v2678_v32, %v12485_v10  ;;  %v2680_v12 = vsel %vm2673_vm7, %v2676_v4, %v2679_v38  ;;  %vm2777_vm9 = vcmp.lt.s32.totalorder %v12489_v1, 2  ;;  %v12498_v4 = vld [vmem:[#allocation79_spill] sm:$0xff]  ;;  %v12499_v38 = vld [vmem:[#allocation106_spill] sm:$0xff] }
 0x40a   :  { %v6024_v22 = vsel %vm6017_vm10, %v6020_v41, %v6023_v61  ;;  %v2681_v33 = vsel %vm2670_vm2, nan, %v2680_v12  ;;  %vm2778_vm0 = vcmp.eq.s32.totalorder %v12489_v1, 0  ;;  %v2779_v57 = vxor.u32 2147483648, %v12490_v7 }
 0x40b   :  { %7876 = vmatprep.mubr.f32.mxu1 %v7114_v35  ;;  %v6025_v49 = vsel %vm2670_vm2, nan, %v6024_v22  ;;  %v3749_v60 = vmul.f32 %v12396_v47, %v2681_v33  ;;  %vm2781_vm6 = vcmp.eq.s32.totalorder %v12489_v1, 2  ;;  %v2782_v39 = vxor.u32 2147483648, %v12491_v19  ;;  %v12501_v33 = vld [vmem:[#allocation115_spill] sm:$0xff] }
 0x40c   :  { %v7083_v56 = vmul.f32 %v12401_v46, %v6025_v49  ;;  %v2780_v30 = vsel %vm2778_vm0, %v12491_v19, %v2779_v57  ;;  %vm6120_vm3 = vcmp.lt.s32.totalorder %v12492_v37, 2  ;;  %vm6121_vm13 = vcmp.eq.s32.totalorder %v12492_v37, 0 }
 0x40d   :  { %vm6124_vm5 = vcmp.eq.s32.totalorder %v12492_v37, 2  ;;  %v2783_v31 = vsel %vm2781_vm6, %v2782_v39, %v12490_v7  ;;  %v6123_v43 = vsel %vm6121_vm13, %v12491_v19, %v2779_v57  ;;  %vm2774_vm14 = vweird.f32 %v12493_v40  ;;  %v12502_v57 = vld [vmem:[#allocation107_spill] sm:$0xff]  ;;  %v12505_v40 = vld [vmem:[#allocation114_spill] sm:$0xff] }
 0x40e   :  { %v7115_v5 = vadd.f32 %v7083_v56, %v3749_v60  ;;  %v6126_v36 = vsel %vm6124_vm5, %v2782_v39, %v12490_v7  ;;  %v2784_v14 = vsel %vm2777_vm9, %v2780_v30, %v2783_v31  ;;  %vm2881_vm4 = vcmp.lt.s32.totalorder %v12494_v6, 2  ;;  %v12503_v30 = vld [vmem:[#allocation88_spill] sm:$0xff]  ;;  %v12504_v31 = vld [vmem:[#allocation103_spill] sm:$0xff] }
 0x40f   :  { %v6127_v26 = vsel %vm6120_vm3, %v6123_v43, %v6126_v36  ;;  %v2785_v63 = vsel %vm2774_vm14, nan, %v2784_v14  ;;  %vm2882_vm15 = vcmp.eq.s32.totalorder %v12494_v6, 0  ;;  %v2883_v3 = vxor.u32 2147483648, %v12495_v51 }
 0x410   :  { %7877 = vmatmul.mubr.f32.gmra.mxu1 %v7115_v5  ;;  %v6128_v58 = vsel %vm2774_vm14, nan, %v6127_v26  ;;  %v3750_v17 = vmul.f32 %v12396_v47, %v2785_v63  ;;  %vm2885_vm7 = vcmp.eq.s32.totalorder %v12494_v6, 2  ;;  %v2886_v54 = vxor.u32 2147483648, %v12496_v25  ;;  %v12506_v63 = vld [vmem:[#allocation109_spill] sm:$0xff] }
 0x411   :  { %v7084_v28 = vmul.f32 %v12401_v46, %v6128_v58  ;;  %v2884_v10 = vsel %vm2882_vm15, %v12496_v25, %v2883_v3  ;;  %vm6223_vm12 = vcmp.lt.s32.totalorder %v12497_v34, 2  ;;  %vm6224_vm11 = vcmp.eq.s32.totalorder %v12497_v34, 0 }
 0x412   :  { %vm6227_vm10 = vcmp.eq.s32.totalorder %v12497_v34, 2  ;;  %v2887_v42 = vsel %vm2885_vm7, %v2886_v54, %v12495_v51  ;;  %v6226_v15 = vsel %vm6224_vm11, %v12496_v25, %v2883_v3  ;;  %vm2878_vm8 = vweird.f32 %v12498_v4  ;;  %v12507_v3 = vld [vmem:[#allocation101_spill] sm:$0xff] }
 0x413   :  { %v7116_v27 = vadd.f32 %v7084_v28, %v3750_v17  ;;  %v6229_v32 = vsel %vm6227_vm10, %v2886_v54, %v12495_v51  ;;  %v2888_v52 = vsel %vm2881_vm4, %v2884_v10, %v2887_v42  ;;  %vm2985_vm1 = vcmp.lt.s32.totalorder %v12499_v38, 2  ;;  %v12508_v10 = vld [vmem:[#allocation87_spill] sm:$0xff]  ;;  %v12509_v42 = vld [vmem:[#allocation113_spill] sm:$0xff] }
 0x414   :  { %v6230_v35 = vsel %vm6223_vm12, %v6226_v15, %v6229_v32  ;;  %v2889_v41 = vsel %vm2878_vm8, nan, %v2888_v52  ;;  %vm2986_vm2 = vcmp.eq.s32.totalorder %v12499_v38, 0  ;;  %v2987_v12 = vxor.u32 2147483648, %v12500_v29 }
 0x415   :  { %7879 = vmatprep.mubr.f32.mxu1 %v7116_v27  ;;  %v6231_v61 = vsel %vm2878_vm8, nan, %v6230_v35  ;;  %v3751_v22 = vmul.f32 %v12396_v47, %v2889_v41  ;;  %vm2989_vm9 = vcmp.eq.s32.totalorder %v12499_v38, 2  ;;  %v2990_v49 = vxor.u32 2147483648, %v12501_v33 }
 0x416   :  { %v7085_v1 = vmul.f32 %v12401_v46, %v6231_v61  ;;  %v2988_v7 = vsel %vm2986_vm2, %v12501_v33, %v2987_v12  ;;  %vm6326_vm0 = vcmp.lt.s32.totalorder %v12502_v57, 2  ;;  %vm6327_vm6 = vcmp.eq.s32.totalorder %v12502_v57, 0  ;;  %v12510_v61 = vld [vmem:[#allocation112_spill] sm:$0xff] }
 0x417   :  { %vm6330_vm3 = vcmp.eq.s32.totalorder %v12502_v57, 2  ;;  %v2991_v56 = vsel %vm2989_vm9, %v2990_v49, %v12500_v29  ;;  %v6329_v19 = vsel %vm6327_vm6, %v12501_v33, %v2987_v12  ;;  %vm2982_vm13 = vweird.f32 %v12503_v30 }
 0x418   :  { %v7117_v60 = vadd.f32 %v7085_v1, %v3751_v22  ;;  %v6332_v39 = vsel %vm6330_vm3, %v2990_v49, %v12500_v29  ;;  %v2992_v37 = vsel %vm2985_vm1, %v2988_v7, %v2991_v56  ;;  %vm3089_vm5 = vcmp.lt.s32.totalorder %v12504_v31, 2  ;;  %v12511_v7 = vld [vmem:[#allocation111_spill] sm:$0xff]  ;;  %v12512_v56 = vld [vmem:[#allocation118_spill] sm:$0xff] }
 0x419   :  { %v6333_v5 = vsel %vm6326_vm0, %v6329_v19, %v6332_v39  ;;  %v2993_v43 = vsel %vm2982_vm13, nan, %v2992_v37  ;;  %vm3090_vm14 = vcmp.eq.s32.totalorder %v12504_v31, 0  ;;  %v3091_v14 = vxor.u32 2147483648, %v12505_v40  ;;  %v12514_v37 = vld [vmem:[#allocation110_spill] sm:$0xff] }
 0x41a   :  { %7880 = vmatmul.mubr.f32.gmra.mxu1 %v7117_v60  ;;  %v6334_v36 = vsel %vm2982_vm13, nan, %v6333_v5  ;;  %v3752_v26 = vmul.f32 %v12396_v47, %v2993_v43  ;;  %vm3093_vm4 = vcmp.eq.s32.totalorder %v12504_v31, 2  ;;  %v3094_v58 = vxor.u32 2147483648, %v12506_v63 }
 0x41b   :  { %v7086_v6 = vmul.f32 %v12401_v46, %v6334_v36  ;;  %v3092_v51 = vsel %vm3090_vm14, %v12506_v63, %v3091_v14  ;;  %vm6429_vm15 = vcmp.lt.s32.totalorder %v12507_v3, 2  ;;  %vm6430_vm7 = vcmp.eq.s32.totalorder %v12507_v3, 0 }
 0x41c   :  { %vm6433_vm12 = vcmp.eq.s32.totalorder %v12507_v3, 2  ;;  %v3095_v28 = vsel %vm3093_vm4, %v3094_v58, %v12505_v40  ;;  %v6432_v25 = vsel %vm6430_vm7, %v12506_v63, %v3091_v14  ;;  %vm3086_vm11 = vweird.f32 %v12508_v10 }
 0x41d   :  { %v7118_v17 = vadd.f32 %v7086_v6, %v3752_v26  ;;  %v6435_v54 = vsel %vm6433_vm12, %v3094_v58, %v12505_v40  ;;  %v3096_v34 = vsel %vm3089_vm5, %v3092_v51, %v3095_v28  ;;  %vm3193_vm10 = vcmp.lt.s32.totalorder %v12509_v42, 2  ;;  %v12515_v40 = vld [vmem:[#allocation94_spill] sm:$0xff] }
 0x41e   :  { %v6436_v27 = vsel %vm6429_vm15, %v6432_v25, %v6435_v54  ;;  %v3097_v15 = vsel %vm3086_vm11, nan, %v3096_v34  ;;  %vm3194_vm8 = vcmp.eq.s32.totalorder %v12509_v42, 0  ;;  %v3195_v4 = vxor.u32 2147483648, %v11108_v59 }
 0x41f   :  { %7882 = vmatprep.mubr.f32.mxu1 %v7118_v17  ;;  %v6437_v32 = vsel %vm3086_vm11, nan, %v6436_v27  ;;  %v3753_v52 = vmul.f32 %v12396_v47, %v3097_v15  ;;  %vm3197_vm1 = vcmp.eq.s32.totalorder %v12509_v42, 2  ;;  %v3198_v38 = vxor.u32 2147483648, %v11101_v23  ;;  %v12516_v15 = vld [vmem:[#allocation119_spill] sm:$0xff] }
 0x420   :  { %v7087_v35 = vmul.f32 %v12401_v46, %v6437_v32  ;;  %v3196_v41 = vsel %vm3194_vm8, %v11101_v23, %v3195_v4  ;;  %vm6532_vm2 = vcmp.lt.s32.totalorder %v12510_v61, 2  ;;  %vm6533_vm9 = vcmp.eq.s32.totalorder %v12510_v61, 0 }
 0x421   :  { %vm6536_vm0 = vcmp.eq.s32.totalorder %v12510_v61, 2  ;;  %v3199_v12 = vsel %vm3197_vm1, %v3198_v38, %v11108_v59  ;;  %v6535_v22 = vsel %vm6533_vm9, %v11101_v23, %v3195_v4  ;;  %vm3190_vm6 = vweird.f32 %v10649_v8  ;;  %v12513_v8 = vld [vmem:[#allocation117_spill] sm:$0xff] }
 0x422   :  { %v7119_v29 = vadd.f32 %v7087_v35, %v3753_v52  ;;  %v6538_v1 = vsel %vm6536_vm0, %v3198_v38, %v11108_v59  ;;  %v3200_v33 = vsel %vm3193_vm10, %v3196_v41, %v3199_v12  ;;  %vm3297_vm3 = vcmp.lt.s32.totalorder %v12511_v7, 2 }
 0x423   :  { %v6539_v49 = vsel %vm6532_vm2, %v6535_v22, %v6538_v1  ;;  %v3201_v57 = vsel %vm3190_vm6, nan, %v3200_v33  ;;  %vm3298_vm13 = vcmp.eq.s32.totalorder %v12511_v7, 0  ;;  %v3299_v19 = vxor.u32 2147483648, %v12512_v56 }
 0x424   :  { %7883 = vmatmul.mubr.f32.gmra.mxu1 %v7119_v29  ;;  %v6540_v60 = vsel %vm3190_vm6, nan, %v6539_v49  ;;  %v3754_v39 = vmul.f32 %v12396_v47, %v3201_v57  ;;  %vm3301_vm5 = vcmp.eq.s32.totalorder %v12511_v7, 2  ;;  %v3302_v59 = vxor.u32 2147483648, %v12513_v8  ;;  %v12518_v29 = vld [vmem:[#allocation104_spill] sm:$0xff] }
 0x425   :  { %v7088_v23 = vmul.f32 %v12401_v46, %v6540_v60  ;;  %v3300_v30 = vsel %vm3298_vm13, %v12513_v8, %v3299_v19  ;;  %vm6635_vm14 = vcmp.lt.s32.totalorder %v12514_v37, 2  ;;  %vm6636_vm4 = vcmp.eq.s32.totalorder %v12514_v37, 0 }
 0x426   :  { %vm6639_vm15 = vcmp.eq.s32.totalorder %v12514_v37, 2  ;;  %v3303_v31 = vsel %vm3301_vm5, %v3302_v59, %v12512_v56  ;;  %v6638_v43 = vsel %vm6636_vm4, %v12513_v8, %v3299_v19  ;;  %vm3294_vm7 = vweird.f32 %v12515_v40 }
 0x427   :  { %v7120_v5 = vadd.f32 %v7088_v23, %v3754_v39  ;;  %v6641_v36 = vsel %vm6639_vm15, %v3302_v59, %v12512_v56  ;;  %v3304_v14 = vsel %vm3297_vm3, %v3300_v30, %v3303_v31  ;;  %vm3401_vm12 = vcmp.lt.s32.totalorder %v11132_v20, 2 }
 0x428   :  { %v6642_v26 = vsel %vm6635_vm14, %v6638_v43, %v6641_v36  ;;  %v3305_v6 = vsel %vm3294_vm7, nan, %v3304_v14  ;;  %vm3402_vm11 = vcmp.eq.s32.totalorder %v11132_v20, 0  ;;  %v3403_v58 = vxor.u32 2147483648, %v11335_v48 }
 0x429   :  { %7885 = vmatprep.mubr.f32.mxu1 %v7120_v5  ;;  %v6643_v63 = vsel %vm3294_vm7, nan, %v6642_v26  ;;  %v3755_v51 = vmul.f32 %v12396_v47, %v3305_v6  ;;  %vm3405_vm10 = vcmp.eq.s32.totalorder %v11132_v20, 2  ;;  %v3406_v17 = vxor.u32 2147483648, %v11293_v53 }
 0x42a   :  { %v7089_v3 = vmul.f32 %v12401_v46, %v6643_v63  ;;  %v3404_v28 = vsel %vm3402_vm11, %v11293_v53, %v3403_v58  ;;  %vm6738_vm8 = vcmp.lt.s32.totalorder %v11134_v21, 2  ;;  %vm6739_vm1 = vcmp.eq.s32.totalorder %v11134_v21, 0 }
 0x42b   :  { %vm6742_vm2 = vcmp.eq.s32.totalorder %v11134_v21, 2  ;;  %v3407_v54 = vsel %vm3405_vm10, %v3406_v17, %v11335_v48  ;;  %v6741_v10 = vsel %vm6739_vm1, %v11293_v53, %v3403_v58  ;;  %vm3398_vm9 = vweird.f32 %v10839_v55 }
 0x42c   :  { %v7121_v25 = vadd.f32 %v7089_v3, %v3755_v51  ;;  %v6744_v34 = vsel %vm6742_vm2, %v3406_v17, %v11335_v48  ;;  %v3408_v27 = vsel %vm3401_vm12, %v3404_v28, %v3407_v54  ;;  %vm3505_vm0 = vcmp.lt.s32.totalorder %v12516_v15, 2  ;;  %v12517_v48 = vld [vmem:[#allocation120_spill] sm:$0xff] }
 0x42d   :  { %v6745_v42 = vsel %vm6738_vm8, %v6741_v10, %v6744_v34  ;;  %v3409_v32 = vsel %vm3398_vm9, nan, %v3408_v27  ;;  %vm3506_vm6 = vcmp.eq.s32.totalorder %v12516_v15, 0  ;;  %v3507_v21 = vxor.u32 2147483648, %v11184_v11 }
 0x42e   :  { %7886 = vmatmul.mubr.f32.gmra.mxu1 %v7121_v25  ;;  %v6746_v4 = vsel %vm3398_vm9, nan, %v6745_v42  ;;  %v3756_v52 = vmul.f32 %v12396_v47, %v3409_v32  ;;  %vm3509_vm3 = vcmp.eq.s32.totalorder %v12516_v15, 2  ;;  %v3510_v55 = vxor.u32 2147483648, %v11178_v0 }
 0x42f   :  { %v7090_v53 = vmul.f32 %v12401_v46, %v6746_v4  ;;  %v3508_v20 = vsel %vm3506_vm6, %v11178_v0, %v3507_v21  ;;  %vm6841_vm13 = vcmp.lt.s32.totalorder %v12517_v48, 2  ;;  %vm6842_vm5 = vcmp.eq.s32.totalorder %v12517_v48, 0 }
 0x430   :  { %vm6845_vm14 = vcmp.eq.s32.totalorder %v12517_v48, 2  ;;  %v3511_v38 = vsel %vm3509_vm3, %v3510_v55, %v11184_v11  ;;  %v6844_v41 = vsel %vm6842_vm5, %v11178_v0, %v3507_v21  ;;  %vm3502_vm4 = vweird.f32 %v12518_v29 }
 0x431   :  { %v7122_v35 = vadd.f32 %v7090_v53, %v3756_v52  ;;  %v6847_v61 = vsel %vm6845_vm14, %v3510_v55, %v11184_v11  ;;  %v3512_v12 = vsel %vm3505_vm0, %v3508_v20, %v3511_v38  ;;  %vm3609_vm15 = vcmp.lt.s32.totalorder %v11382_v9, 2 }
 0x432   :  { %v6848_v22 = vsel %vm6841_vm13, %v6844_v41, %v6847_v61  ;;  %v3513_v1 = vsel %vm3502_vm4, nan, %v3512_v12  ;;  %vm3610_vm7 = vcmp.eq.s32.totalorder %v11382_v9, 0  ;;  %v3611_v49 = vxor.u32 2147483648, %v11460_v62 }
 0x433   :  { %7888 = vmatprep.mubr.f32.mxu1 %v7122_v35  ;;  %v6849_v33 = vsel %vm3502_vm4, nan, %v6848_v22  ;;  %v3757_v7 = vmul.f32 %v12396_v47, %v3513_v1  ;;  %vm3613_vm12 = vcmp.eq.s32.totalorder %v11382_v9, 2  ;;  %v3614_v11 = vxor.u32 2147483648, %v11456_v24 }
 0x434   :  { %v7091_v0 = vmul.f32 %v12401_v46, %v6849_v33  ;;  %v3612_v57 = vsel %vm3610_vm7, %v11456_v24, %v3611_v49  ;;  %vm6944_vm11 = vcmp.lt.s32.totalorder %v11314_v45, 2  ;;  %vm6945_vm10 = vcmp.eq.s32.totalorder %v11314_v45, 0 }
 0x435   :  { %vm6948_vm8 = vcmp.eq.s32.totalorder %v11314_v45, 2  ;;  %v3615_v56 = vsel %vm3613_vm12, %v3614_v11, %v11460_v62  ;;  %v6947_v19 = vsel %vm6945_vm10, %v11456_v24, %v3611_v49  ;;  %vm3606_vm1 = vweird.f32 %v10993_v2 }
 0x436   :  { %v7123_v60 = vadd.f32 %v7091_v0, %v3757_v7  ;;  %v6950_v39 = vsel %vm6948_vm8, %v3614_v11, %v11460_v62  ;;  %v3616_v23 = vsel %vm3609_vm15, %v3612_v57, %v3615_v56  ;;  %vm3713_vm2 = vcmp.lt.s32.totalorder %v11225_v50, 2 }
 0x437   :  { %v6951_v8 = vsel %vm6944_vm11, %v6947_v19, %v6950_v39  ;;  %v3617_v59 = vsel %vm3606_vm1, nan, %v3616_v23  ;;  %vm3714_vm9 = vcmp.eq.s32.totalorder %v11225_v50, 0  ;;  %v3715_v45 = vxor.u32 2147483648, %v11385_v16 }
 0x438   :  { %7889 = vmatmul.mubr.f32.gmra.mxu1 %v7123_v60  ;;  %v6952_v30 = vsel %vm3606_vm1, nan, %v6951_v8  ;;  %v3758_v37 = vmul.f32 %v12396_v47, %v3617_v59  ;;  %vm3717_vm0 = vcmp.eq.s32.totalorder %v11225_v50, 2  ;;  %v3718_v2 = vxor.u32 2147483648, %v11360_v44 }
 0x439   :  { %v7092_v24 = vmul.f32 %v12401_v46, %v6952_v30  ;;  %v3716_v9 = vsel %vm3714_vm9, %v11360_v44, %v3715_v45  ;;  %vm7047_vm6 = vcmp.lt.s32.totalorder %v11202_v18, 2  ;;  %vm7048_vm3 = vcmp.eq.s32.totalorder %v11202_v18, 0 }
 0x43a   :  { %vm7051_vm13 = vcmp.eq.s32.totalorder %v11202_v18, 2  ;;  %v3719_v5 = vsel %vm3717_vm0, %v3718_v2, %v11385_v16  ;;  %v7050_v31 = vsel %vm7048_vm3, %v11360_v44, %v3715_v45  ;;  %vm3710_vm5 = vweird.f32 %v10950_v13  ;;  %v11838_v44 = vld [vmem:[%s12004_s4] ss:$0 sm:$0xff] }
 0x43b   :  { %v7124_v62 = vadd.f32 %v7092_v24, %v3758_v37  ;;  %v7053_v43 = vsel %vm7051_vm13, %v3718_v2, %v11385_v16  ;;  %v3720_v36 = vsel %vm3713_vm2, %v3716_v9, %v3719_v5  ;;  %vm7357_vm14 = vcmask 261120  }
 0x43c   :  { %v7054_v40 = vsel %vm7047_vm6, %v7050_v31, %v7053_v43  ;;  %v3721_v14 = vsel %vm3710_vm5, nan, %v3720_v36 }
 0x43d   :  { %7891 = vmatprep.mubr.f32.mxu1 %v7124_v62  ;;  %v7055_v26 = vsel %vm3710_vm5, nan, %v7054_v40  ;;  %v3759_v6 = vmul.f32 %v12396_v47, %v3721_v14 }
 0x43e   :  { %v7093_v18 = vmul.f32 %v12401_v46, %v7055_v26 }
 0x440   :  { %v7125_v63 = vadd.f32 %v7093_v18, %v3759_v6 }
 0x442   :  { %7892 = vmatmul.mubr.f32.gmra.mxu1 %v7125_v63 }
 0x460   :  { %v7848_v16 = vpop.f32.mrf.mxu0 }
 0x461   :  { %v7204_v13 = vadd.f32 %v7848_v16, %v11838_v44 }
 0x462   :  { %v7198_v50 = vpop.f32.mrf.mxu0 }
 0x463   :  { %7359 = vst.msk [vmem:[%s12005_s5 + $0x8] sm:$0xff] %vm7357_vm14, %v7204_v13  ;;  %v7199_v47 = vadd.f32 %v11838_v44, %v7198_v50 }
 0x465   :  { %7358 = vst.msk [vmem:[%s12005_s5] sm:$0xff] %vm7357_vm14, %v7199_v47 }
 0x470   :  { %v7851_v46 = vpop.f32.mrf.mxu0 }
 0x471   :  { %v7214_v58 = vadd.f32 %v7851_v46, %v11838_v44 }
 0x472   :  { %v7208_v51 = vpop.f32.mrf.mxu0 }
 0x473   :  { %7361 = vst.msk [vmem:[%s12005_s5 + $0x18] sm:$0xff] %vm7357_vm14, %v7214_v58  ;;  %v7209_v3 = vadd.f32 %v11838_v44, %v7208_v51 }
 0x475   :  { %7360 = vst.msk [vmem:[%s12005_s5 + $0x10] sm:$0xff] %vm7357_vm14, %v7209_v3 }
 0x47e   :  { %v7854_v17 = vpop.f32.mrf.mxu0 }
 0x47f   :  { %v7224_v28 = vadd.f32 %v7854_v17, %v11838_v44 }
 0x480   :  { %v7218_v25 = vpop.f32.mrf.mxu0 }
 0x481   :  { %7363 = vst.msk [vmem:[%s12005_s5 + $0x28] sm:$0xff] %vm7357_vm14, %v7224_v28  ;;  %v7219_v54 = vadd.f32 %v11838_v44, %v7218_v25 }
 0x483   :  { %7362 = vst.msk [vmem:[%s12005_s5 + $0x20] sm:$0xff] %vm7357_vm14, %v7219_v54 }
 0x48b   :  { %v7857_v10 = vpop.f32.mrf.mxu1 }
 0x48c   :  { %v7234_v34 = vadd.f32 %v7857_v10, %v11838_v44 }
 0x48d   :  { %v7228_v27 = vpop.f32.mrf.mxu1 }
 0x48e   :  { %7365 = vst.msk [vmem:[%s12005_s5 + $0x38] sm:$0xff] %vm7357_vm14, %v7234_v34  ;;  %v7229_v42 = vadd.f32 %v11838_v44, %v7228_v27 }
 0x490   :  { %7364 = vst.msk [vmem:[%s12005_s5 + $0x30] sm:$0xff] %vm7357_vm14, %v7229_v42 }
 0x494   :  { %v7860_v15 = vpop.f32.mrf.mxu1 }
 0x495   :  { %v7244_v32 = vadd.f32 %v7860_v15, %v11838_v44 }
 0x496   :  { %v7238_v4 = vpop.f32.mrf.mxu1 }
 0x497   :  { %7367 = vst.msk [vmem:[%s12005_s5 + $0x48] sm:$0xff] %vm7357_vm14, %v7244_v32  ;;  %v7239_v21 = vadd.f32 %v11838_v44, %v7238_v4 }
 0x499   :  { %7366 = vst.msk [vmem:[%s12005_s5 + $0x40] sm:$0xff] %vm7357_vm14, %v7239_v21 }
 0x49e   :  { %v7863_v52 = vpop.f32.mrf.mxu1 }
 0x49f   :  { %v7254_v53 = vadd.f32 %v7863_v52, %v11838_v44 }
 0x4a0   :  { %v7248_v55 = vpop.f32.mrf.mxu1 }
 0x4a1   :  { %7369 = vst.msk [vmem:[%s12005_s5 + $0x58] sm:$0xff] %vm7357_vm14, %v7254_v53  ;;  %v7249_v20 = vadd.f32 %v11838_v44, %v7248_v55 }
 0x4a3   :  { %7368 = vst.msk [vmem:[%s12005_s5 + $0x50] sm:$0xff] %vm7357_vm14, %v7249_v20 }
 0x4a8   :  { %v7866_v48 = vpop.f32.mrf.mxu1 }
 0x4a9   :  { %v7264_v35 = vadd.f32 %v7866_v48, %v11838_v44 }
 0x4aa   :  { %v7258_v38 = vpop.f32.mrf.mxu1 }
 0x4ab   :  { %7371 = vst.msk [vmem:[%s12005_s5 + $0x68] sm:$0xff] %vm7357_vm14, %v7264_v35  ;;  %v7259_v41 = vadd.f32 %v11838_v44, %v7258_v38 }
 0x4ad   :  { %7370 = vst.msk [vmem:[%s12005_s5 + $0x60] sm:$0xff] %vm7357_vm14, %v7259_v41 }
 0x4b2   :  { %v7869_v61 = vpop.f32.mrf.mxu1 }
 0x4b3   :  { %v7274_v29 = vadd.f32 %v7869_v61, %v11838_v44 }
 0x4b4   :  { %v7268_v12 = vpop.f32.mrf.mxu1 }
 0x4b5   :  { %7373 = vst.msk [vmem:[%s12005_s5 + $0x78] sm:$0xff] %vm7357_vm14, %v7274_v29  ;;  %v7269_v22 = vadd.f32 %v11838_v44, %v7268_v12 }
 0x4b7   :  { %7372 = vst.msk [vmem:[%s12005_s5 + $0x70] sm:$0xff] %vm7357_vm14, %v7269_v22 }
 0x4bc   :  { %v7872_v1 = vpop.f32.mrf.mxu1 }
 0x4bd   :  { %v7284_v33 = vadd.f32 %v7872_v1, %v11838_v44 }
 0x4be   :  { %v7278_v49 = vpop.f32.mrf.mxu1 }
 0x4bf   :  { %7375 = vst.msk [vmem:[%s12005_s5 + $0x88] sm:$0xff] %vm7357_vm14, %v7284_v33  ;;  %v7279_v7 = vadd.f32 %v11838_v44, %v7278_v49 }
 0x4c1   :  { %7374 = vst.msk [vmem:[%s12005_s5 + $0x80] sm:$0xff] %vm7357_vm14, %v7279_v7 }
 0x4c6   :  { %v7875_v0 = vpop.f32.mrf.mxu1 }
 0x4c7   :  { %v7294_v11 = vadd.f32 %v7875_v0, %v11838_v44 }
 0x4c8   :  { %v7288_v57 = vpop.f32.mrf.mxu1 }
 0x4c9   :  { %7377 = vst.msk [vmem:[%s12005_s5 + $0x98] sm:$0xff] %vm7357_vm14, %v7294_v11  ;;  %v7289_v60 = vadd.f32 %v11838_v44, %v7288_v57 }
 0x4cb   :  { %7376 = vst.msk [vmem:[%s12005_s5 + $0x90] sm:$0xff] %vm7357_vm14, %v7289_v60 }
 0x4d0   :  { %v7878_v56 = vpop.f32.mrf.mxu1 }
 0x4d1   :  { %v7304_v19 = vadd.f32 %v7878_v56, %v11838_v44 }
 0x4d2   :  { %v7298_v39 = vpop.f32.mrf.mxu1 }
 0x4d3   :  { %7379 = vst.msk [vmem:[%s12005_s5 + $0xa8] sm:$0xff] %vm7357_vm14, %v7304_v19  ;;  %v7299_v23 = vadd.f32 %v11838_v44, %v7298_v39 }
 0x4d5   :  { %7378 = vst.msk [vmem:[%s12005_s5 + $0xa0] sm:$0xff] %vm7357_vm14, %v7299_v23 }
 0x4da   :  { %v7881_v8 = vpop.f32.mrf.mxu1 }
 0x4db   :  { %v7314_v59 = vadd.f32 %v7881_v8, %v11838_v44 }
 0x4dc   :  { %v7308_v30 = vpop.f32.mrf.mxu1 }
 0x4dd   :  { %7381 = vst.msk [vmem:[%s12005_s5 + $0xb8] sm:$0xff] %vm7357_vm14, %v7314_v59  ;;  %v7309_v45 = vadd.f32 %v11838_v44, %v7308_v30 }
 0x4df   :  { %7380 = vst.msk [vmem:[%s12005_s5 + $0xb0] sm:$0xff] %vm7357_vm14, %v7309_v45 }
 0x4e4   :  { %v7884_v37 = vpop.f32.mrf.mxu1 }
 0x4e5   :  { %v7324_v24 = vadd.f32 %v7884_v37, %v11838_v44 }
 0x4e6   :  { %v7318_v2 = vpop.f32.mrf.mxu1 }
 0x4e7   :  { %7383 = vst.msk [vmem:[%s12005_s5 + $0xc8] sm:$0xff] %vm7357_vm14, %v7324_v24  ;;  %v7319_v9 = vadd.f32 %v11838_v44, %v7318_v2 }
 0x4e9   :  { %7382 = vst.msk [vmem:[%s12005_s5 + $0xc0] sm:$0xff] %vm7357_vm14, %v7319_v9 }
 0x4ee   :  { %v7887_v62 = vpop.f32.mrf.mxu1 }
 0x4ef   :  { %v7334_v5 = vadd.f32 %v7887_v62, %v11838_v44 }
 0x4f0   :  { %v7328_v31 = vpop.f32.mrf.mxu1 }
 0x4f1   :  { %7385 = vst.msk [vmem:[%s12005_s5 + $0xd8] sm:$0xff] %vm7357_vm14, %v7334_v5  ;;  %v7329_v43 = vadd.f32 %v11838_v44, %v7328_v31 }
 0x4f3   :  { %7384 = vst.msk [vmem:[%s12005_s5 + $0xd0] sm:$0xff] %vm7357_vm14, %v7329_v43 }
 0x4f8   :  { %v7890_v36 = vpop.f32.mrf.mxu1 }
 0x4f9   :  { %v7344_v40 = vadd.f32 %v7890_v36, %v11838_v44 }
 0x4fa   :  { %v7338_v14 = vpop.f32.mrf.mxu1 }
 0x4fb   :  { %7387 = vst.msk [vmem:[%s12005_s5 + $0xe8] sm:$0xff] %vm7357_vm14, %v7344_v40  ;;  %v7339_v26 = vadd.f32 %v11838_v44, %v7338_v14 }
 0x4fd   :  { %7386 = vst.msk [vmem:[%s12005_s5 + $0xe0] sm:$0xff] %vm7357_vm14, %v7339_v26 }
 0x502   :  { %v7893_v6 = vpop.f32.mrf.mxu1 }
 0x503   :  { %v7354_v18 = vadd.f32 %v7893_v6, %v11838_v44 }
 0x504   :  { %v7348_v63 = vpop.f32.mrf.mxu1 }
 0x505   :  { %7389 = vst.msk [vmem:[%s12005_s5 + $0xf8] sm:$0xff] %vm7357_vm14, %v7354_v18  ;;  %v7349_v16 = vadd.f32 %v11838_v44, %v7348_v63 }
 0x507   :  { %7388 = vst.msk [vmem:[%s12005_s5 + $0xf0] sm:$0xff] %vm7357_vm14, %v7349_v16 }

</bundles_post_ra>
